<compile_context>
chip_gen: v7x
topology: tpu7x:2x2x1
jax: 0.10.0
libtpu: 0.0.40
codegen_flags: <defaults>
</compile_context>

<pallas_src>
import jax
import jax.numpy as jnp
from jax.experimental import pallas as pl
from jax.experimental.pallas import tpu as pltpu

EPS = 1e-5
NEG_SLOPE = 0.01
DIMS = [784, 1024, 512, 256, 128, 10]   # layer sizes
OUT_PAD = 128                           # final layer padded to lane width
# packed-bias lane offsets: [1024, 512, 256, 128, 128] -> cumulative (all 128-aligned)
_B_OFF = (0, 1024, 1536, 1792, 1920, 2048)


def _mlp_kernel(x_ref, w1_ref, w2_ref, w3_ref, w4_ref, w5_ref, bias_ref, out_ref):
    """Fused forward: 4x (Linear[BN-folded] + LeakyReLU) + Linear + log_softmax."""

    def hidden(h_bf16, w_ref, b_row):
        acc = jnp.dot(h_bf16, w_ref[...], preferred_element_type=jnp.float32) + b_row
        acc = jnp.where(acc >= 0.0, acc, NEG_SLOPE * acc)   # LeakyReLU
        # Dropout(0.2) is identity in eval mode.
        return acc.astype(jnp.bfloat16)

    h = x_ref[...].astype(jnp.bfloat16)                       # [TB, 784] f32 -> bf16
    h = hidden(h, w1_ref, bias_ref[:, _B_OFF[0]:_B_OFF[1]])
    h = hidden(h, w2_ref, bias_ref[:, _B_OFF[1]:_B_OFF[2]])
    h = hidden(h, w3_ref, bias_ref[:, _B_OFF[2]:_B_OFF[3]])
    h = hidden(h, w4_ref, bias_ref[:, _B_OFF[3]:_B_OFF[4]])

    # Final Linear (padded to 128 outputs; pad bias = -1e30 => exp underflows to 0).
    logits = (jnp.dot(h, w5_ref[...], preferred_element_type=jnp.float32)
              + bias_ref[:, _B_OFF[4]:_B_OFF[5]])

    # log_softmax over classes (padded lanes contribute exp(-1e30) == 0).
    m = jnp.max(logits, axis=1, keepdims=True)
    z = logits - m
    lse = jnp.log(jnp.sum(jnp.exp(z), axis=1, keepdims=True))
    out_ref[...] = z - lse


def init_params(key):
    """PyTorch-style init. Linear W stored [in, out]; BN: g=1, be=0, rm=0, rv=1."""
    params = []
    keys = jax.random.split(key, 2 * (len(DIMS) - 1))
    for i in range(len(DIMS) - 1):
        fan_in, fan_out = DIMS[i], DIMS[i + 1]
        bound = 1.0 / (fan_in ** 0.5)
        w = jax.random.uniform(keys[2 * i], (fan_in, fan_out), jnp.float32,
                               minval=-bound, maxval=bound)
        b = jax.random.uniform(keys[2 * i + 1], (1, fan_out), jnp.float32,
                               minval=-bound, maxval=bound)
        if i < len(DIMS) - 2:
            g = jnp.ones((1, fan_out), jnp.float32)
            be = jnp.zeros((1, fan_out), jnp.float32)
            rm = jnp.zeros((1, fan_out), jnp.float32)
            rv = jnp.ones((1, fan_out), jnp.float32)
            params += [w, b, g, be, rm, rv]
        else:
            params += [w, b]
    return params


def fold_params(params):
    """Fold eval-mode BN into the Linears, cast weights to bf16, pad the final
    layer to 128 outputs, and pack all bias rows into one [1, 2048] f32 array."""
    ws, bs = [], []
    idx = 0
    for _ in range(len(DIMS) - 2):
        w, b, g, be, rm, rv = params[idx:idx + 6]
        idx += 6
        scale = g * jax.lax.rsqrt(rv + EPS)                 # [1, out]
        ws.append((w * scale).astype(jnp.bfloat16))         # W' = W * scale
        bs.append((b - rm) * scale + be)                    # b' (f32)
    w, b = params[idx:idx + 2]
    pad = OUT_PAD - DIMS[-1]
    ws.append(jnp.pad(w, ((0, 0), (0, pad))).astype(jnp.bfloat16))
    bs.append(jnp.pad(b, ((0, 0), (0, pad)), constant_values=-1e30))
    bias_packed = jnp.concatenate(bs, axis=1)               # [1, 2048] f32
    return (*ws, bias_packed)


def _round_up(n, m):
    return ((n + m - 1) // m) * m


def mlp_forward(x, folded):
    """x: [B, 1, 28, 28] or [B, 784] -> [B, 10] log-probs."""
    w1, w2, w3, w4, w5, bias_packed = folded
    B = x.shape[0]
    x2d = x.reshape(B, -1).astype(jnp.float32)   # flatten only; cast to bf16 in-kernel
    assert x2d.shape[1] == DIMS[0], f"expected {DIMS[0]} features, got {x2d.shape[1]}"

    # Batch tile: 256 (MXU M dim on v6e/v7x) when it divides evenly, else 128,
    # else round small batches up to a sublane multiple.
    if B >= 256 and B % 256 == 0:
        TB = 256
    elif B >= 128:
        TB = 128
    else:
        TB = _round_up(B, 8)
    Bp = _round_up(B, TB)
    if Bp != B:
        x2d = jnp.pad(x2d, ((0, Bp - B), (0, 0)))
    grid = (Bp // TB,)

    def resident(arr):
        # Full-array block + constant index_map -> stays VMEM-resident across steps.
        nd = arr.ndim
        return pl.BlockSpec(arr.shape, lambda i, _nd=nd: (0,) * _nd)

    n_params = sum(DIMS[i] * DIMS[i + 1] for i in range(len(DIMS) - 1))
    cost = pl.CostEstimate(
        flops=2 * Bp * n_params,
        transcendentals=Bp * OUT_PAD,                        # exp in log_softmax
        bytes_accessed=(Bp * DIMS[0] * 4                     # x (f32 in)
                        + 2 * n_params                       # bf16 weights
                        + 2048 * 4                           # packed bias
                        + Bp * OUT_PAD * 4),                 # f32 out
    )

    out = pl.pallas_call(
        _mlp_kernel,
        out_shape=jax.ShapeDtypeStruct((Bp, OUT_PAD), jnp.float32),
        grid=grid,
        in_specs=[
            pl.BlockSpec((TB, DIMS[0]), lambda i: (i, 0)),   # x: tiled over batch
            resident(w1), resident(w2), resident(w3), resident(w4), resident(w5),
            resident(bias_packed),
        ],
        out_specs=pl.BlockSpec((TB, OUT_PAD), lambda i: (i, 0)),
        compiler_params=pltpu.CompilerParams(
            dimension_semantics=("parallel",),               # megacore / v7x 2 TCs
        ),
        cost_estimate=cost,
    )(x2d, w1, w2, w3, w4, w5, bias_packed)

    return out[:B, :DIMS[-1]]


def reference_forward(x, params):
    """Pure-JAX f32 reference using the raw (unfolded) parameters."""
    B = x.shape[0]
    h = x.reshape(B, -1).astype(jnp.float32)
    idx = 0
    for _ in range(len(DIMS) - 2):
        w, b, g, be, rm, rv = params[idx:idx + 6]
        idx += 6
        h = h @ w + b
        h = (h - rm) * jax.lax.rsqrt(rv + EPS) * g + be
        h = jnp.where(h >= 0.0, h, NEG_SLOPE * h)
    w, b = params[idx:idx + 2]
    logits = h @ w + b
    return jax.nn.log_softmax(logits, axis=1)


if __name__ == "__main__":
    key = jax.random.PRNGKey(0)
    k_x, k_p = jax.random.split(key)

    # MNIST-like input: batch=8, 1x28x28 (flattens to 784 features)
    x = jax.random.normal(k_x, (8, 1, 28, 28), dtype=jnp.float32)
    params = init_params(k_p)
    folded = fold_params(params)

    out = mlp_forward(x, folded)
    out = jax.block_until_ready(out)

    ref = reference_forward(x, params)
    assert out.shape == (8, 10), out.shape
    # probabilities normalize exactly (up to f32 rounding)
    assert jnp.allclose(jnp.exp(out).sum(axis=1), 1.0, atol=1e-3)
    # bf16 weights/activations vs f32 reference: loose tolerance
    assert jnp.max(jnp.abs(out - ref)) < 5e-2, float(jnp.max(jnp.abs(out - ref)))

    print("KERNEL_OK")
</pallas_src>

<mosaic_0001>
module attributes {stable_mosaic.version = 11 : i64} {
  func.func @_mlp_kernel(%arg0: i32, %arg1: memref<8x784xf32, #tpu.memory_space<vmem>>, %arg2: memref<784x1024xbf16, #tpu.memory_space<vmem>>, %arg3: memref<1024x512xbf16, #tpu.memory_space<vmem>>, %arg4: memref<512x256xbf16, #tpu.memory_space<vmem>>, %arg5: memref<256x128xbf16, #tpu.memory_space<vmem>>, %arg6: memref<128x128xbf16, #tpu.memory_space<vmem>>, %arg7: memref<1x2048xf32, #tpu.memory_space<vmem>>, %arg8: memref<8x128xf32, #tpu.memory_space<vmem>>) attributes {dimension_semantics = [#tpu.dimension_semantics<parallel>], iteration_bounds = array<i64: 1>, scalar_prefetch = 0 : i64, scratch_operands = 0 : i64, tpu.core_type = #tpu.core_type<tc>, window_params = [{transform_indices = @transform_0, window_bounds = array<i64: 8, 784>}, {pipeline_mode = #tpu.pipeline_mode<synchronous>, transform_indices = @transform_1, window_bounds = array<i64: 784, 1024>}, {pipeline_mode = #tpu.pipeline_mode<synchronous>, transform_indices = @transform_2, window_bounds = array<i64: 1024, 512>}, {pipeline_mode = #tpu.pipeline_mode<synchronous>, transform_indices = @transform_3, window_bounds = array<i64: 512, 256>}, {pipeline_mode = #tpu.pipeline_mode<synchronous>, transform_indices = @transform_4, window_bounds = array<i64: 256, 128>}, {pipeline_mode = #tpu.pipeline_mode<synchronous>, transform_indices = @transform_5, window_bounds = array<i64: 128, 128>}, {pipeline_mode = #tpu.pipeline_mode<synchronous>, transform_indices = @transform_6, window_bounds = array<i64: 1, 2048>}, {transform_indices = @transform_7, window_bounds = array<i64: 8, 128>}]} {
    %c0 = arith.constant 0 : index
    %c0_0 = arith.constant 0 : index
    %0 = vector.load %arg1[%c0, %c0_0] : memref<8x784xf32, #tpu.memory_space<vmem>>, vector<8x784xf32>
    %1 = arith.truncf %0 : vector<8x784xf32> to vector<8x784xbf16>
    %c0_1 = arith.constant 0 : index
    %c0_2 = arith.constant 0 : index
    %2 = vector.load %arg7[%c0_1, %c0_2] : memref<1x2048xf32, #tpu.memory_space<vmem>>, vector<1x1024xf32>
    %c0_3 = arith.constant 0 : index
    %c0_4 = arith.constant 0 : index
    %3 = vector.load %arg2[%c0_3, %c0_4] : memref<784x1024xbf16, #tpu.memory_space<vmem>>, vector<784x1024xbf16>
    %cst = arith.constant dense<0.000000e+00> : vector<8x1024xf32>
    %4 = tpu.matmul %1, %3, %cst {dimension_numbers = #tpu.dot_dimension_numbers<[1], [0], [0], [1], [0, 0, 1, 1], [], []>} : vector<8x784xbf16>, vector<784x1024xbf16>, vector<8x1024xf32> -> vector<8x1024xf32>
    %5 = vector.broadcast %2 : vector<1x1024xf32> to vector<8x1024xf32>
    %6 = arith.addf %4, %5 : vector<8x1024xf32>
    %cst_5 = arith.constant 0.000000e+00 : f32
    %7 = vector.broadcast %cst_5 : f32 to vector<8x1024xf32>
    %8 = arith.cmpf oge, %6, %7 : vector<8x1024xf32>
    %cst_6 = arith.constant 0.00999999977 : f32
    %9 = vector.broadcast %cst_6 : f32 to vector<8x1024xf32>
    %10 = arith.mulf %9, %6 : vector<8x1024xf32>
    %11 = arith.select %8, %6, %10 : vector<8x1024xi1>, vector<8x1024xf32>
    %12 = arith.truncf %11 : vector<8x1024xf32> to vector<8x1024xbf16>
    %c0_7 = arith.constant 0 : index
    %c1024 = arith.constant 1024 : index
    %13 = vector.load %arg7[%c0_7, %c1024] : memref<1x2048xf32, #tpu.memory_space<vmem>>, vector<1x512xf32>
    %c0_8 = arith.constant 0 : index
    %c0_9 = arith.constant 0 : index
    %14 = vector.load %arg3[%c0_8, %c0_9] : memref<1024x512xbf16, #tpu.memory_space<vmem>>, vector<1024x512xbf16>
    %cst_10 = arith.constant dense<0.000000e+00> : vector<8x512xf32>
    %15 = tpu.matmul %12, %14, %cst_10 {dimension_numbers = #tpu.dot_dimension_numbers<[1], [0], [0], [1], [0, 0, 1, 1], [], []>} : vector<8x1024xbf16>, vector<1024x512xbf16>, vector<8x512xf32> -> vector<8x512xf32>
    %16 = vector.broadcast %13 : vector<1x512xf32> to vector<8x512xf32>
    %17 = arith.addf %15, %16 : vector<8x512xf32>
    %cst_11 = arith.constant 0.000000e+00 : f32
    %18 = vector.broadcast %cst_11 : f32 to vector<8x512xf32>
    %19 = arith.cmpf oge, %17, %18 : vector<8x512xf32>
    %cst_12 = arith.constant 0.00999999977 : f32
    %20 = vector.broadcast %cst_12 : f32 to vector<8x512xf32>
    %21 = arith.mulf %20, %17 : vector<8x512xf32>
    %22 = arith.select %19, %17, %21 : vector<8x512xi1>, vector<8x512xf32>
    %23 = arith.truncf %22 : vector<8x512xf32> to vector<8x512xbf16>
    %c0_13 = arith.constant 0 : index
    %c1536 = arith.constant 1536 : index
    %24 = vector.load %arg7[%c0_13, %c1536] : memref<1x2048xf32, #tpu.memory_space<vmem>>, vector<1x256xf32>
    %c0_14 = arith.constant 0 : index
    %c0_15 = arith.constant 0 : index
    %25 = vector.load %arg4[%c0_14, %c0_15] : memref<512x256xbf16, #tpu.memory_space<vmem>>, vector<512x256xbf16>
    %cst_16 = arith.constant dense<0.000000e+00> : vector<8x256xf32>
    %26 = tpu.matmul %23, %25, %cst_16 {dimension_numbers = #tpu.dot_dimension_numbers<[1], [0], [0], [1], [0, 0, 1, 1], [], []>} : vector<8x512xbf16>, vector<512x256xbf16>, vector<8x256xf32> -> vector<8x256xf32>
    %27 = vector.broadcast %24 : vector<1x256xf32> to vector<8x256xf32>
    %28 = arith.addf %26, %27 : vector<8x256xf32>
    %cst_17 = arith.constant 0.000000e+00 : f32
    %29 = vector.broadcast %cst_17 : f32 to vector<8x256xf32>
    %30 = arith.cmpf oge, %28, %29 : vector<8x256xf32>
    %cst_18 = arith.constant 0.00999999977 : f32
    %31 = vector.broadcast %cst_18 : f32 to vector<8x256xf32>
    %32 = arith.mulf %31, %28 : vector<8x256xf32>
    %33 = arith.select %30, %28, %32 : vector<8x256xi1>, vector<8x256xf32>
    %34 = arith.truncf %33 : vector<8x256xf32> to vector<8x256xbf16>
    %c0_19 = arith.constant 0 : index
    %c1792 = arith.constant 1792 : index
    %35 = vector.load %arg7[%c0_19, %c1792] : memref<1x2048xf32, #tpu.memory_space<vmem>>, vector<1x128xf32>
    %c0_20 = arith.constant 0 : index
    %c0_21 = arith.constant 0 : index
    %36 = vector.load %arg5[%c0_20, %c0_21] : memref<256x128xbf16, #tpu.memory_space<vmem>>, vector<256x128xbf16>
    %cst_22 = arith.constant dense<0.000000e+00> : vector<8x128xf32>
    %37 = tpu.matmul %34, %36, %cst_22 {dimension_numbers = #tpu.dot_dimension_numbers<[1], [0], [0], [1], [0, 0, 1, 1], [], []>} : vector<8x256xbf16>, vector<256x128xbf16>, vector<8x128xf32> -> vector<8x128xf32>
    %38 = vector.broadcast %35 : vector<1x128xf32> to vector<8x128xf32>
    %39 = arith.addf %37, %38 : vector<8x128xf32>
    %cst_23 = arith.constant 0.000000e+00 : f32
    %40 = vector.broadcast %cst_23 : f32 to vector<8x128xf32>
    %41 = arith.cmpf oge, %39, %40 : vector<8x128xf32>
    %cst_24 = arith.constant 0.00999999977 : f32
    %42 = vector.broadcast %cst_24 : f32 to vector<8x128xf32>
    %43 = arith.mulf %42, %39 : vector<8x128xf32>
    %44 = arith.select %41, %39, %43 : vector<8x128xi1>, vector<8x128xf32>
    %45 = arith.truncf %44 : vector<8x128xf32> to vector<8x128xbf16>
    %c0_25 = arith.constant 0 : index
    %c0_26 = arith.constant 0 : index
    %46 = vector.load %arg6[%c0_25, %c0_26] : memref<128x128xbf16, #tpu.memory_space<vmem>>, vector<128x128xbf16>
    %cst_27 = arith.constant dense<0.000000e+00> : vector<8x128xf32>
    %47 = tpu.matmul %45, %46, %cst_27 {dimension_numbers = #tpu.dot_dimension_numbers<[1], [0], [0], [1], [0, 0, 1, 1], [], []>} : vector<8x128xbf16>, vector<128x128xbf16>, vector<8x128xf32> -> vector<8x128xf32>
    %c0_28 = arith.constant 0 : index
    %c1920 = arith.constant 1920 : index
    %48 = vector.load %arg7[%c0_28, %c1920] : memref<1x2048xf32, #tpu.memory_space<vmem>>, vector<1x128xf32>
    %49 = vector.broadcast %48 : vector<1x128xf32> to vector<8x128xf32>
    %50 = arith.addf %47, %49 : vector<8x128xf32>
    %cst_29 = arith.constant dense<0xFF800000> : vector<8xf32>
    %51 = vector.multi_reduction <maximumf>, %50, %cst_29 [1] : vector<8x128xf32> to vector<8xf32>
    %52 = vector.shape_cast %51 : vector<8xf32> to vector<8x1xf32>
    %53 = vector.broadcast %52 : vector<8x1xf32> to vector<8x128xf32>
    %54 = arith.subf %50, %53 : vector<8x128xf32>
    %55 = math.exp %54 : vector<8x128xf32>
    %cst_30 = arith.constant dense<0.000000e+00> : vector<8xf32>
    %56 = vector.multi_reduction <add>, %55, %cst_30 [1] : vector<8x128xf32> to vector<8xf32>
    %57 = vector.shape_cast %56 : vector<8xf32> to vector<8x1xf32>
    %58 = math.log %57 : vector<8x1xf32>
    %59 = vector.broadcast %58 : vector<8x1xf32> to vector<8x128xf32>
    %60 = arith.subf %54, %59 : vector<8x128xf32>
    %c0_31 = arith.constant 0 : index
    %c0_32 = arith.constant 0 : index
    %61 = vector.load %arg8[%c0_31, %c0_32] : memref<8x128xf32, #tpu.memory_space<vmem>>, vector<8x128xf32>
    tpu.vector_store %arg8[%c0_31, %c0_32], %60 {strides = array<i32>} : memref<8x128xf32, #tpu.memory_space<vmem>>, vector<8x128xf32>,
    return
  }
  func.func @transform_0(%arg0: i32) -> (i32, i32) {
    %c0_i32 = arith.constant 0 : i32
    %c0_i32_0 = arith.constant 0 : i32
    return %arg0, %c0_i32 : i32, i32
  }
  func.func @transform_1(%arg0: i32) -> (i32, i32) {
    %c0_i32 = arith.constant 0 : i32
    %c0_i32_0 = arith.constant 0 : i32
    %c0_i32_1 = arith.constant 0 : i32
    return %c0_i32, %c0_i32_0 : i32, i32
  }
  func.func @transform_2(%arg0: i32) -> (i32, i32) {
    %c0_i32 = arith.constant 0 : i32
    %c0_i32_0 = arith.constant 0 : i32
    %c0_i32_1 = arith.constant 0 : i32
    return %c0_i32, %c0_i32_0 : i32, i32
  }
  func.func @transform_3(%arg0: i32) -> (i32, i32) {
    %c0_i32 = arith.constant 0 : i32
    %c0_i32_0 = arith.constant 0 : i32
    %c0_i32_1 = arith.constant 0 : i32
    return %c0_i32, %c0_i32_0 : i32, i32
  }
  func.func @transform_4(%arg0: i32) -> (i32, i32) {
    %c0_i32 = arith.constant 0 : i32
    %c0_i32_0 = arith.constant 0 : i32
    %c0_i32_1 = arith.constant 0 : i32
    return %c0_i32, %c0_i32_0 : i32, i32
  }
  func.func @transform_5(%arg0: i32) -> (i32, i32) {
    %c0_i32 = arith.constant 0 : i32
    %c0_i32_0 = arith.constant 0 : i32
    %c0_i32_1 = arith.constant 0 : i32
    return %c0_i32, %c0_i32_0 : i32, i32
  }
  func.func @transform_6(%arg0: i32) -> (i32, i32) {
    %c0_i32 = arith.constant 0 : i32
    %c0_i32_0 = arith.constant 0 : i32
    %c0_i32_1 = arith.constant 0 : i32
    return %c0_i32, %c0_i32_0 : i32, i32
  }
  func.func @transform_7(%arg0: i32) -> (i32, i32) {
    %c0_i32 = arith.constant 0 : i32
    %c0_i32_0 = arith.constant 0 : i32
    return %arg0, %c0_i32 : i32, i32
  }
}

</mosaic_0001>

<bundles_post_ra>
// kernel: tpu_custom_call.1
= control target key start
LH: loop header
LB: loop body
LE: loop exit
PB: predicated region body
PF: predicated region fallthrough
CT: control target
= control target key end

     0   :  { %12 = vsyncpa [#allocation3], 0  ;;  %s7811_s0 = inlined_call_operand.hbm [shape: f32[8,784], index: 0, kind: input, shape index: {}]   ;;  %s7812_s1 = inlined_call_operand.hbm [shape: bf16[784,1024], index: 1, kind: input, shape index: {}]   ;;  %s7813_s2 = inlined_call_operand.hbm [shape: bf16[1024,512], index: 2, kind: input, shape index: {}]   ;;  %s7814_s3 = inlined_call_operand.hbm [shape: bf16[512,256], index: 3, kind: input, shape index: {}]   ;;  %s7815_s4 = inlined_call_operand.hbm [shape: bf16[256,128], index: 4, kind: input, shape index: {}]   ;;  %s7816_s5 = inlined_call_operand.hbm [shape: bf16[128,128], index: 5, kind: input, shape index: {}]   ;;  %s7817_s6 = inlined_call_operand.hbm [shape: f32[1,2048], index: 6, kind: input, shape index: {}]   ;;  %s7818_s7 = inlined_call_operand.hbm [shape: f32[8,128], index: 7, kind: output, shape index: {}]  }
   0x1   :  { %13 = vsyncpa [#allocation6], 0 }
   0x2   :  { %14 = vsyncpa [#allocation9], 0 }
   0x3   :  { %15 = vsyncpa [#allocation12], 0 }
   0x4   :  { %16 = vsyncpa [#allocation4], 0  ;;  %s7519_s24 = smov [#allocation5]   ;;  %s7333_s28 = scalar_lea.hbm %s7812_s1, 50176 }
   0x5   :  { %s32_s25 = sshll.u32 %s7519_s24, 4  ;;  %p7334_p0 = scmp.ne.s32.totalorder %s7812_s1, %s7333_s28  ;;  %s33_s25 = int_to_ptr.vmem [resolvable:$true] %s32_s25 }
   0x6   :  { %p7337_p1 = scmp.lt.u32.totalorder %s7333_s28, %s7812_s1 }
   0x8   :  { %p7339_p2 = pnand %p7337_p1, %p7334_p0 }
   0xa   :  { %7342 = shalt.err (!%p7339_p2)
}
   0xb   :  { %s7343_s10 = scalar_lea.vmem %s33_s25, 50176  ;;  %p7348_p4 = scmp.lt.s32.totalorder %s33_s25, %s33_s25 }
   0xc   :  { %p7344_p3 = scmp.ne.s32.totalorder %s33_s25, %s7343_s10  ;;  %p7349_p5 = scmp.lt.s32.totalorder %s7343_s10, %s7343_s10 }
   0xe   :  { %p7350_p6 = por %p7349_p5, %p7348_p4 }
  0x10   :  { %p7351_p7 = pnand %p7350_p6, %p7344_p3 }
  0x12   :  { %7354 = shalt.err (!%p7351_p7)
}
  0x13   :  { %s7520_s11 = smov 512   ;;  %s7521_s12 = smov 32  }
  0x14   :  { %38 = dma.hbm_to_vmem [thread:$0]  %s7812_s1, 50176, %s33_s25, [#allocation6], %s7520_s11, %s7520_s11, %s7521_s12  }
  0x15   :  { %s7522_s15 = smov [#allocation8]   ;;  %s7355_s19 = scalar_lea.hbm %s7814_s3, 8192 }
  0x16   :  { %s56_s16 = sshll.u32 %s7522_s15, 4  ;;  %p7356_p8 = scmp.ne.s32.totalorder %s7814_s3, %s7355_s19  ;;  %s57_s16 = int_to_ptr.vmem [resolvable:$true] %s56_s16 }
  0x17   :  { %p7359_p9 = scmp.lt.u32.totalorder %s7355_s19, %s7814_s3 }
  0x19   :  { %p7361_p10 = pnand %p7359_p9, %p7356_p8 }
  0x1b   :  { %7364 = shalt.err (!%p7361_p10)
}
  0x1c   :  { %s7365_s24 = scalar_lea.vmem %s57_s16, 8192  ;;  %p7370_p12 = scmp.lt.s32.totalorder %s57_s16, %s57_s16 }
  0x1d   :  { %p7366_p11 = scmp.ne.s32.totalorder %s57_s16, %s7365_s24  ;;  %p7371_p13 = scmp.lt.s32.totalorder %s7365_s24, %s7365_s24 }
  0x1f   :  { %p7372_p0 = por %p7371_p13, %p7370_p12 }
  0x21   :  { %p7373_p1 = pnand %p7372_p0, %p7366_p11 }
  0x23   :  { %7376 = shalt.err (!%p7373_p1)
}
  0x24   :  { %s7523_s1 = smov 128   ;;  %s7524_s25 = smov 8  }
  0x25   :  { %62 = dma.hbm_to_vmem [thread:$0]  %s7814_s3, 8192, %s57_s16, [#allocation9], %s7523_s1, %s7523_s1, %s7524_s25  }
  0x26   :  { %s7525_s28 = smov [#allocation11]   ;;  %s7526_s30 = smov [#allocation2]  }
  0x27   :  { %s80_s29 = sshll.u32 %s7525_s28, 4  ;;  %s23_s8 = sshll.u32 %s7526_s30, 4  ;;  %s81_s29 = int_to_ptr.vmem [resolvable:$true] %s80_s29  ;;  %s24_s8 = int_to_ptr.vmem [resolvable:$true] %s23_s8 }
  0x28   :  { %s7377_s11 = scalar_lea.hbm %s7816_s5, 1024 }
  0x29   :  { %p7378_p2 = scmp.ne.s32.totalorder %s7816_s5, %s7377_s11  ;;  %p7381_p3 = scmp.lt.u32.totalorder %s7377_s11, %s7816_s5 }
  0x2b   :  { %p7383_p4 = pnand %p7381_p3, %p7378_p2 }
  0x2d   :  { %7386 = shalt.err (!%p7383_p4)
}
  0x2e   :  { %s7387_s3 = scalar_lea.vmem %s81_s29, 1024  ;;  %p7392_p6 = scmp.lt.s32.totalorder %s81_s29, %s81_s29 }
  0x2f   :  { %p7388_p5 = scmp.ne.s32.totalorder %s81_s29, %s7387_s3  ;;  %p7393_p7 = scmp.lt.s32.totalorder %s7387_s3, %s7387_s3 }
  0x31   :  { %p7394_p8 = por %p7393_p7, %p7392_p6 }
  0x33   :  { %p7395_p9 = pnand %p7394_p8, %p7388_p5 }
  0x35   :  { %7398 = shalt.err (!%p7395_p9)
}
  0x36   :  { %s7527_s16 = smov 64   ;;  %s7528_s17 = smov 4  }
  0x37   :  { %86 = dma.hbm_to_vmem [thread:$0]  %s7816_s5, 1024, %s81_s29, [#allocation12], %s7527_s16, %s7527_s16, %s7528_s17  }
  0x38   :  { %s7399_s22 = scalar_lea.hbm %s7811_s0, 896 }
  0x39   :  { %p7400_p10 = scmp.ne.s32.totalorder %s7811_s0, %s7399_s22  ;;  %p7403_p11 = scmp.lt.u32.totalorder %s7399_s22, %s7811_s0 }
  0x3b   :  { %p7405_p12 = pnand %p7403_p11, %p7400_p10 }
  0x3d   :  { %7408 = shalt.err (!%p7405_p12)
}
  0x3e   :  { %s7409_s26 = scalar_lea.vmem %s24_s8, 896  ;;  %p7414_p0 = scmp.lt.s32.totalorder %s24_s8, %s24_s8 }
  0x3f   :  { %p7410_p13 = scmp.ne.s32.totalorder %s24_s8, %s7409_s26  ;;  %p7415_p1 = scmp.lt.s32.totalorder %s7409_s26, %s7409_s26 }
  0x41   :  { %p7416_p2 = por %p7415_p1, %p7414_p0 }
  0x43   :  { %p7417_p3 = pnand %p7416_p2, %p7410_p13 }
  0x45   :  { %7420 = shalt.err (!%p7417_p3)
}
  0x46   :  { %26 = dma.hbm_to_vmem [thread:$0]  %s7811_s0, 896, %s24_s8, [#allocation3]  }
  0x47   :  { %s7529_s28 = smov [#allocation7]   ;;  %s7421_s10 = scalar_lea.hbm %s7813_s2, 32768 }
  0x48   :  { %s44_s29 = sshll.u32 %s7529_s28, 4  ;;  %p7422_p4 = scmp.ne.s32.totalorder %s7813_s2, %s7421_s10  ;;  %s45_s29 = int_to_ptr.vmem [resolvable:$true] %s44_s29 }
  0x49   :  { %p7425_p5 = scmp.lt.u32.totalorder %s7421_s10, %s7813_s2 }
  0x4b   :  { %p7427_p6 = pnand %p7425_p5, %p7422_p4 }
  0x4d   :  { %7430 = shalt.err (!%p7427_p6)
}
  0x4e   :  { %s7431_s15 = scalar_lea.vmem %s45_s29, 32768  ;;  %p7436_p8 = scmp.lt.s32.totalorder %s45_s29, %s45_s29 }
  0x4f   :  { %p7432_p7 = scmp.ne.s32.totalorder %s45_s29, %s7431_s15  ;;  %p7437_p9 = scmp.lt.s32.totalorder %s7431_s15, %s7431_s15 }
  0x51   :  { %p7438_p10 = por %p7437_p9, %p7436_p8 }
  0x53   :  { %p7439_p11 = pnand %p7438_p10, %p7432_p7 }
  0x55   :  { %7442 = shalt.err (!%p7439_p11)
}
  0x56   :  { %s7530_s0 = smov 256   ;;  %s7531_s8 = smov 16  }
  0x57   :  { %50 = dma.hbm_to_vmem [thread:$0]  %s7813_s2, 32768, %s45_s29, [#allocation6], %s7530_s0, %s7530_s0, %s7531_s8  }
  0x58   :  { %s7532_s19 = smov [#allocation10]   ;;  %s7533_s21 = smov [#allocation13]  }
  0x59   :  { %s68_s20 = sshll.u32 %s7532_s19, 4  ;;  %s93_s22 = sshll.u32 %s7533_s21, 4  ;;  %s69_s20 = int_to_ptr.vmem [resolvable:$true] %s68_s20  ;;  %s94_s22 = int_to_ptr.vmem [resolvable:$true] %s93_s22 }
  0x5a   :  { %s7443_s1 = scalar_lea.hbm %s7815_s4, 2048 }
  0x5b   :  { %p7444_p12 = scmp.ne.s32.totalorder %s7815_s4, %s7443_s1  ;;  %p7447_p13 = scmp.lt.u32.totalorder %s7443_s1, %s7815_s4 }
  0x5d   :  { %p7449_p0 = pnand %p7447_p13, %p7444_p12 }
  0x5f   :  { %7452 = shalt.err (!%p7449_p0)
}
  0x60   :  { %s7453_s2 = scalar_lea.vmem %s69_s20, 2048  ;;  %p7458_p2 = scmp.lt.s32.totalorder %s69_s20, %s69_s20 }
  0x61   :  { %p7454_p1 = scmp.ne.s32.totalorder %s69_s20, %s7453_s2  ;;  %p7459_p3 = scmp.lt.s32.totalorder %s7453_s2, %s7453_s2 }
  0x63   :  { %p7460_p4 = por %p7459_p3, %p7458_p2 }
  0x65   :  { %p7461_p5 = pnand %p7460_p4, %p7454_p1 }
  0x67   :  { %7464 = shalt.err (!%p7461_p5)
}
  0x68   :  { %74 = dma.hbm_to_vmem [thread:$0]  %s7815_s4, 2048, %s69_s20, [#allocation9], %s7527_s16, %s7527_s16, %s7528_s17  }
  0x69   :  { %s7465_s10 = scalar_lea.hbm %s7817_s6, 256 }
  0x6a   :  { %p7466_p6 = scmp.ne.s32.totalorder %s7817_s6, %s7465_s10  ;;  %p7469_p7 = scmp.lt.u32.totalorder %s7465_s10, %s7817_s6 }
  0x6c   :  { %p7471_p8 = pnand %p7469_p7, %p7466_p6 }
  0x6e   :  { %7474 = shalt.err (!%p7471_p8)
}
  0x6f   :  { %s7475_s15 = scalar_lea.vmem %s94_s22, 256  ;;  %p7480_p10 = scmp.lt.s32.totalorder %s94_s22, %s94_s22 }
  0x70   :  { %p7476_p9 = scmp.ne.s32.totalorder %s94_s22, %s7475_s15  ;;  %p7481_p11 = scmp.lt.s32.totalorder %s7475_s15, %s7475_s15 }
  0x72   :  { %p7482_p12 = por %p7481_p11, %p7480_p10 }
  0x74   :  { %p7483_p13 = pnand %p7482_p12, %p7476_p9 }
  0x76   :  { %7486 = shalt.err (!%p7483_p13)
}
  0x77   :  { %96 = dma.hbm_to_vmem [thread:$0]  %s7817_s6, 256, %s94_s22, [#allocation12]  }
  0x78   :  { %7509 = dma.done.wait [#allocation3], 896  }
  0x79   :  { %7510 = vsyncadd [#allocation3], 4294966400 }
  0x7a   :  { %7511 = dma.done.wait [#allocation6], 82944  }
  0x7b   :  { %7512 = vsyncadd [#allocation6], 4294884352 }
  0x7c   :  { %7513 = dma.done.wait [#allocation9], 10240  }
  0x7d   :  { %7514 = vsyncadd [#allocation9], 4294957056 }
  0x7e   :  { %7515 = dma.done.wait [#allocation12], 1280  }
  0x7f   :  { %7516 = vsyncadd [#allocation12], 4294966016  ;;  %v7534_v0 = vmov 0   ;;  %v134_v1 = vld [vmem:[#allocation5] sm:$0xff]  ;;  %v135_v12 = vld [vmem:[#allocation5 + $0x8] sm:$0xff]  ;;  %vm2527_vm0 = vcmask 130048  }
  0x80   :  { %2686 = vmatprep.mubr.bf16.mxu1 %v7534_v0  ;;  %v138_v2 = vld [vmem:[#allocation5 + $0x20] sm:$0xff]  ;;  %v139_v13 = vld [vmem:[#allocation5 + $0x28] sm:$0xff]  ;;  %v125_v14 = vld [vmem:[#allocation2 + $0x30] sm:$0xff]  ;;  %vm7536_vm15 = vmmov 0   ;;  %s7537_s6 = smov [#allocation14]  }
  0x81   :  { %v518_v3 = vld [vmem:[#allocation5 + $0xc00] sm:$0xff]  ;;  %v5927_v4 = vcombine.high %v134_v1, %v138_v2  ;;  %v5926_v6 = vcombine.low %v134_v1, %v138_v2  ;;  %v5929_v15 = vcombine.high %v135_v12, %v139_v13  ;;  %v143_v18 = vld [vmem:[#allocation5 + $0x48] sm:$0xff]  ;;  %v7669_v20 = vpack.c.bf16 %v125_v14, %v125_v14  ;;  %v120_v56 = vld [vmem:[#allocation2 + $0x8] sm:$0xff]  ;;  %s5914_s17 = sshll.u32 %s7537_s6, 4  ;;  %s5915_s17 = int_to_ptr.vmem [resolvable:$true] %s5914_s17 }
  0x82   :  { %v522_v5 = vld [vmem:[#allocation5 + $0xc20] sm:$0xff]  ;;  %v147_v21 = vld [vmem:[#allocation5 + $0x68] sm:$0xff]  ;;  %v5928_v22 = vcombine.low %v135_v12, %v139_v13  ;;  %v7673_v60 = vpack.c.bf16 %v120_v56, %v120_v56  ;;  %s7487_s0 = scalar_lea.vmem %s5915_s17, 128  ;;  %p7492_p1 = scmp.lt.s32.totalorder %s5915_s17, %s5915_s17 }
  0x83   :  { %v142_v7 = vld [vmem:[#allocation5 + $0x40] sm:$0xff]  ;;  %v6311_v9 = vcombine.high %v518_v3, %v522_v5  ;;  %v6310_v10 = vcombine.low %v518_v3, %v522_v5  ;;  %2531 = vmatprep.subr.bf16.mxu0 %v5927_v4  ;;  %v5937_v24 = vcombine.high %v143_v18, %v147_v21  ;;  %v151_v27 = vld [vmem:[#allocation5 + $0x88] sm:$0xff]  ;;  %v5936_v30 = vcombine.low %v143_v18, %v147_v21  ;;  %p7488_p0 = scmp.ne.s32.totalorder %s5915_s17, %s7487_s0  ;;  %p7493_p2 = scmp.lt.s32.totalorder %s7487_s0, %s7487_s0 }
  0x84   :  { %v146_v8 = vld [vmem:[#allocation5 + $0x60] sm:$0xff]  ;;  %2532 = vmatpush1.bf16.msra.mxu0 %v5926_v6  ;;  %v155_v28 = vld [vmem:[#allocation5 + $0xa8] sm:$0xff]  ;;  %2563 = vmatprep.mubr.bf16.mxu0 %v7673_v60 }
  0x85   :  { %v5935_v11 = vcombine.high %v142_v7, %v146_v8  ;;  %v150_v16 = vld [vmem:[#allocation5 + $0x80] sm:$0xff]  ;;  %2654 = vmatprep.subr.bf16.mxu1 %v6311_v9  ;;  %v5934_v19 = vcombine.low %v142_v7, %v146_v8  ;;  %v5945_v32 = vcombine.high %v151_v27, %v155_v28  ;;  %v159_v35 = vld [vmem:[#allocation5 + $0xc8] sm:$0xff]  ;;  %v5944_v38 = vcombine.low %v151_v27, %v155_v28  ;;  %p7494_p3 = por %p7493_p2, %p7492_p1 }
  0x86   :  { %v154_v17 = vld [vmem:[#allocation5 + $0xa0] sm:$0xff]  ;;  %2655 = vmatpush1.bf16.msra.mxu1 %v6310_v10  ;;  %v163_v36 = vld [vmem:[#allocation5 + $0xe8] sm:$0xff] }
  0x87   :  { %2533 = vmatprep.subr.bf16.mxu0 %v5935_v11  ;;  %v5943_v23 = vcombine.high %v150_v16, %v154_v17  ;;  %2695 = vmatprep.subr.bf16.mxu1 %v5929_v15  ;;  %v158_v25 = vld [vmem:[#allocation5 + $0xc0] sm:$0xff]  ;;  %v5942_v29 = vcombine.low %v150_v16, %v154_v17  ;;  %v5953_v40 = vcombine.high %v159_v35, %v163_v36  ;;  %v167_v43 = vld [vmem:[#allocation5 + $0x108] sm:$0xff]  ;;  %p7495_p4 = pnand %p7494_p3, %p7488_p0 }
  0x88   :  { %v162_v26 = vld [vmem:[#allocation5 + $0xe0] sm:$0xff]  ;;  %2534 = vmatpush1.bf16.msra.mxu0 %v5934_v19  ;;  %v171_v44 = vld [vmem:[#allocation5 + $0x128] sm:$0xff]  ;;  %v5952_v46 = vcombine.low %v159_v35, %v163_v36 }
  0x89   :  { %6318 = vmatmul.mubr.msk.bf16.vlgmr.msra.gmra.mrb[0].mxu1 %vm2527_vm0, %v7669_v20  ;;  %2535 = vmatprep.subr.bf16.mxu0 %v5943_v23  ;;  %v5951_v31 = vcombine.high %v158_v25, %v162_v26  ;;  %v166_v33 = vld [vmem:[#allocation5 + $0x100] sm:$0xff]  ;;  %v5950_v37 = vcombine.low %v158_v25, %v162_v26  ;;  %v5961_v48 = vcombine.high %v167_v43, %v171_v44  ;;  %v175_v51 = vld [vmem:[#allocation5 + $0x148] sm:$0xff] }
  0x8a   :  { %2696 = vmatpush1.bf16.msra.mxu1 %v5928_v22  ;;  %v170_v34 = vld [vmem:[#allocation5 + $0x120] sm:$0xff]  ;;  %v179_v52 = vld [vmem:[#allocation5 + $0x168] sm:$0xff]  ;;  %v5960_v54 = vcombine.low %v167_v43, %v171_v44  ;;  %2727 = vmatprep.mubr.bf16.mxu1 %v7673_v60 }
  0x8b   :  { %2697 = vmatprep.subr.bf16.mxu1 %v5937_v24  ;;  %v5959_v39 = vcombine.high %v166_v33, %v170_v34  ;;  %v174_v41 = vld [vmem:[#allocation5 + $0x140] sm:$0xff]  ;;  %v5958_v45 = vcombine.low %v166_v33, %v170_v34  ;;  %v5969_v57 = vcombine.high %v175_v51, %v179_v52  ;;  %v183_v61 = vld [vmem:[#allocation5 + $0x188] sm:$0xff]  ;;  %v5968_v1 = vcombine.low %v175_v51, %v179_v52 }
  0x8c   :  { %2536 = vmatpush1.bf16.msra.mxu0 %v5942_v29  ;;  %v178_v42 = vld [vmem:[#allocation5 + $0x160] sm:$0xff]  ;;  %v187_v62 = vld [vmem:[#allocation5 + $0x1a8] sm:$0xff] }
  0x8d   :  { %2537 = vmatprep.subr.bf16.mxu0 %v5951_v31  ;;  %v5967_v47 = vcombine.high %v174_v41, %v178_v42  ;;  %v182_v49 = vld [vmem:[#allocation5 + $0x180] sm:$0xff]  ;;  %v5966_v53 = vcombine.low %v174_v41, %v178_v42  ;;  %v5977_v3 = vcombine.high %v183_v61, %v187_v62  ;;  %v191_v6 = vld [vmem:[#allocation5 + $0x1c8] sm:$0xff]  ;;  %v5976_v9 = vcombine.low %v183_v61, %v187_v62 }
  0x8e   :  { %2698 = vmatpush1.bf16.msra.mxu1 %v5936_v30  ;;  %v186_v50 = vld [vmem:[#allocation5 + $0x1a0] sm:$0xff]  ;;  %v195_v7 = vld [vmem:[#allocation5 + $0x1e8] sm:$0xff] }
  0x8f   :  { %2699 = vmatprep.subr.bf16.mxu1 %v5945_v32  ;;  %v5975_v55 = vcombine.high %v182_v49, %v186_v50  ;;  %v190_v58 = vld [vmem:[#allocation5 + $0x1c0] sm:$0xff]  ;;  %v5974_v63 = vcombine.low %v182_v49, %v186_v50  ;;  %v5985_v11 = vcombine.high %v191_v6, %v195_v7  ;;  %v199_v14 = vld [vmem:[#allocation5 + $0x208] sm:$0xff]  ;;  %v5984_v17 = vcombine.low %v191_v6, %v195_v7 }
  0x90   :  { %2538 = vmatpush1.bf16.msra.mxu0 %v5950_v37  ;;  %v194_v59 = vld [vmem:[#allocation5 + $0x1e0] sm:$0xff]  ;;  %v203_v15 = vld [vmem:[#allocation5 + $0x228] sm:$0xff] }
  0x91   :  { %2539 = vmatprep.subr.bf16.mxu0 %v5959_v39  ;;  %v5983_v2 = vcombine.high %v190_v58, %v194_v59  ;;  %v198_v4 = vld [vmem:[#allocation5 + $0x200] sm:$0xff]  ;;  %v5982_v8 = vcombine.low %v190_v58, %v194_v59  ;;  %v5993_v19 = vcombine.high %v199_v14, %v203_v15  ;;  %v207_v23 = vld [vmem:[#allocation5 + $0x248] sm:$0xff]  ;;  %v5992_v26 = vcombine.low %v199_v14, %v203_v15 }
  0x92   :  { %2700 = vmatpush1.bf16.msra.mxu1 %v5944_v38  ;;  %v202_v5 = vld [vmem:[#allocation5 + $0x220] sm:$0xff]  ;;  %v211_v24 = vld [vmem:[#allocation5 + $0x268] sm:$0xff] }
  0x93   :  { %2701 = vmatprep.subr.bf16.mxu1 %v5953_v40  ;;  %v5991_v10 = vcombine.high %v198_v4, %v202_v5  ;;  %v206_v12 = vld [vmem:[#allocation5 + $0x240] sm:$0xff]  ;;  %v5990_v16 = vcombine.low %v198_v4, %v202_v5  ;;  %v6001_v28 = vcombine.high %v207_v23, %v211_v24  ;;  %v215_v31 = vld [vmem:[#allocation5 + $0x288] sm:$0xff]  ;;  %v6000_v34 = vcombine.low %v207_v23, %v211_v24 }
  0x94   :  { %2540 = vmatpush1.bf16.msra.mxu0 %v5958_v45  ;;  %v210_v13 = vld [vmem:[#allocation5 + $0x260] sm:$0xff]  ;;  %v219_v32 = vld [vmem:[#allocation5 + $0x2a8] sm:$0xff] }
  0x95   :  { %2541 = vmatprep.subr.bf16.mxu0 %v5967_v47  ;;  %v5999_v18 = vcombine.high %v206_v12, %v210_v13  ;;  %v214_v21 = vld [vmem:[#allocation5 + $0x280] sm:$0xff]  ;;  %v5998_v25 = vcombine.low %v206_v12, %v210_v13  ;;  %v6009_v36 = vcombine.high %v215_v31, %v219_v32  ;;  %v223_v39 = vld [vmem:[#allocation5 + $0x2c8] sm:$0xff]  ;;  %v6008_v42 = vcombine.low %v215_v31, %v219_v32 }
  0x96   :  { %2702 = vmatpush1.bf16.msra.mxu1 %v5952_v46  ;;  %v218_v22 = vld [vmem:[#allocation5 + $0x2a0] sm:$0xff]  ;;  %v227_v40 = vld [vmem:[#allocation5 + $0x2e8] sm:$0xff] }
  0x97   :  { %2703 = vmatprep.subr.bf16.mxu1 %v5961_v48  ;;  %v6007_v27 = vcombine.high %v214_v21, %v218_v22  ;;  %v222_v29 = vld [vmem:[#allocation5 + $0x2c0] sm:$0xff]  ;;  %v6006_v33 = vcombine.low %v214_v21, %v218_v22  ;;  %v6017_v44 = vcombine.high %v223_v39, %v227_v40  ;;  %v231_v47 = vld [vmem:[#allocation5 + $0x308] sm:$0xff]  ;;  %v6016_v50 = vcombine.low %v223_v39, %v227_v40 }
  0x98   :  { %2542 = vmatpush1.bf16.msra.mxu0 %v5966_v53  ;;  %v226_v30 = vld [vmem:[#allocation5 + $0x2e0] sm:$0xff]  ;;  %v235_v48 = vld [vmem:[#allocation5 + $0x328] sm:$0xff] }
  0x99   :  { %2543 = vmatprep.subr.bf16.mxu0 %v5975_v55  ;;  %v6015_v35 = vcombine.high %v222_v29, %v226_v30  ;;  %v230_v37 = vld [vmem:[#allocation5 + $0x300] sm:$0xff]  ;;  %v6014_v41 = vcombine.low %v222_v29, %v226_v30  ;;  %v6025_v52 = vcombine.high %v231_v47, %v235_v48  ;;  %v239_v55 = vld [vmem:[#allocation5 + $0x348] sm:$0xff]  ;;  %v6024_v58 = vcombine.low %v231_v47, %v235_v48 }
  0x9a   :  { %2704 = vmatpush1.bf16.msra.mxu1 %v5960_v54  ;;  %v234_v38 = vld [vmem:[#allocation5 + $0x320] sm:$0xff]  ;;  %v243_v56 = vld [vmem:[#allocation5 + $0x368] sm:$0xff] }
  0x9b   :  { %2705 = vmatprep.subr.bf16.mxu1 %v5969_v57  ;;  %v6023_v43 = vcombine.high %v230_v37, %v234_v38  ;;  %v238_v45 = vld [vmem:[#allocation5 + $0x340] sm:$0xff]  ;;  %v6022_v49 = vcombine.low %v230_v37, %v234_v38  ;;  %v6033_v61 = vcombine.high %v239_v55, %v243_v56  ;;  %v6032_v4 = vcombine.low %v239_v55, %v243_v56  ;;  %v119_v12 = vld [vmem:[#allocation2] sm:$0xff] }
  0x9c   :  { %2544 = vmatpush1.bf16.msra.mxu0 %v5974_v63  ;;  %v242_v46 = vld [vmem:[#allocation5 + $0x360] sm:$0xff]  ;;  %v263_v21 = vld [vmem:[#allocation5 + $0x408] sm:$0xff] }
  0x9d   :  { %2545 = vmatprep.subr.bf16.mxu0 %v5983_v2  ;;  %v6031_v51 = vcombine.high %v238_v45, %v242_v46  ;;  %v246_v53 = vld [vmem:[#allocation5 + $0x380] sm:$0xff]  ;;  %v6030_v57 = vcombine.low %v238_v45, %v242_v46  ;;  %v251_v2 = vld [vmem:[#allocation5 + $0x3a8] sm:$0xff] }
  0x9e   :  { %2706 = vmatpush1.bf16.msra.mxu1 %v5968_v1  ;;  %v250_v54 = vld [vmem:[#allocation5 + $0x3a0] sm:$0xff]  ;;  %v247_v1 = vld [vmem:[#allocation5 + $0x388] sm:$0xff] }
  0x9f   :  { %2707 = vmatprep.subr.bf16.mxu1 %v5977_v3  ;;  %v6039_v59 = vcombine.high %v246_v53, %v250_v54  ;;  %v254_v62 = vld [vmem:[#allocation5 + $0x3c0] sm:$0xff]  ;;  %v6038_v3 = vcombine.low %v246_v53, %v250_v54  ;;  %v6041_v6 = vcombine.high %v247_v1, %v251_v2  ;;  %v6040_v13 = vcombine.low %v247_v1, %v251_v2  ;;  %v267_v22 = vld [vmem:[#allocation5 + $0x428] sm:$0xff] }
  0xa0   :  { %2546 = vmatpush1.bf16.msra.mxu0 %v5982_v8  ;;  %v258_v63 = vld [vmem:[#allocation5 + $0x3e0] sm:$0xff]  ;;  %v271_v30 = vld [vmem:[#allocation5 + $0x448] sm:$0xff] }
  0xa1   :  { %2547 = vmatprep.subr.bf16.mxu0 %v5991_v10  ;;  %v6047_v5 = vcombine.high %v254_v62, %v258_v63  ;;  %v262_v7 = vld [vmem:[#allocation5 + $0x400] sm:$0xff]  ;;  %v259_v10 = vld [vmem:[#allocation5 + $0x3e8] sm:$0xff] }
  0xa2   :  { %2708 = vmatpush1.bf16.msra.mxu1 %v5976_v9  ;;  %v266_v8 = vld [vmem:[#allocation5 + $0x420] sm:$0xff]  ;;  %v255_v9 = vld [vmem:[#allocation5 + $0x3c8] sm:$0xff] }
  0xa3   :  { %2709 = vmatprep.subr.bf16.mxu1 %v5985_v11  ;;  %v6046_v11 = vcombine.low %v254_v62, %v258_v63  ;;  %v6055_v14 = vcombine.high %v262_v7, %v266_v8  ;;  %v122_v15 = vld [vmem:[#allocation2 + $0x18] sm:$0xff]  ;;  %v6054_v23 = vcombine.low %v262_v7, %v266_v8  ;;  %v275_v31 = vld [vmem:[#allocation5 + $0x468] sm:$0xff] }
  0xa4   :  { %2548 = vmatpush1.bf16.msra.mxu0 %v5990_v16  ;;  %v6049_v16 = vcombine.high %v255_v9, %v259_v10  ;;  %v7679_v24 = vpack.c.bf16 %v122_v15, %v122_v15  ;;  %v282_v29 = vld [vmem:[#allocation5 + $0x4a0] sm:$0xff]  ;;  %v279_v37 = vld [vmem:[#allocation5 + $0x488] sm:$0xff]  ;;  %v6065_v39 = vcombine.high %v271_v30, %v275_v31 }
  0xa5   :  { %2549 = vmatprep.subr.bf16.mxu0 %v5999_v18  ;;  %v274_v18 = vld [vmem:[#allocation5 + $0x460] sm:$0xff]  ;;  %v283_v38 = vld [vmem:[#allocation5 + $0x4a8] sm:$0xff] }
  0xa6   :  { %2710 = vmatpush1.bf16.msra.mxu1 %v5984_v17  ;;  %v270_v17 = vld [vmem:[#allocation5 + $0x440] sm:$0xff]  ;;  %v287_v45 = vld [vmem:[#allocation5 + $0x4c8] sm:$0xff]  ;;  %v6073_v47 = vcombine.high %v279_v37, %v283_v38 }
  0xa7   :  { %2711 = vmatprep.subr.bf16.mxu1 %v5993_v19  ;;  %v7677_v19 = vpack.c.bf16 %v119_v12, %v119_v12  ;;  %v6062_v32 = vcombine.low %v270_v17, %v274_v18  ;;  %v291_v46 = vld [vmem:[#allocation5 + $0x4e8] sm:$0xff]  ;;  %v330_v12 = vld [vmem:[#allocation5 + $0x620] sm:$0xff] }
  0xa8   :  { %2550 = vmatpush1.bf16.msra.mxu0 %v5998_v25  ;;  %v6048_v25 = vcombine.low %v255_v9, %v259_v10  ;;  %v295_v53 = vld [vmem:[#allocation5 + $0x508] sm:$0xff]  ;;  %v6081_v55 = vcombine.high %v287_v45, %v291_v46 }
  0xa9   :  { %2551 = vmatprep.subr.bf16.mxu0 %v6007_v27  ;;  %v6057_v27 = vcombine.high %v263_v21, %v267_v22  ;;  %v299_v54 = vld [vmem:[#allocation5 + $0x528] sm:$0xff] }
  0xaa   :  { %2712 = vmatpush1.bf16.msra.mxu1 %v5992_v26  ;;  %v6063_v26 = vcombine.high %v270_v17, %v274_v18  ;;  %v303_v62 = vld [vmem:[#allocation5 + $0x548] sm:$0xff]  ;;  %v6089_v1 = vcombine.high %v295_v53, %v299_v54 }
  0xab   :  { %2713 = vmatprep.subr.bf16.mxu1 %v6001_v28  ;;  %v278_v28 = vld [vmem:[#allocation5 + $0x480] sm:$0xff]  ;;  %v307_v63 = vld [vmem:[#allocation5 + $0x568] sm:$0xff] }
  0xac   :  { %2552 = vmatpush1.bf16.msra.mxu0 %v6006_v33  ;;  %v286_v33 = vld [vmem:[#allocation5 + $0x4c0] sm:$0xff]  ;;  %v6070_v40 = vcombine.low %v278_v28, %v282_v29  ;;  %v311_v7 = vld [vmem:[#allocation5 + $0x588] sm:$0xff]  ;;  %v6097_v9 = vcombine.high %v303_v62, %v307_v63 }
  0xad   :  { %2553 = vmatprep.subr.bf16.mxu0 %v6015_v35  ;;  %v6056_v35 = vcombine.low %v263_v21, %v267_v22  ;;  %v315_v8 = vld [vmem:[#allocation5 + $0x5a8] sm:$0xff] }
  0xae   :  { %2714 = vmatpush1.bf16.msra.mxu1 %v6000_v34  ;;  %v290_v34 = vld [vmem:[#allocation5 + $0x4e0] sm:$0xff]  ;;  %v319_v15 = vld [vmem:[#allocation5 + $0x5c8] sm:$0xff]  ;;  %v6105_v17 = vcombine.high %v311_v7, %v315_v8  ;;  %v6104_v21 = vcombine.low %v311_v7, %v315_v8 }
  0xaf   :  { %2715 = vmatprep.subr.bf16.mxu1 %v6009_v36  ;;  %v6071_v36 = vcombine.high %v278_v28, %v282_v29  ;;  %v6078_v48 = vcombine.low %v286_v33, %v290_v34  ;;  %v331_v28 = vld [vmem:[#allocation5 + $0x628] sm:$0xff] }
  0xb0   :  { %2554 = vmatpush1.bf16.msra.mxu0 %v6014_v41  ;;  %v294_v41 = vld [vmem:[#allocation5 + $0x500] sm:$0xff] }
  0xb1   :  { %2555 = vmatprep.subr.bf16.mxu0 %v6023_v43  ;;  %v6064_v43 = vcombine.low %v271_v30, %v275_v31 }
  0xb2   :  { %2716 = vmatpush1.bf16.msra.mxu1 %v6008_v42  ;;  %v298_v42 = vld [vmem:[#allocation5 + $0x520] sm:$0xff] }
  0xb3   :  { %2717 = vmatprep.subr.bf16.mxu1 %v6017_v44  ;;  %v6079_v44 = vcombine.high %v286_v33, %v290_v34  ;;  %v6086_v56 = vcombine.low %v294_v41, %v298_v42  ;;  %v346_v33 = vld [vmem:[#allocation5 + $0x6a0] sm:$0xff] }
  0xb4   :  { %2556 = vmatpush1.bf16.msra.mxu0 %v6022_v49  ;;  %v302_v49 = vld [vmem:[#allocation5 + $0x540] sm:$0xff] }
  0xb5   :  { %2557 = vmatprep.subr.bf16.mxu0 %v6031_v51  ;;  %v6072_v51 = vcombine.low %v279_v37, %v283_v38 }
  0xb6   :  { %2718 = vmatpush1.bf16.msra.mxu1 %v6016_v50  ;;  %v306_v50 = vld [vmem:[#allocation5 + $0x560] sm:$0xff] }
  0xb7   :  { %2719 = vmatprep.subr.bf16.mxu1 %v6025_v52  ;;  %v6087_v52 = vcombine.high %v294_v41, %v298_v42  ;;  %v6094_v2 = vcombine.low %v302_v49, %v306_v50  ;;  %v354_v41 = vld [vmem:[#allocation5 + $0x6e0] sm:$0xff] }
  0xb8   :  { %2558 = vmatpush1.bf16.msra.mxu0 %v6030_v57  ;;  %v310_v57 = vld [vmem:[#allocation5 + $0x580] sm:$0xff] }
  0xb9   :  { %2559 = vmatprep.subr.bf16.mxu0 %v6039_v59  ;;  %v6080_v59 = vcombine.low %v287_v45, %v291_v46 }
  0xba   :  { %2720 = vmatpush1.bf16.msra.mxu1 %v6024_v58  ;;  %v314_v58 = vld [vmem:[#allocation5 + $0x5a0] sm:$0xff] }
  0xbb   :  { %2721 = vmatprep.subr.bf16.mxu1 %v6033_v61  ;;  %v6095_v61 = vcombine.high %v302_v49, %v306_v50  ;;  %v6102_v10 = vcombine.low %v310_v57, %v314_v58  ;;  %v362_v49 = vld [vmem:[#allocation5 + $0x720] sm:$0xff] }
  0xbc   :  { %2560 = vmatpush1.bf16.msra.mxu0 %v6038_v3  ;;  %v318_v3 = vld [vmem:[#allocation5 + $0x5c0] sm:$0xff] }
  0xbd   :  { %2561 = vmatprep.subr.bf16.mxu0 %v6047_v5  ;;  %v6088_v5 = vcombine.low %v295_v53, %v299_v54 }
  0xbe   :  { %2722 = vmatpush1.bf16.msra.mxu1 %v6032_v4  ;;  %v322_v4 = vld [vmem:[#allocation5 + $0x5e0] sm:$0xff] }
  0xbf   :  { %2723 = vmatprep.subr.bf16.mxu1 %v6041_v6  ;;  %v6103_v6 = vcombine.high %v310_v57, %v314_v58  ;;  %v6110_v18 = vcombine.low %v318_v3, %v322_v4  ;;  %v370_v57 = vld [vmem:[#allocation5 + $0x760] sm:$0xff] }
  0xc0   :  { %2562 = vmatpush1.bf16.msra.mxu0 %v6046_v11  ;;  %v326_v11 = vld [vmem:[#allocation5 + $0x600] sm:$0xff] }
  0xc1   :  { %2572 = vmatprep.subr.bf16.mxu0 %v6055_v14  ;;  %v6111_v14 = vcombine.high %v318_v3, %v322_v4  ;;  %v6119_v22 = vcombine.high %v326_v11, %v330_v12  ;;  %v6118_v29 = vcombine.low %v326_v11, %v330_v12  ;;  %v378_v3 = vld [vmem:[#allocation5 + $0x7a0] sm:$0xff] }
  0xc2   :  { %2724 = vmatpush1.bf16.msra.mxu1 %v6040_v13  ;;  %v6096_v13 = vcombine.low %v303_v62, %v307_v63  ;;  %v386_v11 = vld [vmem:[#allocation5 + $0x7e0] sm:$0xff] }
  0xc3   :  { %2725 = vmatprep.subr.bf16.mxu1 %v6049_v16  ;;  %2564 = vmatmul.mubr.bf16.vlgmr.msra.gmra.mrb[0].mxu0 %v7677_v19  ;;  %v323_v16 = vld [vmem:[#allocation5 + $0x5e8] sm:$0xff] }
  0xc4   :  { %2573 = vmatpush1.bf16.msra.mxu0 %v6054_v23  ;;  %2604 = vmatprep.mubr.bf16.mxu0 %v7679_v24  ;;  %v334_v23 = vld [vmem:[#allocation5 + $0x640] sm:$0xff]  ;;  %v6112_v30 = vcombine.low %v319_v15, %v323_v16 }
  0xc5   :  { %2574 = vmatprep.subr.bf16.mxu0 %v6063_v26  ;;  %v6113_v26 = vcombine.high %v319_v15, %v323_v16  ;;  %v390_v16 = vld [vmem:[#allocation5 + $0x800] sm:$0xff] }
  0xc6   :  { %2726 = vmatpush1.bf16.msra.mxu1 %v6048_v25  ;;  %v338_v25 = vld [vmem:[#allocation5 + $0x660] sm:$0xff] }
  0xc7   :  { %2736 = vmatprep.subr.bf16.mxu1 %v6057_v27  ;;  %v327_v27 = vld [vmem:[#allocation5 + $0x608] sm:$0xff]  ;;  %v6127_v31 = vcombine.high %v334_v23, %v338_v25  ;;  %v6126_v37 = vcombine.low %v334_v23, %v338_v25 }
  0xc8   :  { %2575 = vmatpush1.bf16.msra.mxu0 %v6062_v32  ;;  %v342_v32 = vld [vmem:[#allocation5 + $0x680] sm:$0xff]  ;;  %v6121_v34 = vcombine.high %v327_v27, %v331_v28  ;;  %v6120_v38 = vcombine.low %v327_v27, %v331_v28  ;;  %v387_v25 = vld [vmem:[#allocation5 + $0x7e8] sm:$0xff] }
  0xc9   :  { %2728 = vmatmul.mubr.bf16.vlgmr.msra.gmra.mrb[4].mxu1 %v7677_v19  ;;  %2576 = vmatprep.subr.bf16.mxu0 %v6071_v36  ;;  %v339_v36 = vld [vmem:[#allocation5 + $0x668] sm:$0xff]  ;;  %v6134_v45 = vcombine.low %v342_v32, %v346_v33  ;;  %v398_v28 = vld [vmem:[#allocation5 + $0x840] sm:$0xff] }
  0xca   :  { %2737 = vmatpush1.bf16.msra.mxu1 %v6056_v35  ;;  %2768 = vmatprep.mubr.bf16.mxu1 %v7679_v24  ;;  %v335_v35 = vld [vmem:[#allocation5 + $0x648] sm:$0xff] }
  0xcb   :  { %2738 = vmatprep.subr.bf16.mxu1 %v6065_v39  ;;  %v6135_v39 = vcombine.high %v342_v32, %v346_v33  ;;  %v6129_v42 = vcombine.high %v335_v35, %v339_v36  ;;  %v6128_v46 = vcombine.low %v335_v35, %v339_v36  ;;  %v124_v32 = vld [vmem:[#allocation2 + $0x28] sm:$0xff]  ;;  %v395_v35 = vld [vmem:[#allocation5 + $0x828] sm:$0xff] }
  0xcc   :  { %2577 = vmatpush1.bf16.msra.mxu0 %v6070_v40  ;;  %v350_v40 = vld [vmem:[#allocation5 + $0x6c0] sm:$0xff] }
  0xcd   :  { %2578 = vmatprep.subr.bf16.mxu0 %v6079_v44  ;;  %v347_v44 = vld [vmem:[#allocation5 + $0x6a8] sm:$0xff]  ;;  %v6142_v53 = vcombine.low %v350_v40, %v354_v41 }
  0xce   :  { %2739 = vmatpush1.bf16.msra.mxu1 %v6064_v43  ;;  %v343_v43 = vld [vmem:[#allocation5 + $0x688] sm:$0xff] }
  0xcf   :  { %2740 = vmatprep.subr.bf16.mxu1 %v6073_v47  ;;  %v6143_v47 = vcombine.high %v350_v40, %v354_v41  ;;  %v6137_v50 = vcombine.high %v343_v43, %v347_v44  ;;  %v6136_v54 = vcombine.low %v343_v43, %v347_v44  ;;  %v406_v41 = vld [vmem:[#allocation5 + $0x880] sm:$0xff]  ;;  %v399_v44 = vld [vmem:[#allocation5 + $0x848] sm:$0xff] }
  0xd0   :  { %2579 = vmatpush1.bf16.msra.mxu0 %v6078_v48  ;;  %v358_v48 = vld [vmem:[#allocation5 + $0x700] sm:$0xff] }
  0xd1   :  { %2580 = vmatprep.subr.bf16.mxu0 %v6087_v52  ;;  %v355_v52 = vld [vmem:[#allocation5 + $0x6e8] sm:$0xff]  ;;  %v6150_v62 = vcombine.low %v358_v48, %v362_v49 }
  0xd2   :  { %2741 = vmatpush1.bf16.msra.mxu1 %v6072_v51  ;;  %v351_v51 = vld [vmem:[#allocation5 + $0x6c8] sm:$0xff] }
  0xd3   :  { %2742 = vmatprep.subr.bf16.mxu1 %v6081_v55  ;;  %v6151_v55 = vcombine.high %v358_v48, %v362_v49  ;;  %v6145_v58 = vcombine.high %v351_v51, %v355_v52  ;;  %v6144_v63 = vcombine.low %v351_v51, %v355_v52  ;;  %v414_v49 = vld [vmem:[#allocation5 + $0x8c0] sm:$0xff]  ;;  %v407_v52 = vld [vmem:[#allocation5 + $0x888] sm:$0xff] }
  0xd4   :  { %2581 = vmatpush1.bf16.msra.mxu0 %v6086_v56  ;;  %v366_v56 = vld [vmem:[#allocation5 + $0x740] sm:$0xff] }
  0xd5   :  { %2582 = vmatprep.subr.bf16.mxu0 %v6095_v61  ;;  %v363_v61 = vld [vmem:[#allocation5 + $0x728] sm:$0xff]  ;;  %v6158_v7 = vcombine.low %v366_v56, %v370_v57 }
  0xd6   :  { %2743 = vmatpush1.bf16.msra.mxu1 %v6080_v59  ;;  %v359_v59 = vld [vmem:[#allocation5 + $0x708] sm:$0xff] }
  0xd7   :  { %2744 = vmatprep.subr.bf16.mxu1 %v6089_v1  ;;  %v6159_v1 = vcombine.high %v366_v56, %v370_v57  ;;  %v6153_v4 = vcombine.high %v359_v59, %v363_v61  ;;  %v6152_v8 = vcombine.low %v359_v59, %v363_v61  ;;  %v422_v57 = vld [vmem:[#allocation5 + $0x900] sm:$0xff]  ;;  %v415_v61 = vld [vmem:[#allocation5 + $0x8c8] sm:$0xff] }
  0xd8   :  { %2583 = vmatpush1.bf16.msra.mxu0 %v6094_v2  ;;  %v374_v2 = vld [vmem:[#allocation5 + $0x780] sm:$0xff] }
  0xd9   :  { %2584 = vmatprep.subr.bf16.mxu0 %v6103_v6  ;;  %v371_v6 = vld [vmem:[#allocation5 + $0x768] sm:$0xff]  ;;  %v6166_v15 = vcombine.low %v374_v2, %v378_v3 }
  0xda   :  { %2745 = vmatpush1.bf16.msra.mxu1 %v6088_v5  ;;  %v367_v5 = vld [vmem:[#allocation5 + $0x748] sm:$0xff] }
  0xdb   :  { %2746 = vmatprep.subr.bf16.mxu1 %v6097_v9  ;;  %v6167_v9 = vcombine.high %v374_v2, %v378_v3  ;;  %v6161_v12 = vcombine.high %v367_v5, %v371_v6  ;;  %v430_v3 = vld [vmem:[#allocation5 + $0x940] sm:$0xff] }
  0xdc   :  { %2585 = vmatpush1.bf16.msra.mxu0 %v6102_v10  ;;  %v382_v10 = vld [vmem:[#allocation5 + $0x7c0] sm:$0xff] }
  0xdd   :  { %2586 = vmatprep.subr.bf16.mxu0 %v6111_v14  ;;  %v379_v14 = vld [vmem:[#allocation5 + $0x7a8] sm:$0xff]  ;;  %v6174_v27 = vcombine.low %v382_v10, %v386_v11 }
  0xde   :  { %2747 = vmatpush1.bf16.msra.mxu1 %v6096_v13  ;;  %v375_v13 = vld [vmem:[#allocation5 + $0x788] sm:$0xff] }
  0xdf   :  { %2748 = vmatprep.subr.bf16.mxu1 %v6105_v17  ;;  %v6160_v17 = vcombine.low %v367_v5, %v371_v6  ;;  %v6169_v23 = vcombine.high %v375_v13, %v379_v14  ;;  %v423_v6 = vld [vmem:[#allocation5 + $0x908] sm:$0xff] }
  0xe0   :  { %2587 = vmatpush1.bf16.msra.mxu0 %v6110_v18  ;;  %v6175_v18 = vcombine.high %v382_v10, %v386_v11  ;;  %v438_v11 = vld [vmem:[#allocation5 + $0x980] sm:$0xff] }
  0xe1   :  { %2588 = vmatprep.subr.bf16.mxu0 %v6119_v22  ;;  %v383_v22 = vld [vmem:[#allocation5 + $0x7c8] sm:$0xff] }
  0xe2   :  { %2749 = vmatpush1.bf16.msra.mxu1 %v6104_v21  ;;  %v394_v21 = vld [vmem:[#allocation5 + $0x820] sm:$0xff]  ;;  %v6177_v33 = vcombine.high %v383_v22, %v387_v25 }
  0xe3   :  { %2750 = vmatprep.subr.bf16.mxu1 %v6113_v26  ;;  %v121_v26 = vld [vmem:[#allocation2 + $0x10] sm:$0xff] }
  0xe4   :  { %2589 = vmatpush1.bf16.msra.mxu0 %v6118_v29  ;;  %v6168_v29 = vcombine.low %v375_v13, %v379_v14  ;;  %v7685_v36 = vpack.c.bf16 %v121_v26, %v121_v26  ;;  %v431_v14 = vld [vmem:[#allocation5 + $0x948] sm:$0xff] }
  0xe5   :  { %2590 = vmatprep.subr.bf16.mxu0 %v6127_v31  ;;  %v402_v31 = vld [vmem:[#allocation5 + $0x860] sm:$0xff]  ;;  %v443_v26 = vld [vmem:[#allocation5 + $0x9a8] sm:$0xff] }
  0xe6   :  { %2751 = vmatpush1.bf16.msra.mxu1 %v6112_v30  ;;  %v6183_v30 = vcombine.high %v390_v16, %v394_v21  ;;  %v6191_v40 = vcombine.high %v398_v28, %v402_v31 }
  0xe7   :  { %2752 = vmatprep.subr.bf16.mxu1 %v6121_v34  ;;  %v391_v34 = vld [vmem:[#allocation5 + $0x808] sm:$0xff] }
  0xe8   :  { %2591 = vmatpush1.bf16.msra.mxu0 %v6126_v37  ;;  %v6182_v37 = vcombine.low %v390_v16, %v394_v21  ;;  %v6185_v43 = vcombine.high %v391_v34, %v395_v35  ;;  %v446_v21 = vld [vmem:[#allocation5 + $0x9c0] sm:$0xff] }
  0xe9   :  { %2592 = vmatprep.subr.bf16.mxu0 %v6135_v39  ;;  %v6176_v39 = vcombine.low %v383_v22, %v387_v25  ;;  %v450_v22 = vld [vmem:[#allocation5 + $0x9e0] sm:$0xff]  ;;  %v439_v25 = vld [vmem:[#allocation5 + $0x988] sm:$0xff] }
  0xea   :  { %2753 = vmatpush1.bf16.msra.mxu1 %v6120_v38  ;;  %v7687_v38 = vpack.c.bf16 %v124_v32, %v124_v32  ;;  %v6233_v32 = vcombine.high %v439_v25, %v443_v26 }
  0xeb   :  { %2754 = vmatprep.subr.bf16.mxu1 %v6129_v42  ;;  %v410_v42 = vld [vmem:[#allocation5 + $0x8a0] sm:$0xff] }
  0xec   :  { %2593 = vmatpush1.bf16.msra.mxu0 %v6134_v45  ;;  %v403_v45 = vld [vmem:[#allocation5 + $0x868] sm:$0xff]  ;;  %v6199_v48 = vcombine.high %v406_v41, %v410_v42 }
  0xed   :  { %2594 = vmatprep.subr.bf16.mxu0 %v6143_v47  ;;  %v6184_v47 = vcombine.low %v391_v34, %v395_v35  ;;  %v6193_v51 = vcombine.high %v399_v44, %v403_v45  ;;  %v451_v34 = vld [vmem:[#allocation5 + $0x9e8] sm:$0xff]  ;;  %v6238_v35 = vcombine.low %v446_v21, %v450_v22 }
  0xee   :  { %2755 = vmatpush1.bf16.msra.mxu1 %v6128_v46  ;;  %v6190_v46 = vcombine.low %v398_v28, %v402_v31  ;;  %v458_v31 = vld [vmem:[#allocation5 + $0xa20] sm:$0xff] }
  0xef   :  { %2756 = vmatprep.subr.bf16.mxu1 %v6137_v50  ;;  %v418_v50 = vld [vmem:[#allocation5 + $0x8e0] sm:$0xff] }
  0xf0   :  { %2595 = vmatpush1.bf16.msra.mxu0 %v6142_v53  ;;  %v411_v53 = vld [vmem:[#allocation5 + $0x8a8] sm:$0xff]  ;;  %v6207_v56 = vcombine.high %v414_v49, %v418_v50 }
  0xf1   :  { %2596 = vmatprep.subr.bf16.mxu0 %v6151_v55  ;;  %v6192_v55 = vcombine.low %v399_v44, %v403_v45  ;;  %v6201_v59 = vcombine.high %v407_v52, %v411_v53  ;;  %v459_v44 = vld [vmem:[#allocation5 + $0xa28] sm:$0xff] }
  0xf2   :  { %2757 = vmatpush1.bf16.msra.mxu1 %v6136_v54  ;;  %v6198_v54 = vcombine.low %v406_v41, %v410_v42  ;;  %v466_v41 = vld [vmem:[#allocation5 + $0xa60] sm:$0xff] }
  0xf3   :  { %2758 = vmatprep.subr.bf16.mxu1 %v6145_v58  ;;  %v426_v58 = vld [vmem:[#allocation5 + $0x920] sm:$0xff] }
  0xf4   :  { %2597 = vmatpush1.bf16.msra.mxu0 %v6150_v62  ;;  %v419_v62 = vld [vmem:[#allocation5 + $0x8e8] sm:$0xff]  ;;  %v6215_v2 = vcombine.high %v422_v57, %v426_v58 }
  0xf5   :  { %2598 = vmatprep.subr.bf16.mxu0 %v6159_v1  ;;  %v6200_v1 = vcombine.low %v407_v52, %v411_v53  ;;  %v6209_v5 = vcombine.high %v415_v61, %v419_v62  ;;  %v467_v52 = vld [vmem:[#allocation5 + $0xa68] sm:$0xff] }
  0xf6   :  { %2759 = vmatpush1.bf16.msra.mxu1 %v6144_v63  ;;  %v6206_v63 = vcombine.low %v414_v49, %v418_v50  ;;  %v474_v49 = vld [vmem:[#allocation5 + $0xaa0] sm:$0xff] }
  0xf7   :  { %2760 = vmatprep.subr.bf16.mxu1 %v6153_v4  ;;  %v434_v4 = vld [vmem:[#allocation5 + $0x960] sm:$0xff] }
  0xf8   :  { %2599 = vmatpush1.bf16.msra.mxu0 %v6158_v7  ;;  %v427_v7 = vld [vmem:[#allocation5 + $0x928] sm:$0xff]  ;;  %v6223_v10 = vcombine.high %v430_v3, %v434_v4  ;;  %v6222_v16 = vcombine.low %v430_v3, %v434_v4  ;;  %v490_v3 = vld [vmem:[#allocation5 + $0xb20] sm:$0xff] }
  0xf9   :  { %2600 = vmatprep.subr.bf16.mxu0 %v6167_v9  ;;  %v6208_v9 = vcombine.low %v415_v61, %v419_v62  ;;  %v6217_v13 = vcombine.high %v423_v6, %v427_v7  ;;  %v475_v61 = vld [vmem:[#allocation5 + $0xaa8] sm:$0xff] }
  0xfa   :  { %2761 = vmatpush1.bf16.msra.mxu1 %v6152_v8  ;;  %v6214_v8 = vcombine.low %v422_v57, %v426_v58  ;;  %v482_v57 = vld [vmem:[#allocation5 + $0xae0] sm:$0xff] }
  0xfb   :  { %2762 = vmatprep.subr.bf16.mxu1 %v6161_v12  ;;  %v442_v12 = vld [vmem:[#allocation5 + $0x9a0] sm:$0xff] }
  0xfc   :  { %2601 = vmatpush1.bf16.msra.mxu0 %v6166_v15  ;;  %v435_v15 = vld [vmem:[#allocation5 + $0x968] sm:$0xff] }
  0xfd   :  { %2602 = vmatprep.subr.bf16.mxu0 %v6175_v18  ;;  %v6231_v18 = vcombine.high %v438_v11, %v442_v12  ;;  %v6224_v28 = vcombine.low %v431_v14, %v435_v15 }
  0xfe   :  { %2763 = vmatpush1.bf16.msra.mxu1 %v6160_v17  ;;  %v6216_v17 = vcombine.low %v423_v6, %v427_v7  ;;  %v483_v6 = vld [vmem:[#allocation5 + $0xae8] sm:$0xff] }
  0xff   :  { %2764 = vmatprep.subr.bf16.mxu1 %v6169_v23  ;;  %v6225_v23 = vcombine.high %v431_v14, %v435_v15  ;;  %v491_v14 = vld [vmem:[#allocation5 + $0xb28] sm:$0xff] }
 0x100   :  { %2603 = vmatpush1.bf16.msra.mxu0 %v6174_v27  ;;  %v6230_v27 = vcombine.low %v438_v11, %v442_v12  ;;  %v498_v11 = vld [vmem:[#allocation5 + $0xb60] sm:$0xff] }
 0x101   :  { %2613 = vmatprep.subr.bf16.mxu0 %v6183_v30  ;;  %v454_v30 = vld [vmem:[#allocation5 + $0xa00] sm:$0xff] }
 0x102   :  { %2765 = vmatpush1.bf16.msra.mxu1 %v6168_v29  ;;  %v6239_v29 = vcombine.high %v446_v21, %v450_v22  ;;  %v6246_v45 = vcombine.low %v454_v30, %v458_v31  ;;  %v506_v21 = vld [vmem:[#allocation5 + $0xba0] sm:$0xff] }
 0x103   :  { %2766 = vmatprep.subr.bf16.mxu1 %v6177_v33  ;;  %2605 = vmatmul.mubr.bf16.vlgmr.msra.gmra.mrb[0].mxu0 %v7685_v36  ;;  %v447_v33 = vld [vmem:[#allocation5 + $0x9c8] sm:$0xff] }
 0x104   :  { %2614 = vmatpush1.bf16.msra.mxu0 %v6182_v37  ;;  %2645 = vmatprep.mubr.bf16.mxu0 %v7687_v38  ;;  %v6232_v37 = vcombine.low %v439_v25, %v443_v26  ;;  %v6241_v42 = vcombine.high %v447_v33, %v451_v34  ;;  %v499_v25 = vld [vmem:[#allocation5 + $0xb68] sm:$0xff] }
 0x105   :  { %2615 = vmatprep.subr.bf16.mxu0 %v6191_v40  ;;  %v462_v40 = vld [vmem:[#allocation5 + $0xa40] sm:$0xff] }
 0x106   :  { %2767 = vmatpush1.bf16.msra.mxu1 %v6176_v39  ;;  %v6247_v39 = vcombine.high %v454_v30, %v458_v31  ;;  %v6254_v53 = vcombine.low %v462_v40, %v466_v41  ;;  %v514_v30 = vld [vmem:[#allocation5 + $0xbe0] sm:$0xff] }
 0x107   :  { %2777 = vmatprep.subr.bf16.mxu1 %v6185_v43  ;;  %v455_v43 = vld [vmem:[#allocation5 + $0xa08] sm:$0xff] }
 0x108   :  { %2616 = vmatpush1.bf16.msra.mxu0 %v6190_v46  ;;  %v6240_v46 = vcombine.low %v447_v33, %v451_v34  ;;  %v6249_v50 = vcombine.high %v455_v43, %v459_v44  ;;  %v507_v33 = vld [vmem:[#allocation5 + $0xba8] sm:$0xff] }
 0x109   :  { %2769 = vmatmul.mubr.bf16.vlgmr.msra.gmra.mrb[4].mxu1 %v7685_v36  ;;  %2617 = vmatprep.subr.bf16.mxu0 %v6199_v48  ;;  %v470_v48 = vld [vmem:[#allocation5 + $0xa80] sm:$0xff] }
 0x10a   :  { %2778 = vmatpush1.bf16.msra.mxu1 %v6184_v47  ;;  %2809 = vmatprep.mubr.bf16.mxu1 %v7687_v38  ;;  %v6255_v47 = vcombine.high %v462_v40, %v466_v41  ;;  %v6262_v62 = vcombine.low %v470_v48, %v474_v49  ;;  %v515_v40 = vld [vmem:[#allocation5 + $0xbe8] sm:$0xff] }
 0x10b   :  { %2779 = vmatprep.subr.bf16.mxu1 %v6193_v51  ;;  %v463_v51 = vld [vmem:[#allocation5 + $0xa48] sm:$0xff] }
 0x10c   :  { %2618 = vmatpush1.bf16.msra.mxu0 %v6198_v54  ;;  %v6248_v54 = vcombine.low %v455_v43, %v459_v44  ;;  %v6257_v58 = vcombine.high %v463_v51, %v467_v52  ;;  %v136_v43 = vld [vmem:[#allocation5 + $0x10] sm:$0xff] }
 0x10d   :  { %2619 = vmatprep.subr.bf16.mxu0 %v6207_v56  ;;  %v478_v56 = vld [vmem:[#allocation5 + $0xac0] sm:$0xff]  ;;  %v140_v44 = vld [vmem:[#allocation5 + $0x30] sm:$0xff] }
 0x10e   :  { %2780 = vmatpush1.bf16.msra.mxu1 %v6192_v55  ;;  %v6263_v55 = vcombine.high %v470_v48, %v474_v49  ;;  %v6270_v7 = vcombine.low %v478_v56, %v482_v57  ;;  %v144_v48 = vld [vmem:[#allocation5 + $0x50] sm:$0xff] }
 0x10f   :  { %2781 = vmatprep.subr.bf16.mxu1 %v6201_v59  ;;  %v471_v59 = vld [vmem:[#allocation5 + $0xa88] sm:$0xff]  ;;  %v148_v49 = vld [vmem:[#allocation5 + $0x70] sm:$0xff] }
 0x110   :  { %2620 = vmatpush1.bf16.msra.mxu0 %v6206_v63  ;;  %v6256_v63 = vcombine.low %v463_v51, %v467_v52  ;;  %v6265_v4 = vcombine.high %v471_v59, %v475_v61  ;;  %v519_v51 = vld [vmem:[#allocation5 + $0xc08] sm:$0xff] }
 0x111   :  { %2621 = vmatprep.subr.bf16.mxu0 %v6215_v2  ;;  %v486_v2 = vld [vmem:[#allocation5 + $0xb00] sm:$0xff]  ;;  %v523_v52 = vld [vmem:[#allocation5 + $0xc28] sm:$0xff] }
 0x112   :  { %2782 = vmatpush1.bf16.msra.mxu1 %v6200_v1  ;;  %v6271_v1 = vcombine.high %v478_v56, %v482_v57  ;;  %v6278_v15 = vcombine.low %v486_v2, %v490_v3  ;;  %v5939_v56 = vcombine.high %v144_v48, %v148_v49  ;;  %v152_v57 = vld [vmem:[#allocation5 + $0x90] sm:$0xff] }
 0x113   :  { %2783 = vmatprep.subr.bf16.mxu1 %v6209_v5  ;;  %v479_v5 = vld [vmem:[#allocation5 + $0xac8] sm:$0xff] }
 0x114   :  { %2622 = vmatpush1.bf16.msra.mxu0 %v6214_v8  ;;  %v6264_v8 = vcombine.low %v471_v59, %v475_v61  ;;  %v6273_v12 = vcombine.high %v479_v5, %v483_v6  ;;  %v6313_v59 = vcombine.high %v519_v51, %v523_v52  ;;  %v520_v61 = vld [vmem:[#allocation5 + $0xc10] sm:$0xff] }
 0x115   :  { %2623 = vmatprep.subr.bf16.mxu0 %v6223_v10  ;;  %v494_v10 = vld [vmem:[#allocation5 + $0xb40] sm:$0xff] }
 0x116   :  { %2784 = vmatpush1.bf16.msra.mxu1 %v6208_v9  ;;  %v6279_v9 = vcombine.high %v486_v2, %v490_v3  ;;  %v6286_v26 = vcombine.low %v494_v10, %v498_v11  ;;  %v6312_v2 = vcombine.low %v519_v51, %v523_v52  ;;  %v160_v3 = vld [vmem:[#allocation5 + $0xd0] sm:$0xff] }
 0x117   :  { %2785 = vmatprep.subr.bf16.mxu1 %v6217_v13  ;;  %v487_v13 = vld [vmem:[#allocation5 + $0xb08] sm:$0xff]  ;;  %v212_v51 = vld [vmem:[#allocation5 + $0x270] sm:$0xff] }
 0x118   :  { %2624 = vmatpush1.bf16.msra.mxu0 %v6222_v16  ;;  %v6272_v16 = vcombine.low %v479_v5, %v483_v6  ;;  %v6281_v22 = vcombine.high %v487_v13, %v491_v14 }
 0x119   :  { %2625 = vmatprep.subr.bf16.mxu0 %v6231_v18  ;;  %v502_v18 = vld [vmem:[#allocation5 + $0xb80] sm:$0xff] }
 0x11a   :  { %2786 = vmatpush1.bf16.msra.mxu1 %v6216_v17  ;;  %v6287_v17 = vcombine.high %v494_v10, %v498_v11  ;;  %v6294_v34 = vcombine.low %v502_v18, %v506_v21 }
 0x11b   :  { %2787 = vmatprep.subr.bf16.mxu1 %v6225_v23  ;;  %v495_v23 = vld [vmem:[#allocation5 + $0xb48] sm:$0xff] }
 0x11c   :  { %2626 = vmatpush1.bf16.msra.mxu0 %v6230_v27  ;;  %v6280_v27 = vcombine.low %v487_v13, %v491_v14  ;;  %v6289_v31 = vcombine.high %v495_v23, %v499_v25  ;;  %v180_v13 = vld [vmem:[#allocation5 + $0x170] sm:$0xff]  ;;  %v137_v14 = vld [vmem:[#allocation5 + $0x18] sm:$0xff] }
 0x11d   :  { %2627 = vmatprep.subr.bf16.mxu0 %v6239_v29  ;;  %v510_v29 = vld [vmem:[#allocation5 + $0xbc0] sm:$0xff] }
 0x11e   :  { %2788 = vmatpush1.bf16.msra.mxu1 %v6224_v28  ;;  %v6295_v28 = vcombine.high %v502_v18, %v506_v21 }
 0x11f   :  { %2789 = vmatprep.subr.bf16.mxu1 %v6233_v32  ;;  %v503_v32 = vld [vmem:[#allocation5 + $0xb88] sm:$0xff] }
 0x120   :  { %2628 = vmatpush1.bf16.msra.mxu0 %v6238_v35  ;;  %v6288_v35 = vcombine.low %v495_v23, %v499_v25  ;;  %v6297_v41 = vcombine.high %v503_v32, %v507_v33  ;;  %v188_v23 = vld [vmem:[#allocation5 + $0x1b0] sm:$0xff] }
 0x121   :  { %2629 = vmatprep.subr.bf16.mxu0 %v6247_v39  ;;  %v511_v39 = vld [vmem:[#allocation5 + $0xbc8] sm:$0xff] }
 0x122   :  { %2790 = vmatpush1.bf16.msra.mxu1 %v6232_v37  ;;  %v6303_v37 = vcombine.high %v510_v29, %v514_v30 }
 0x123   :  { %2791 = vmatprep.subr.bf16.mxu1 %v6241_v42  ;;  %v123_v42 = vld [vmem:[#allocation2 + $0x20] sm:$0xff] }
 0x124   :  { %2630 = vmatpush1.bf16.msra.mxu0 %v6246_v45  ;;  %v6302_v45 = vcombine.low %v510_v29, %v514_v30  ;;  %v192_v29 = vld [vmem:[#allocation5 + $0x1d0] sm:$0xff] }
 0x125   :  { %2631 = vmatprep.subr.bf16.mxu0 %v6255_v47  ;;  %v5931_v47 = vcombine.high %v136_v43, %v140_v44  ;;  %v196_v30 = vld [vmem:[#allocation5 + $0x1f0] sm:$0xff] }
 0x126   :  { %2792 = vmatpush1.bf16.msra.mxu1 %v6240_v46  ;;  %v6296_v46 = vcombine.low %v503_v32, %v507_v33  ;;  %v5987_v33 = vcombine.high %v192_v29, %v196_v30 }
 0x127   :  { %2793 = vmatprep.subr.bf16.mxu1 %v6249_v50  ;;  %v6305_v50 = vcombine.high %v511_v39, %v515_v40 }
 0x128   :  { %2632 = vmatpush1.bf16.msra.mxu0 %v6254_v53  ;;  %v7693_v53 = vpack.c.bf16 %v123_v42, %v123_v42  ;;  %v5986_v42 = vcombine.low %v192_v29, %v196_v30  ;;  %v201_v29 = vld [vmem:[#allocation5 + $0x218] sm:$0xff] }
 0x129   :  { %2633 = vmatprep.subr.bf16.mxu0 %v6263_v55  ;;  %v6304_v55 = vcombine.low %v511_v39, %v515_v40  ;;  %v200_v39 = vld [vmem:[#allocation5 + $0x210] sm:$0xff]  ;;  %v205_v30 = vld [vmem:[#allocation5 + $0x238] sm:$0xff] }
 0x12a   :  { %2794 = vmatpush1.bf16.msra.mxu1 %v6248_v54  ;;  %v5930_v54 = vcombine.low %v136_v43, %v140_v44  ;;  %v204_v40 = vld [vmem:[#allocation5 + $0x230] sm:$0xff] }
 0x12b   :  { %2795 = vmatprep.subr.bf16.mxu1 %v6257_v58  ;;  %v156_v58 = vld [vmem:[#allocation5 + $0xb0] sm:$0xff] }
 0x12c   :  { %2634 = vmatpush1.bf16.msra.mxu0 %v6262_v62  ;;  %v524_v62 = vld [vmem:[#allocation5 + $0xc30] sm:$0xff]  ;;  %v5946_v6 = vcombine.low %v152_v57, %v156_v58 }
 0x12d   :  { %2635 = vmatprep.subr.bf16.mxu0 %v6271_v1  ;;  %v5947_v1 = vcombine.high %v152_v57, %v156_v58  ;;  %v6315_v5 = vcombine.high %v520_v61, %v524_v62  ;;  %v169_v57 = vld [vmem:[#allocation5 + $0x118] sm:$0xff] }
 0x12e   :  { %2796 = vmatpush1.bf16.msra.mxu1 %v6256_v63  ;;  %v5938_v63 = vcombine.low %v144_v48, %v148_v49  ;;  %v173_v58 = vld [vmem:[#allocation5 + $0x138] sm:$0xff] }
 0x12f   :  { %2797 = vmatprep.subr.bf16.mxu1 %v6265_v4  ;;  %v164_v4 = vld [vmem:[#allocation5 + $0xf0] sm:$0xff] }
 0x130   :  { %2636 = vmatpush1.bf16.msra.mxu0 %v6270_v7  ;;  %v5955_v7 = vcombine.high %v160_v3, %v164_v4  ;;  %v5954_v10 = vcombine.low %v160_v3, %v164_v4  ;;  %v177_v3 = vld [vmem:[#allocation5 + $0x158] sm:$0xff]  ;;  %v5965_v4 = vcombine.high %v169_v57, %v173_v58 }
 0x131   :  { %2637 = vmatprep.subr.bf16.mxu0 %v6279_v9  ;;  %v172_v9 = vld [vmem:[#allocation5 + $0x130] sm:$0xff] }
 0x132   :  { %2798 = vmatpush1.bf16.msra.mxu1 %v6264_v8  ;;  %v168_v8 = vld [vmem:[#allocation5 + $0x110] sm:$0xff] }
 0x133   :  { %2799 = vmatprep.subr.bf16.mxu1 %v6273_v12  ;;  %v5963_v11 = vcombine.high %v168_v8, %v172_v9  ;;  %v176_v12 = vld [vmem:[#allocation5 + $0x150] sm:$0xff] }
 0x134   :  { %2638 = vmatpush1.bf16.msra.mxu0 %v6278_v15  ;;  %v141_v15 = vld [vmem:[#allocation5 + $0x38] sm:$0xff]  ;;  %v5971_v18 = vcombine.high %v176_v12, %v180_v13  ;;  %v5970_v25 = vcombine.low %v176_v12, %v180_v13  ;;  %v232_v13 = vld [vmem:[#allocation5 + $0x310] sm:$0xff] }
 0x135   :  { %2639 = vmatprep.subr.bf16.mxu0 %v6287_v17  ;;  %v6314_v17 = vcombine.low %v520_v61, %v524_v62  ;;  %v5933_v21 = vcombine.high %v137_v14, %v141_v15  ;;  %v5932_v32 = vcombine.low %v137_v14, %v141_v15  ;;  %v216_v61 = vld [vmem:[#allocation5 + $0x290] sm:$0xff] }
 0x136   :  { %2800 = vmatpush1.bf16.msra.mxu1 %v6272_v16  ;;  %v5962_v16 = vcombine.low %v168_v8, %v172_v9  ;;  %v220_v62 = vld [vmem:[#allocation5 + $0x2b0] sm:$0xff]  ;;  %v5964_v8 = vcombine.low %v169_v57, %v173_v58 }
 0x137   :  { %2801 = vmatprep.subr.bf16.mxu1 %v6281_v22  ;;  %v184_v22 = vld [vmem:[#allocation5 + $0x190] sm:$0xff] }
 0x138   :  { %2640 = vmatpush1.bf16.msra.mxu0 %v6286_v26  ;;  %v5979_v26 = vcombine.high %v184_v22, %v188_v23  ;;  %v236_v14 = vld [vmem:[#allocation5 + $0x330] sm:$0xff] }
 0x139   :  { %2641 = vmatprep.subr.bf16.mxu0 %v6295_v28  ;;  %v149_v28 = vld [vmem:[#allocation5 + $0x78] sm:$0xff] }
 0x13a   :  { %2802 = vmatpush1.bf16.msra.mxu1 %v6280_v27  ;;  %v145_v27 = vld [vmem:[#allocation5 + $0x58] sm:$0xff] }
 0x13b   :  { %2803 = vmatprep.subr.bf16.mxu1 %v6289_v31  ;;  %v5978_v31 = vcombine.low %v184_v22, %v188_v23  ;;  %v5940_v44 = vcombine.low %v145_v27, %v149_v28  ;;  %v240_v23 = vld [vmem:[#allocation5 + $0x350] sm:$0xff] }
 0x13c   :  { %2642 = vmatpush1.bf16.msra.mxu0 %v6294_v34  ;;  %v153_v34 = vld [vmem:[#allocation5 + $0x98] sm:$0xff] }
 0x13d   :  { %2643 = vmatprep.subr.bf16.mxu0 %v6303_v37  ;;  %v5941_v37 = vcombine.high %v145_v27, %v149_v28 }
 0x13e   :  { %2804 = vmatpush1.bf16.msra.mxu1 %v6288_v35  ;;  %v157_v35 = vld [vmem:[#allocation5 + $0xb8] sm:$0xff] }
 0x13f   :  { %2805 = vmatprep.subr.bf16.mxu1 %v6297_v41  ;;  %v5949_v49 = vcombine.high %v153_v34, %v157_v35 }
 0x140   :  { %2644 = vmatpush1.bf16.msra.mxu0 %v6302_v45  ;;  %v5995_v45 = vcombine.high %v200_v39, %v204_v40 }
 0x141   :  { %2859 = vmatprep.subr.bf16.mxu0 %v5931_v47  ;;  %v165_v47 = vld [vmem:[#allocation5 + $0xf8] sm:$0xff] }
 0x142   :  { %2806 = vmatpush1.bf16.msra.mxu1 %v6296_v46  ;;  %v161_v46 = vld [vmem:[#allocation5 + $0xd8] sm:$0xff] }
 0x143   :  { %2807 = vmatprep.subr.bf16.mxu1 %v6305_v50  ;;  %2646 = vmatmul.mubr.bf16.vlgmr.msra.gmra.mrb[0].mxu0 %v7693_v53  ;;  %v208_v50 = vld [vmem:[#allocation5 + $0x250] sm:$0xff] }
 0x144   :  { %2860 = vmatpush1.bf16.msra.mxu0 %v5930_v54  ;;  %2891 = vmatprep.mubr.bf16.mxu0 %v7673_v60  ;;  %v5994_v54 = vcombine.low %v200_v39, %v204_v40  ;;  %v209_v39 = vld [vmem:[#allocation5 + $0x258] sm:$0xff] }
 0x145   :  { %2861 = vmatprep.subr.bf16.mxu0 %v5939_v56  ;;  %v6003_v56 = vcombine.high %v208_v50, %v212_v51  ;;  %v213_v40 = vld [vmem:[#allocation5 + $0x278] sm:$0xff] }
 0x146   :  { %2808 = vmatpush1.bf16.msra.mxu1 %v6304_v55  ;;  %v5948_v55 = vcombine.low %v153_v34, %v157_v35 }
 0x147   :  { %2818 = vmatprep.subr.bf16.mxu1 %v6313_v59  ;;  %v5957_v59 = vcombine.high %v161_v46, %v165_v47 }
 0x148   :  { %2862 = vmatpush1.bf16.msra.mxu0 %v5938_v63  ;;  %v6002_v63 = vcombine.low %v208_v50, %v212_v51  ;;  %v264_v50 = vld [vmem:[#allocation5 + $0x410] sm:$0xff] }
 0x149   :  { %2810 = vmatmul.mubr.bf16.vlgmr.msra.gmra.mrb[4].mxu1 %v7693_v53  ;;  %2863 = vmatprep.subr.bf16.mxu0 %v5947_v1  ;;  %v5956_v1 = vcombine.low %v161_v46, %v165_v47  ;;  %v5996_v47 = vcombine.low %v201_v29, %v205_v30  ;;  %v268_v51 = vld [vmem:[#allocation5 + $0x430] sm:$0xff] }
 0x14a   :  { %2819 = vmatpush1.bf16.msra.mxu1 %v6312_v2  ;;  %2850 = vmatprep.mubr.bf16.mxu1 %v7534_v0  ;;  %v6011_v2 = vcombine.high %v216_v61, %v220_v62  ;;  %v6059_v57 = vcombine.high %v264_v50, %v268_v51 }
 0x14b   :  { %2982 = vmatprep.subr.bf16.mxu1 %v6315_v5  ;;  %v224_v5 = vld [vmem:[#allocation5 + $0x2d0] sm:$0xff] }
 0x14c   :  { %2864 = vmatpush1.bf16.msra.mxu0 %v5946_v6  ;;  %v228_v6 = vld [vmem:[#allocation5 + $0x2f0] sm:$0xff] }
 0x14d   :  { %2865 = vmatprep.subr.bf16.mxu0 %v5955_v7  ;;  %v6010_v7 = vcombine.low %v216_v61, %v220_v62  ;;  %v6019_v9 = vcombine.high %v224_v5, %v228_v6  ;;  %v6018_v15 = vcombine.low %v224_v5, %v228_v6  ;;  %v276_v61 = vld [vmem:[#allocation5 + $0x470] sm:$0xff]  ;;  %v225_v62 = vld [vmem:[#allocation5 + $0x2d8] sm:$0xff] }
 0x14e   :  { %v284_v5 = vld [vmem:[#allocation5 + $0x4b0] sm:$0xff]  ;;  %v233_v6 = vld [vmem:[#allocation5 + $0x318] sm:$0xff] }
 0x150   :  { %2866 = vmatpush1.bf16.msra.mxu0 %v5954_v10  ;;  %v185_v10 = vld [vmem:[#allocation5 + $0x198] sm:$0xff] }
 0x151   :  { %2867 = vmatprep.subr.bf16.mxu0 %v5963_v11  ;;  %v189_v11 = vld [vmem:[#allocation5 + $0x1b8] sm:$0xff] }
 0x152   :  { %v5981_v22 = vcombine.high %v185_v10, %v189_v11  ;;  %v5980_v27 = vcombine.low %v185_v10, %v189_v11 }
 0x154   :  { %2868 = vmatpush1.bf16.msra.mxu0 %v5962_v16 }
 0x155   :  { %6319 = vmatmul.mubr.msk.bf16.vlgmr.msra.gmra.mrb[4].mxu1 %vm2527_vm0, %v7669_v20  ;;  %2869 = vmatprep.subr.bf16.mxu0 %v5971_v18  ;;  %v193_v18 = vld [vmem:[#allocation5 + $0x1d8] sm:$0xff] }
 0x156   :  { %2983 = vmatpush1.bf16.msra.mxu1 %v6314_v17  ;;  %3014 = vmatprep.mubr.bf16.mxu1 %v7534_v0  ;;  %v6027_v17 = vcombine.high %v232_v13, %v236_v14 }
 0x157   :  { %3023 = vmatprep.subr.bf16.mxu1 %v5933_v21  ;;  %v197_v21 = vld [vmem:[#allocation5 + $0x1f8] sm:$0xff] }
 0x158   :  { %2870 = vmatpush1.bf16.msra.mxu0 %v5970_v25  ;;  %v244_v25 = vld [vmem:[#allocation5 + $0x370] sm:$0xff]  ;;  %v5988_v35 = vcombine.low %v193_v18, %v197_v21 }
 0x159   :  { %2871 = vmatprep.subr.bf16.mxu0 %v5979_v26  ;;  %v6026_v26 = vcombine.low %v232_v13, %v236_v14  ;;  %v6035_v28 = vcombine.high %v240_v23, %v244_v25  ;;  %v6034_v34 = vcombine.low %v240_v23, %v244_v25  ;;  %v292_v13 = vld [vmem:[#allocation5 + $0x4f0] sm:$0xff]  ;;  %v241_v14 = vld [vmem:[#allocation5 + $0x358] sm:$0xff] }
 0x15a   :  { %v300_v23 = vld [vmem:[#allocation5 + $0x530] sm:$0xff]  ;;  %v249_v25 = vld [vmem:[#allocation5 + $0x398] sm:$0xff] }
 0x15c   :  { %v7702_v41 = vpop.f32.mrb[0].mxu1  ;;  %2872 = vmatpush1.bf16.msra.mxu0 %v5978_v31  ;;  %v5989_v31 = vcombine.high %v193_v18, %v197_v21 }
 0x15d   :  { %6320 = vmatmul.mubr.msk.bf16.vlgmr.msra.gmra.mrb[8].mxu1 %vm2527_vm0, %v7669_v20  ;;  %v7706_v43 = vpop.f32.mrb[1].mxu1  ;;  %2873 = vmatprep.subr.bf16.mxu0 %v5987_v33  ;;  %v252_v33 = vld [vmem:[#allocation5 + $0x3b0] sm:$0xff] }
 0x15e   :  { %3024 = vmatpush1.bf16.msra.mxu1 %v5932_v32  ;;  %v2692_v48 = vpop.f32.mrb[2].mxu1  ;;  %3055 = vmatprep.mubr.bf16.mxu1 %v7673_v60  ;;  %v181_v60 = vld [vmem:[#allocation5 + $0x178] sm:$0xff]  ;;  %v248_v32 = vld [vmem:[#allocation5 + $0x390] sm:$0xff] }
 0x15f   :  { %3025 = vmatprep.subr.bf16.mxu1 %v5941_v37  ;;  %v2693_v52 = vpop.f32.mrb[3].mxu1  ;;  %v5973_v12 = vcombine.high %v177_v3, %v181_v60  ;;  %v5972_v16 = vcombine.low %v177_v3, %v181_v60  ;;  %v6043_v37 = vcombine.high %v248_v32, %v252_v33  ;;  %v6042_v46 = vcombine.low %v248_v32, %v252_v33  ;;  %v308_v32 = vld [vmem:[#allocation5 + $0x570] sm:$0xff]  ;;  %v257_v33 = vld [vmem:[#allocation5 + $0x3d8] sm:$0xff] }
 0x160   :  { %2874 = vmatpush1.bf16.msra.mxu0 %v5986_v42  ;;  %v5997_v42 = vcombine.high %v201_v29, %v205_v30  ;;  %v217_v52 = vld [vmem:[#allocation5 + $0x298] sm:$0xff] }
 0x161   :  { %2875 = vmatprep.subr.bf16.mxu0 %v5995_v45  ;;  %v260_v45 = vld [vmem:[#allocation5 + $0x3f0] sm:$0xff] }
 0x162   :  { %3026 = vmatpush1.bf16.msra.mxu1 %v5940_v44  ;;  %v256_v44 = vld [vmem:[#allocation5 + $0x3d0] sm:$0xff] }
 0x163   :  { %3027 = vmatprep.subr.bf16.mxu1 %v5949_v49  ;;  %v6051_v48 = vcombine.high %v256_v44, %v260_v45  ;;  %v6005_v49 = vcombine.high %v209_v39, %v213_v40 }
 0x164   :  { %2876 = vmatpush1.bf16.msra.mxu0 %v5994_v54  ;;  %v221_v54 = vld [vmem:[#allocation5 + $0x2b8] sm:$0xff] }
 0x165   :  { %2877 = vmatprep.subr.bf16.mxu0 %v6003_v56  ;;  %v6004_v56 = vcombine.low %v209_v39, %v213_v40  ;;  %v6013_v58 = vcombine.high %v217_v52, %v221_v54 }
 0x166   :  { %3028 = vmatpush1.bf16.msra.mxu1 %v5948_v55  ;;  %v6050_v55 = vcombine.low %v256_v44, %v260_v45  ;;  %v316_v44 = vld [vmem:[#allocation5 + $0x5b0] sm:$0xff]  ;;  %v265_v45 = vld [vmem:[#allocation5 + $0x418] sm:$0xff] }
 0x167   :  { %3029 = vmatprep.subr.bf16.mxu1 %v5957_v59  ;;  %v272_v59 = vld [vmem:[#allocation5 + $0x450] sm:$0xff] }
 0x168   :  { %2878 = vmatpush1.bf16.msra.mxu0 %v6002_v63  ;;  %v229_v63 = vld [vmem:[#allocation5 + $0x2f8] sm:$0xff]  ;;  %v6067_v3 = vcombine.high %v272_v59, %v276_v61 }
 0x169   :  { %2879 = vmatprep.subr.bf16.mxu0 %v6011_v2  ;;  %v6012_v2 = vcombine.low %v217_v52, %v221_v54  ;;  %v6021_v60 = vcombine.high %v225_v62, %v229_v63  ;;  %v324_v52 = vld [vmem:[#allocation5 + $0x5f0] sm:$0xff]  ;;  %v273_v54 = vld [vmem:[#allocation5 + $0x458] sm:$0xff] }
 0x16a   :  { %3030 = vmatpush1.bf16.msra.mxu1 %v5956_v1  ;;  %v6058_v1 = vcombine.low %v264_v50, %v268_v51  ;;  %v320_v51 = vld [vmem:[#allocation5 + $0x5d0] sm:$0xff] }
 0x16b   :  { %3031 = vmatprep.subr.bf16.mxu1 %v5965_v4  ;;  %v280_v4 = vld [vmem:[#allocation5 + $0x490] sm:$0xff] }
 0x16c   :  { %2880 = vmatpush1.bf16.msra.mxu0 %v6010_v7  ;;  %v237_v7 = vld [vmem:[#allocation5 + $0x338] sm:$0xff]  ;;  %v6075_v10 = vcombine.high %v280_v4, %v284_v5 }
 0x16d   :  { %2881 = vmatprep.subr.bf16.mxu0 %v6019_v9  ;;  %v6020_v9 = vcombine.low %v225_v62, %v229_v63  ;;  %v6029_v11 = vcombine.high %v233_v6, %v237_v7  ;;  %v332_v62 = vld [vmem:[#allocation5 + $0x630] sm:$0xff]  ;;  %v281_v63 = vld [vmem:[#allocation5 + $0x498] sm:$0xff] }
 0x16e   :  { %3032 = vmatpush1.bf16.msra.mxu1 %v5964_v8  ;;  %v6066_v8 = vcombine.low %v272_v59, %v276_v61  ;;  %v328_v61 = vld [vmem:[#allocation5 + $0x610] sm:$0xff] }
 0x16f   :  { %3033 = vmatprep.subr.bf16.mxu1 %v5973_v12  ;;  %v288_v12 = vld [vmem:[#allocation5 + $0x4d0] sm:$0xff] }
 0x170   :  { %2882 = vmatpush1.bf16.msra.mxu0 %v6018_v15  ;;  %v245_v15 = vld [vmem:[#allocation5 + $0x378] sm:$0xff]  ;;  %v6083_v18 = vcombine.high %v288_v12, %v292_v13 }
 0x171   :  { %2883 = vmatprep.subr.bf16.mxu0 %v6027_v17  ;;  %v6028_v17 = vcombine.low %v233_v6, %v237_v7  ;;  %v6037_v21 = vcombine.high %v241_v14, %v245_v15  ;;  %v340_v6 = vld [vmem:[#allocation5 + $0x670] sm:$0xff]  ;;  %v289_v7 = vld [vmem:[#allocation5 + $0x4d8] sm:$0xff] }
 0x172   :  { %3034 = vmatpush1.bf16.msra.mxu1 %v5972_v16  ;;  %v6074_v16 = vcombine.low %v280_v4, %v284_v5  ;;  %v336_v5 = vld [vmem:[#allocation5 + $0x650] sm:$0xff] }
 0x173   :  { %3035 = vmatprep.subr.bf16.mxu1 %v5981_v22  ;;  %v296_v22 = vld [vmem:[#allocation5 + $0x510] sm:$0xff] }
 0x174   :  { %2884 = vmatpush1.bf16.msra.mxu0 %v6026_v26  ;;  %v253_v26 = vld [vmem:[#allocation5 + $0x3b8] sm:$0xff]  ;;  %v6091_v29 = vcombine.high %v296_v22, %v300_v23 }
 0x175   :  { %2885 = vmatprep.subr.bf16.mxu0 %v6035_v28  ;;  %v6036_v28 = vcombine.low %v241_v14, %v245_v15  ;;  %v6045_v30 = vcombine.high %v249_v25, %v253_v26  ;;  %v297_v14 = vld [vmem:[#allocation5 + $0x518] sm:$0xff] }
 0x176   :  { %3036 = vmatpush1.bf16.msra.mxu1 %v5980_v27  ;;  %v6082_v27 = vcombine.low %v288_v12, %v292_v13  ;;  %v344_v12 = vld [vmem:[#allocation5 + $0x690] sm:$0xff]  ;;  %v301_v15 = vld [vmem:[#allocation5 + $0x538] sm:$0xff] }
 0x177   :  { %3037 = vmatprep.subr.bf16.mxu1 %v5989_v31  ;;  %v304_v31 = vld [vmem:[#allocation5 + $0x550] sm:$0xff] }
 0x178   :  { %2886 = vmatpush1.bf16.msra.mxu0 %v6034_v34  ;;  %v261_v34 = vld [vmem:[#allocation5 + $0x3f8] sm:$0xff]  ;;  %v6099_v39 = vcombine.high %v304_v31, %v308_v32  ;;  %v348_v13 = vld [vmem:[#allocation5 + $0x6b0] sm:$0xff] }
 0x179   :  { %2887 = vmatprep.subr.bf16.mxu0 %v6043_v37  ;;  %v6044_v37 = vcombine.low %v249_v25, %v253_v26  ;;  %v6053_v40 = vcombine.high %v257_v33, %v261_v34  ;;  %v309_v25 = vld [vmem:[#allocation5 + $0x578] sm:$0xff]  ;;  %v6138_v26 = vcombine.low %v344_v12, %v348_v13 }
 0x17a   :  { %3038 = vmatpush1.bf16.msra.mxu1 %v5988_v35  ;;  %v6090_v35 = vcombine.low %v296_v22, %v300_v23  ;;  %v356_v22 = vld [vmem:[#allocation5 + $0x6f0] sm:$0xff]  ;;  %v305_v23 = vld [vmem:[#allocation5 + $0x558] sm:$0xff] }
 0x17b   :  { %3039 = vmatprep.subr.bf16.mxu1 %v5997_v42  ;;  %v312_v42 = vld [vmem:[#allocation5 + $0x590] sm:$0xff] }
 0x17c   :  { %2888 = vmatpush1.bf16.msra.mxu0 %v6042_v46  ;;  %v269_v46 = vld [vmem:[#allocation5 + $0x438] sm:$0xff] }
 0x17d   :  { %2889 = vmatprep.subr.bf16.mxu0 %v6051_v48  ;;  %v6052_v48 = vcombine.low %v257_v33, %v261_v34  ;;  %v6061_v50 = vcombine.high %v265_v45, %v269_v46  ;;  %v317_v33 = vld [vmem:[#allocation5 + $0x5b8] sm:$0xff] }
 0x17e   :  { %3040 = vmatpush1.bf16.msra.mxu1 %v5996_v47  ;;  %v6098_v47 = vcombine.low %v304_v31, %v308_v32  ;;  %v364_v31 = vld [vmem:[#allocation5 + $0x730] sm:$0xff]  ;;  %v313_v32 = vld [vmem:[#allocation5 + $0x598] sm:$0xff] }
 0x17f   :  { %3041 = vmatprep.subr.bf16.mxu1 %v6005_v49  ;;  %v6107_v49 = vcombine.high %v312_v42, %v316_v44 }
 0x180   :  { %2890 = vmatpush1.bf16.msra.mxu0 %v6050_v55  ;;  %v277_v55 = vld [vmem:[#allocation5 + $0x478] sm:$0xff] }
 0x181   :  { %2900 = vmatprep.subr.bf16.mxu0 %v6059_v57  ;;  %v6060_v57 = vcombine.low %v265_v45, %v269_v46  ;;  %v6069_v59 = vcombine.high %v273_v54, %v277_v55  ;;  %v325_v45 = vld [vmem:[#allocation5 + $0x5f8] sm:$0xff] }
 0x182   :  { %3042 = vmatpush1.bf16.msra.mxu1 %v6004_v56  ;;  %v6106_v56 = vcombine.low %v312_v42, %v316_v44  ;;  %v372_v42 = vld [vmem:[#allocation5 + $0x770] sm:$0xff]  ;;  %v321_v44 = vld [vmem:[#allocation5 + $0x5d8] sm:$0xff] }
 0x183   :  { %3043 = vmatprep.subr.bf16.mxu1 %v6013_v58  ;;  %2892 = vmatmul.mubr.bf16.vlgmr.msra.gmra.mrb[4].mxu0 %v7677_v19  ;;  %v6115_v58 = vcombine.high %v320_v51, %v324_v52 }
 0x184   :  { %2901 = vmatpush1.bf16.msra.mxu0 %v6058_v1  ;;  %2932 = vmatprep.mubr.bf16.mxu0 %v7679_v24  ;;  %v285_v1 = vld [vmem:[#allocation5 + $0x4b8] sm:$0xff] }
 0x185   :  { %2902 = vmatprep.subr.bf16.mxu0 %v6067_v3  ;;  %v6068_v3 = vcombine.low %v273_v54, %v277_v55  ;;  %v6077_v4 = vcombine.high %v281_v63, %v285_v1  ;;  %v333_v54 = vld [vmem:[#allocation5 + $0x638] sm:$0xff] }
 0x186   :  { %3044 = vmatpush1.bf16.msra.mxu1 %v6012_v2  ;;  %v6114_v2 = vcombine.low %v320_v51, %v324_v52  ;;  %v380_v51 = vld [vmem:[#allocation5 + $0x7b0] sm:$0xff]  ;;  %v329_v52 = vld [vmem:[#allocation5 + $0x618] sm:$0xff] }
 0x187   :  { %3045 = vmatprep.subr.bf16.mxu1 %v6021_v60  ;;  %v6123_v60 = vcombine.high %v328_v61, %v332_v62 }
 0x188   :  { %2903 = vmatpush1.bf16.msra.mxu0 %v6066_v8  ;;  %v293_v8 = vld [vmem:[#allocation5 + $0x4f8] sm:$0xff] }
 0x189   :  { %2904 = vmatprep.subr.bf16.mxu0 %v6075_v10  ;;  %v6076_v10 = vcombine.low %v281_v63, %v285_v1  ;;  %v341_v63 = vld [vmem:[#allocation5 + $0x678] sm:$0xff] }
 0x18a   :  { %3046 = vmatpush1.bf16.msra.mxu1 %v6020_v9  ;;  %v6122_v9 = vcombine.low %v328_v61, %v332_v62  ;;  %v388_v61 = vld [vmem:[#allocation5 + $0x7f0] sm:$0xff]  ;;  %v337_v62 = vld [vmem:[#allocation5 + $0x658] sm:$0xff] }
 0x18b   :  { %3047 = vmatprep.subr.bf16.mxu1 %v6029_v11  ;;  %v6085_v11 = vcombine.high %v289_v7, %v293_v8 }
 0x18c   :  { %2905 = vmatpush1.bf16.msra.mxu0 %v6074_v16  ;;  %v6130_v16 = vcombine.low %v336_v5, %v340_v6 }
 0x18d   :  { %2906 = vmatprep.subr.bf16.mxu0 %v6083_v18  ;;  %v6093_v18 = vcombine.high %v297_v14, %v301_v15 }
 0x18e   :  { %3048 = vmatpush1.bf16.msra.mxu1 %v6028_v17  ;;  %v6084_v17 = vcombine.low %v289_v7, %v293_v8  ;;  %v349_v7 = vld [vmem:[#allocation5 + $0x6b8] sm:$0xff] }
 0x18f   :  { %3049 = vmatprep.subr.bf16.mxu1 %v6037_v21  ;;  %v352_v21 = vld [vmem:[#allocation5 + $0x6d0] sm:$0xff] }
 0x190   :  { %2907 = vmatpush1.bf16.msra.mxu0 %v6082_v27  ;;  %v6092_v27 = vcombine.low %v297_v14, %v301_v15  ;;  %v6146_v34 = vcombine.low %v352_v21, %v356_v22  ;;  %v357_v14 = vld [vmem:[#allocation5 + $0x6f8] sm:$0xff] }
 0x191   :  { %2908 = vmatprep.subr.bf16.mxu0 %v6091_v29  ;;  %v6101_v29 = vcombine.high %v305_v23, %v309_v25 }
 0x192   :  { %3050 = vmatpush1.bf16.msra.mxu1 %v6036_v28  ;;  %v6147_v28 = vcombine.high %v352_v21, %v356_v22  ;;  %v412_v21 = vld [vmem:[#allocation5 + $0x8b0] sm:$0xff]  ;;  %v361_v22 = vld [vmem:[#allocation5 + $0x718] sm:$0xff] }
 0x193   :  { %3051 = vmatprep.subr.bf16.mxu1 %v6045_v30  ;;  %v360_v30 = vld [vmem:[#allocation5 + $0x710] sm:$0xff] }
 0x194   :  { %2909 = vmatpush1.bf16.msra.mxu0 %v6090_v35  ;;  %v6100_v35 = vcombine.low %v305_v23, %v309_v25  ;;  %v6154_v46 = vcombine.low %v360_v30, %v364_v31  ;;  %v365_v23 = vld [vmem:[#allocation5 + $0x738] sm:$0xff] }
 0x195   :  { %2910 = vmatprep.subr.bf16.mxu0 %v6099_v39  ;;  %v6109_v39 = vcombine.high %v313_v32, %v317_v33 }
 0x196   :  { %3052 = vmatpush1.bf16.msra.mxu1 %v6044_v37  ;;  %v6155_v37 = vcombine.high %v360_v30, %v364_v31  ;;  %v420_v30 = vld [vmem:[#allocation5 + $0x8f0] sm:$0xff]  ;;  %v369_v31 = vld [vmem:[#allocation5 + $0x758] sm:$0xff] }
 0x197   :  { %3053 = vmatprep.subr.bf16.mxu1 %v6053_v40  ;;  %v368_v40 = vld [vmem:[#allocation5 + $0x750] sm:$0xff] }
 0x198   :  { %2911 = vmatpush1.bf16.msra.mxu0 %v6098_v47  ;;  %v6108_v47 = vcombine.low %v313_v32, %v317_v33  ;;  %v6162_v55 = vcombine.low %v368_v40, %v372_v42  ;;  %v373_v32 = vld [vmem:[#allocation5 + $0x778] sm:$0xff] }
 0x199   :  { %2912 = vmatprep.subr.bf16.mxu0 %v6107_v49  ;;  %v6117_v49 = vcombine.high %v321_v44, %v325_v45 }
 0x19a   :  { %3054 = vmatpush1.bf16.msra.mxu1 %v6052_v48  ;;  %v6163_v48 = vcombine.high %v368_v40, %v372_v42  ;;  %v428_v40 = vld [vmem:[#allocation5 + $0x930] sm:$0xff]  ;;  %v377_v42 = vld [vmem:[#allocation5 + $0x798] sm:$0xff] }
 0x19b   :  { %3064 = vmatprep.subr.bf16.mxu1 %v6061_v50  ;;  %v376_v50 = vld [vmem:[#allocation5 + $0x790] sm:$0xff] }
 0x19c   :  { %2913 = vmatpush1.bf16.msra.mxu0 %v6106_v56  ;;  %v6116_v56 = vcombine.low %v321_v44, %v325_v45  ;;  %v6170_v1 = vcombine.low %v376_v50, %v380_v51  ;;  %v381_v44 = vld [vmem:[#allocation5 + $0x7b8] sm:$0xff] }
 0x19d   :  { %3056 = vmatmul.mubr.bf16.vlgmr.msra.gmra.mrb[12].mxu1 %v7677_v19  ;;  %2914 = vmatprep.subr.bf16.mxu0 %v6115_v58  ;;  %v6131_v19 = vcombine.high %v336_v5, %v340_v6  ;;  %v6125_v58 = vcombine.high %v329_v52, %v333_v54  ;;  %v396_v5 = vld [vmem:[#allocation5 + $0x830] sm:$0xff]  ;;  %v345_v6 = vld [vmem:[#allocation5 + $0x698] sm:$0xff] }
 0x19e   :  { %3065 = vmatpush1.bf16.msra.mxu1 %v6060_v57  ;;  %3096 = vmatprep.mubr.bf16.mxu1 %v7679_v24  ;;  %v6139_v24 = vcombine.high %v344_v12, %v348_v13  ;;  %v6171_v57 = vcombine.high %v376_v50, %v380_v51  ;;  %v404_v12 = vld [vmem:[#allocation5 + $0x870] sm:$0xff]  ;;  %v353_v13 = vld [vmem:[#allocation5 + $0x6d8] sm:$0xff] }
 0x19f   :  { %3066 = vmatprep.subr.bf16.mxu1 %v6069_v59  ;;  %v384_v59 = vld [vmem:[#allocation5 + $0x7d0] sm:$0xff]  ;;  %v385_v51 = vld [vmem:[#allocation5 + $0x7d8] sm:$0xff] }
 0x1a0   :  { %2915 = vmatpush1.bf16.msra.mxu0 %v6114_v2  ;;  %v6124_v2 = vcombine.low %v329_v52, %v333_v54  ;;  %v6178_v8 = vcombine.low %v384_v59, %v388_v61  ;;  %v436_v50 = vld [vmem:[#allocation5 + $0x970] sm:$0xff]  ;;  %v389_v52 = vld [vmem:[#allocation5 + $0x7f8] sm:$0xff] }
 0x1a1   :  { %2916 = vmatprep.subr.bf16.mxu0 %v6123_v60  ;;  %v6133_v60 = vcombine.high %v337_v62, %v341_v63 }
 0x1a2   :  { %3067 = vmatpush1.bf16.msra.mxu1 %v6068_v3  ;;  %v6179_v3 = vcombine.high %v384_v59, %v388_v61  ;;  %v444_v59 = vld [vmem:[#allocation5 + $0x9b0] sm:$0xff]  ;;  %v393_v61 = vld [vmem:[#allocation5 + $0x818] sm:$0xff] }
 0x1a3   :  { %3068 = vmatprep.subr.bf16.mxu1 %v6077_v4  ;;  %v392_v4 = vld [vmem:[#allocation5 + $0x810] sm:$0xff] }
 0x1a4   :  { %2917 = vmatpush1.bf16.msra.mxu0 %v6122_v9  ;;  %v6132_v9 = vcombine.low %v337_v62, %v341_v63  ;;  %v6186_v15 = vcombine.low %v392_v4, %v396_v5  ;;  %v397_v62 = vld [vmem:[#allocation5 + $0x838] sm:$0xff] }
 0x1a5   :  { %2918 = vmatprep.subr.bf16.mxu0 %v6131_v19  ;;  %v6141_v19 = vcombine.high %v345_v6, %v349_v7 }
 0x1a6   :  { %3069 = vmatpush1.bf16.msra.mxu1 %v6076_v10  ;;  %v6187_v10 = vcombine.high %v392_v4, %v396_v5  ;;  %v452_v4 = vld [vmem:[#allocation5 + $0x9f0] sm:$0xff]  ;;  %v401_v5 = vld [vmem:[#allocation5 + $0x858] sm:$0xff] }
 0x1a7   :  { %3070 = vmatprep.subr.bf16.mxu1 %v6085_v11  ;;  %v400_v11 = vld [vmem:[#allocation5 + $0x850] sm:$0xff] }
 0x1a8   :  { %2919 = vmatpush1.bf16.msra.mxu0 %v6130_v16  ;;  %v6140_v16 = vcombine.low %v345_v6, %v349_v7  ;;  %v6194_v25 = vcombine.low %v400_v11, %v404_v12  ;;  %v405_v6 = vld [vmem:[#allocation5 + $0x878] sm:$0xff] }
 0x1a9   :  { %2920 = vmatprep.subr.bf16.mxu0 %v6139_v24  ;;  %v6149_v24 = vcombine.high %v353_v13, %v357_v14 }
 0x1aa   :  { %3071 = vmatpush1.bf16.msra.mxu1 %v6084_v17  ;;  %v6195_v17 = vcombine.high %v400_v11, %v404_v12  ;;  %v460_v11 = vld [vmem:[#allocation5 + $0xa30] sm:$0xff]  ;;  %v409_v12 = vld [vmem:[#allocation5 + $0x898] sm:$0xff] }
 0x1ab   :  { %3072 = vmatprep.subr.bf16.mxu1 %v6093_v18  ;;  %v408_v18 = vld [vmem:[#allocation5 + $0x890] sm:$0xff] }
 0x1ac   :  { %2921 = vmatpush1.bf16.msra.mxu0 %v6138_v26  ;;  %v6148_v26 = vcombine.low %v353_v13, %v357_v14  ;;  %v6202_v33 = vcombine.low %v408_v18, %v412_v21  ;;  %v413_v13 = vld [vmem:[#allocation5 + $0x8b8] sm:$0xff] }
 0x1ad   :  { %2922 = vmatprep.subr.bf16.mxu0 %v6147_v28  ;;  %v6157_v28 = vcombine.high %v361_v22, %v365_v23 }
 0x1ae   :  { %3073 = vmatpush1.bf16.msra.mxu1 %v6092_v27  ;;  %v6203_v27 = vcombine.high %v408_v18, %v412_v21  ;;  %v468_v18 = vld [vmem:[#allocation5 + $0xa70] sm:$0xff]  ;;  %v417_v21 = vld [vmem:[#allocation5 + $0x8d8] sm:$0xff] }
 0x1af   :  { %3074 = vmatprep.subr.bf16.mxu1 %v6101_v29  ;;  %v416_v29 = vld [vmem:[#allocation5 + $0x8d0] sm:$0xff] }
 0x1b0   :  { %2923 = vmatpush1.bf16.msra.mxu0 %v6146_v34  ;;  %v6156_v34 = vcombine.low %v361_v22, %v365_v23  ;;  %v6210_v45 = vcombine.low %v416_v29, %v420_v30  ;;  %v421_v22 = vld [vmem:[#allocation5 + $0x8f8] sm:$0xff] }
 0x1b1   :  { %2924 = vmatprep.subr.bf16.mxu0 %v6155_v37  ;;  %v6165_v37 = vcombine.high %v369_v31, %v373_v32 }
 0x1b2   :  { %3075 = vmatpush1.bf16.msra.mxu1 %v6100_v35  ;;  %v6211_v35 = vcombine.high %v416_v29, %v420_v30  ;;  %v425_v29 = vld [vmem:[#allocation5 + $0x918] sm:$0xff] }
 0x1b3   :  { %3076 = vmatprep.subr.bf16.mxu1 %v6109_v39  ;;  %v424_v39 = vld [vmem:[#allocation5 + $0x910] sm:$0xff]  ;;  %v429_v30 = vld [vmem:[#allocation5 + $0x938] sm:$0xff] }
 0x1b4   :  { %2925 = vmatpush1.bf16.msra.mxu0 %v6154_v46  ;;  %v6164_v46 = vcombine.low %v369_v31, %v373_v32  ;;  %v6218_v54 = vcombine.low %v424_v39, %v428_v40  ;;  %v6212_v32 = vcombine.low %v417_v21, %v421_v22 }
 0x1b5   :  { %2926 = vmatprep.subr.bf16.mxu0 %v6163_v48  ;;  %v6173_v48 = vcombine.high %v377_v42, %v381_v44 }
 0x1b6   :  { %3077 = vmatpush1.bf16.msra.mxu1 %v6108_v47  ;;  %v6219_v47 = vcombine.high %v424_v39, %v428_v40  ;;  %v437_v39 = vld [vmem:[#allocation5 + $0x978] sm:$0xff] }
 0x1b7   :  { %3078 = vmatprep.subr.bf16.mxu1 %v6117_v49  ;;  %v432_v49 = vld [vmem:[#allocation5 + $0x950] sm:$0xff] }
 0x1b8   :  { %2927 = vmatpush1.bf16.msra.mxu0 %v6162_v55  ;;  %v6172_v55 = vcombine.low %v377_v42, %v381_v44  ;;  %v6226_v63 = vcombine.low %v432_v49, %v436_v50  ;;  %v6220_v42 = vcombine.low %v425_v29, %v429_v30 }
 0x1b9   :  { %2928 = vmatprep.subr.bf16.mxu0 %v6171_v57  ;;  %v6181_v57 = vcombine.high %v385_v51, %v389_v52 }
 0x1ba   :  { %3079 = vmatpush1.bf16.msra.mxu1 %v6116_v56  ;;  %v6227_v56 = vcombine.high %v432_v49, %v436_v50  ;;  %v445_v49 = vld [vmem:[#allocation5 + $0x9b8] sm:$0xff] }
 0x1bb   :  { %3080 = vmatprep.subr.bf16.mxu1 %v6125_v58  ;;  %v440_v58 = vld [vmem:[#allocation5 + $0x990] sm:$0xff] }
 0x1bc   :  { %2929 = vmatpush1.bf16.msra.mxu0 %v6170_v1  ;;  %v6180_v1 = vcombine.low %v385_v51, %v389_v52  ;;  %v6234_v7 = vcombine.low %v440_v58, %v444_v59 }
 0x1bd   :  { %2930 = vmatprep.subr.bf16.mxu0 %v6179_v3  ;;  %v6189_v3 = vcombine.high %v393_v61, %v397_v62 }
 0x1be   :  { %3081 = vmatpush1.bf16.msra.mxu1 %v6124_v2  ;;  %v6235_v2 = vcombine.high %v440_v58, %v444_v59  ;;  %v453_v58 = vld [vmem:[#allocation5 + $0x9f8] sm:$0xff] }
 0x1bf   :  { %3082 = vmatprep.subr.bf16.mxu1 %v6133_v60  ;;  %v448_v60 = vld [vmem:[#allocation5 + $0x9d0] sm:$0xff] }
 0x1c0   :  { %2931 = vmatpush1.bf16.msra.mxu0 %v6178_v8  ;;  %v6188_v8 = vcombine.low %v393_v61, %v397_v62  ;;  %v6242_v14 = vcombine.low %v448_v60, %v452_v4 }
 0x1c1   :  { %2941 = vmatprep.subr.bf16.mxu0 %v6187_v10  ;;  %v6197_v10 = vcombine.high %v401_v5, %v405_v6 }
 0x1c2   :  { %3083 = vmatpush1.bf16.msra.mxu1 %v6132_v9  ;;  %v6243_v9 = vcombine.high %v448_v60, %v452_v4  ;;  %v461_v60 = vld [vmem:[#allocation5 + $0xa38] sm:$0xff] }
 0x1c3   :  { %3084 = vmatprep.subr.bf16.mxu1 %v6141_v19  ;;  %2933 = vmatmul.mubr.bf16.vlgmr.msra.gmra.mrb[4].mxu0 %v7685_v36  ;;  %v456_v19 = vld [vmem:[#allocation5 + $0xa10] sm:$0xff] }
 0x1c4   :  { %2942 = vmatpush1.bf16.msra.mxu0 %v6186_v15  ;;  %2973 = vmatprep.mubr.bf16.mxu0 %v7687_v38  ;;  %v6196_v15 = vcombine.low %v401_v5, %v405_v6  ;;  %v6250_v23 = vcombine.low %v456_v19, %v460_v11 }
 0x1c5   :  { %2943 = vmatprep.subr.bf16.mxu0 %v6195_v17  ;;  %v6205_v17 = vcombine.high %v409_v12, %v413_v13 }
 0x1c6   :  { %3085 = vmatpush1.bf16.msra.mxu1 %v6140_v16  ;;  %v6251_v16 = vcombine.high %v456_v19, %v460_v11  ;;  %v469_v19 = vld [vmem:[#allocation5 + $0xa78] sm:$0xff] }
 0x1c7   :  { %3086 = vmatprep.subr.bf16.mxu1 %v6149_v24  ;;  %v464_v24 = vld [vmem:[#allocation5 + $0xa50] sm:$0xff] }
 0x1c8   :  { %2944 = vmatpush1.bf16.msra.mxu0 %v6194_v25  ;;  %v6204_v25 = vcombine.low %v409_v12, %v413_v13  ;;  %v6258_v31 = vcombine.low %v464_v24, %v468_v18 }
 0x1c9   :  { %2945 = vmatprep.subr.bf16.mxu0 %v6203_v27  ;;  %v472_v27 = vld [vmem:[#allocation5 + $0xa90] sm:$0xff] }
 0x1ca   :  { %3087 = vmatpush1.bf16.msra.mxu1 %v6148_v26  ;;  %v6213_v26 = vcombine.high %v417_v21, %v421_v22  ;;  %v481_v22 = vld [vmem:[#allocation5 + $0xad8] sm:$0xff] }
 0x1cb   :  { %3088 = vmatprep.subr.bf16.mxu1 %v6157_v28  ;;  %v476_v28 = vld [vmem:[#allocation5 + $0xab0] sm:$0xff] }
 0x1cc   :  { %2946 = vmatpush1.bf16.msra.mxu0 %v6202_v33  ;;  %v6221_v33 = vcombine.high %v425_v29, %v429_v30  ;;  %v6266_v40 = vcombine.low %v472_v27, %v476_v28  ;;  %v493_v29 = vld [vmem:[#allocation5 + $0xb38] sm:$0xff]  ;;  %v6827_v30 = vld [vmem:[#allocation7 + $0x20] ss:$16 sps:$4 sm:$0xff]  }
 0x1cd   :  { %2947 = vmatprep.subr.bf16.mxu0 %v6211_v35  ;;  %v484_v35 = vld [vmem:[#allocation5 + $0xaf0] sm:$0xff] }
 0x1ce   :  { %3089 = vmatpush1.bf16.msra.mxu1 %v6156_v34  ;;  %v480_v34 = vld [vmem:[#allocation5 + $0xad0] sm:$0xff] }
 0x1cf   :  { %3090 = vmatprep.subr.bf16.mxu1 %v6165_v37  ;;  %v433_v37 = vld [vmem:[#allocation5 + $0x958] sm:$0xff]  ;;  %v6275_v44 = vcombine.high %v480_v34, %v484_v35  ;;  %v6274_v50 = vcombine.low %v480_v34, %v484_v35  ;;  %v527_v35 = vlaneseq }
 0x1d0   :  { %2948 = vmatpush1.bf16.msra.mxu0 %v6210_v45  ;;  %v6229_v45 = vcombine.high %v433_v37, %v437_v39  ;;  %v6228_v51 = vcombine.low %v433_v37, %v437_v39  ;;  %v501_v34 = vld [vmem:[#allocation5 + $0xb78] sm:$0xff]  ;;  %v6830_v37 = vld [vmem:[#allocation7 + $0x40] ss:$16 sps:$4 sm:$0xff]  }
 0x1d1   :  { %2949 = vmatprep.subr.bf16.mxu0 %v6219_v47  ;;  %v492_v47 = vld [vmem:[#allocation5 + $0xb30] sm:$0xff] }
 0x1d2   :  { %3091 = vmatpush1.bf16.msra.mxu1 %v6164_v46  ;;  %v488_v46 = vld [vmem:[#allocation5 + $0xb10] sm:$0xff] }
 0x1d3   :  { %3092 = vmatprep.subr.bf16.mxu1 %v6173_v48  ;;  %v441_v48 = vld [vmem:[#allocation5 + $0x998] sm:$0xff]  ;;  %v6283_v52 = vcombine.high %v488_v46, %v492_v47  ;;  %v6282_v59 = vcombine.low %v488_v46, %v492_v47  ;;  %v7718_v46 = vshrl.u32 %v527_v35, 7  ;;  %v6833_v47 = vld [vmem:[#allocation7 + $0x60] ss:$16 sps:$4 sm:$0xff]  }
 0x1d4   :  { %2950 = vmatpush1.bf16.msra.mxu0 %v6218_v54  ;;  %v6237_v54 = vcombine.high %v441_v48, %v445_v49  ;;  %v6236_v61 = vcombine.low %v441_v48, %v445_v49  ;;  %v6838_v49 = vld [vmem:[#allocation7 + $0x84] ss:$16 sps:$4 sm:$0xff]  }
 0x1d5   :  { %2951 = vmatprep.subr.bf16.mxu0 %v6227_v56  ;;  %v500_v56 = vld [vmem:[#allocation5 + $0xb70] sm:$0xff]  ;;  %v541_v35 = vsub.s32 3, %v7718_v46 }
 0x1d6   :  { %3093 = vmatpush1.bf16.msra.mxu1 %v6172_v55  ;;  %v496_v55 = vld [vmem:[#allocation5 + $0xb50] sm:$0xff] }
 0x1d7   :  { %3094 = vmatprep.subr.bf16.mxu1 %v6181_v57  ;;  %v449_v57 = vld [vmem:[#allocation5 + $0x9d8] sm:$0xff]  ;;  %v6291_v62 = vcombine.high %v496_v55, %v500_v56  ;;  %v6290_v4 = vcombine.low %v496_v55, %v500_v56  ;;  %v6836_v55 = vld [vmem:[#allocation7 + $0x80] ss:$16 sps:$4 sm:$0xff]  }
 0x1d8   :  { %2952 = vmatpush1.bf16.msra.mxu0 %v6226_v63  ;;  %v6245_v63 = vcombine.high %v449_v57, %v453_v58  ;;  %v6244_v5 = vcombine.low %v449_v57, %v453_v58  ;;  %v7723_v56 = vld [vmem:[#allocation13] sm:$0xff]  ;;  %v7726_v57 = vsub.s32 1, %v7718_v46 }
 0x1d9   :  { %2953 = vmatprep.subr.bf16.mxu0 %v6235_v2  ;;  %v508_v2 = vld [vmem:[#allocation5 + $0xbb0] sm:$0xff] }
 0x1da   :  { %3095 = vmatpush1.bf16.msra.mxu1 %v6180_v1  ;;  %v504_v1 = vld [vmem:[#allocation5 + $0xb90] sm:$0xff] }
 0x1db   :  { %3105 = vmatprep.subr.bf16.mxu1 %v6189_v3  ;;  %v457_v3 = vld [vmem:[#allocation5 + $0xa18] sm:$0xff]  ;;  %v6299_v6 = vcombine.high %v504_v1, %v508_v2  ;;  %v6298_v11 = vcombine.low %v504_v1, %v508_v2  ;;  %v534_v2 = vrot.slane %v7723_v56, %v7726_v57 }
 0x1dc   :  { %2954 = vmatpush1.bf16.msra.mxu0 %v6234_v7  ;;  %v6253_v7 = vcombine.high %v457_v3, %v461_v60  ;;  %v6252_v12 = vcombine.low %v457_v3, %v461_v60  ;;  %v525_v1 = vld [vmem:[#allocation5 + $0xc38] sm:$0xff]  ;;  %v6839_v3 = vld [vmem:[#allocation7 + $0xa0] ss:$16 sps:$4 sm:$0xff]  }
 0x1dd   :  { %3097 = vmatmul.mubr.bf16.vlgmr.msra.gmra.mrb[12].mxu1 %v7685_v36  ;;  %2955 = vmatprep.subr.bf16.mxu0 %v6243_v9  ;;  %v6259_v36 = vcombine.high %v464_v24, %v468_v18  ;;  %v516_v9 = vld [vmem:[#allocation5 + $0xbf0] sm:$0xff] }
 0x1de   :  { %3106 = vmatpush1.bf16.msra.mxu1 %v6188_v8  ;;  %3137 = vmatprep.mubr.bf16.mxu1 %v7687_v38  ;;  %v6267_v38 = vcombine.high %v472_v27, %v476_v28  ;;  %v512_v8 = vld [vmem:[#allocation5 + $0xbd0] sm:$0xff]  ;;  %v489_v28 = vld [vmem:[#allocation5 + $0xb18] sm:$0xff] }
 0x1df   :  { %3107 = vmatprep.subr.bf16.mxu1 %v6197_v10  ;;  %v465_v10 = vld [vmem:[#allocation5 + $0xa58] sm:$0xff]  ;;  %v6307_v13 = vcombine.high %v512_v8, %v516_v9  ;;  %v6826_v18 = vld [vmem:[#allocation7 + $0x4] ss:$16 sps:$4 sm:$0xff]   ;;  %v6284_v39 = vcombine.low %v489_v28, %v493_v29 }
 0x1e0   :  { %2956 = vmatpush1.bf16.msra.mxu0 %v6242_v14  ;;  %v6261_v14 = vcombine.high %v465_v10, %v469_v19  ;;  %v6260_v24 = vcombine.low %v465_v10, %v469_v19  ;;  %v6842_v19 = vld [vmem:[#allocation7 + $0xc0] ss:$16 sps:$4 sm:$0xff]  }
 0x1e1   :  { %2957 = vmatprep.subr.bf16.mxu0 %v6251_v16  ;;  %v477_v16 = vld [vmem:[#allocation5 + $0xab8] sm:$0xff] }
 0x1e2   :  { %3108 = vmatpush1.bf16.msra.mxu1 %v6196_v15  ;;  %v473_v15 = vld [vmem:[#allocation5 + $0xa98] sm:$0xff] }
 0x1e3   :  { %3109 = vmatprep.subr.bf16.mxu1 %v6205_v17  ;;  %v6306_v17 = vcombine.low %v512_v8, %v516_v9  ;;  %v6269_v21 = vcombine.high %v473_v15, %v477_v16 }
 0x1e4   :  { %2958 = vmatpush1.bf16.msra.mxu0 %v6250_v23  ;;  %v485_v23 = vld [vmem:[#allocation5 + $0xaf8] sm:$0xff] }
 0x1e5   :  { %2959 = vmatprep.subr.bf16.mxu0 %v6259_v36  ;;  %v6268_v36 = vcombine.low %v473_v15, %v477_v16  ;;  %v6277_v27 = vcombine.high %v481_v22, %v485_v23  ;;  %v6853_v16 = vld [vmem:[#allocation7 + $0xc] ss:$16 sps:$4 sm:$0xff]  }
 0x1e6   :  { %3110 = vmatpush1.bf16.msra.mxu1 %v6204_v25  ;;  %v6824_v25 = vld [vmem:[#allocation7] ss:$16 sps:$4 sm:$0xff]  }
 0x1e7   :  { %3111 = vmatprep.subr.bf16.mxu1 %v6213_v26  ;;  %v6829_v26 = vld [vmem:[#allocation7 + $0x24] ss:$16 sps:$4 sm:$0xff]  }
 0x1e8   :  { %2960 = vmatpush1.bf16.msra.mxu0 %v6258_v31  ;;  %v6276_v31 = vcombine.low %v481_v22, %v485_v23  ;;  %v6848_v22 = vld [vmem:[#allocation7 + $0x100] ss:$16 sps:$4 sm:$0xff]  }
 0x1e9   :  { %2961 = vmatprep.subr.bf16.mxu0 %v6267_v38  ;;  %v6285_v38 = vcombine.high %v489_v28, %v493_v29  ;;  %v6854_v23 = vld [vmem:[#allocation7 + $0x120] ss:$16 sps:$4 sm:$0xff]   ;;  %v6857_v29 = vld [vmem:[#allocation7 + $0x28] ss:$16 sps:$4 sm:$0xff]  }
 0x1ea   :  { %3112 = vmatpush1.bf16.msra.mxu1 %v6212_v32  ;;  %v6832_v32 = vld [vmem:[#allocation7 + $0x44] ss:$16 sps:$4 sm:$0xff]  }
 0x1eb   :  { %3113 = vmatprep.subr.bf16.mxu1 %v6221_v33  ;;  %v497_v33 = vld [vmem:[#allocation5 + $0xb58] sm:$0xff] }
 0x1ec   :  { %2962 = vmatpush1.bf16.msra.mxu0 %v6266_v40  ;;  %v6835_v40 = vld [vmem:[#allocation7 + $0x64] ss:$16 sps:$4 sm:$0xff]   ;;  %v6292_v48 = vcombine.low %v497_v33, %v501_v34 }
 0x1ed   :  { %2963 = vmatprep.subr.bf16.mxu0 %v6275_v44  ;;  %v505_v44 = vld [vmem:[#allocation5 + $0xb98] sm:$0xff] }
 0x1ee   :  { %3114 = vmatpush1.bf16.msra.mxu1 %v6220_v42  ;;  %v6293_v42 = vcombine.high %v497_v33, %v501_v34  ;;  %v6863_v33 = vld [vmem:[#allocation7 + $0x48] ss:$16 sps:$4 sm:$0xff]   ;;  %v6874_v34 = vld [vmem:[#allocation7 + $0x184] ss:$16 sps:$4 sm:$0xff]  }
 0x1ef   :  { %3115 = vmatprep.subr.bf16.mxu1 %v6229_v45  ;;  %v509_v45 = vld [vmem:[#allocation5 + $0xbb8] sm:$0xff] }
 0x1f0   :  { %2964 = vmatpush1.bf16.msra.mxu0 %v6274_v50  ;;  %v6301_v50 = vcombine.high %v505_v44, %v509_v45  ;;  %v6300_v58 = vcombine.low %v505_v44, %v509_v45  ;;  %v6880_v44 = vld [vmem:[#allocation7 + $0x1a4] ss:$16 sps:$4 sm:$0xff]  }
 0x1f1   :  { %2965 = vmatprep.subr.bf16.mxu0 %v6283_v52  ;;  %v513_v52 = vld [vmem:[#allocation5 + $0xbd8] sm:$0xff] }
 0x1f2   :  { %3116 = vmatpush1.bf16.msra.mxu1 %v6228_v51  ;;  %v7721_v51 = vsub.s32 0, %v7718_v46 }
 0x1f3   :  { %3117 = vmatprep.subr.bf16.mxu1 %v6237_v54  ;;  %v517_v54 = vld [vmem:[#allocation5 + $0xbf8] sm:$0xff] }
 0x1f4   :  { %2966 = vmatpush1.bf16.msra.mxu0 %v6282_v59  ;;  %v6841_v59 = vld [vmem:[#allocation7 + $0xa4] ss:$16 sps:$4 sm:$0xff]   ;;  %v6308_v60 = vcombine.low %v513_v52, %v517_v54 }
 0x1f5   :  { %2967 = vmatprep.subr.bf16.mxu0 %v6291_v62  ;;  %v530_v62 = vrot.slane %v7723_v56, %v7721_v51 }
 0x1f6   :  { %3118 = vmatpush1.bf16.msra.mxu1 %v6236_v61  ;;  %v6309_v61 = vcombine.high %v513_v52, %v517_v54  ;;  %v6875_v52 = vld [vmem:[#allocation7 + $0x88] ss:$16 sps:$4 sm:$0xff]   ;;  %v6886_v54 = vld [vmem:[#allocation7 + $0x1c4] ss:$16 sps:$4 sm:$0xff]  }
 0x1f7   :  { %3119 = vmatprep.subr.bf16.mxu1 %v6245_v63  ;;  %v521_v63 = vld [vmem:[#allocation5 + $0xc18] sm:$0xff] }
 0x1f8   :  { %2968 = vmatpush1.bf16.msra.mxu0 %v6290_v4  ;;  %v6844_v4 = vld [vmem:[#allocation7 + $0xc4] ss:$16 sps:$4 sm:$0xff]  }
 0x1f9   :  { %2969 = vmatprep.subr.bf16.mxu0 %v6299_v6  ;;  %v6317_v6 = vcombine.high %v521_v63, %v525_v1 }
 0x1fa   :  { %3120 = vmatpush1.bf16.msra.mxu1 %v6244_v5 }
 0x1fb   :  { %3121 = vmatprep.subr.bf16.mxu1 %v6253_v7 }
 0x1fc   :  { %2970 = vmatpush1.bf16.msra.mxu0 %v6298_v11 }
 0x1fd   :  { %2971 = vmatprep.subr.bf16.mxu0 %v6307_v13  ;;  %v6847_v13 = vld [vmem:[#allocation7 + $0xe4] ss:$16 sps:$4 sm:$0xff]  }
 0x1fe   :  { %3122 = vmatpush1.bf16.msra.mxu1 %v6252_v12 }
 0x1ff   :  { %3123 = vmatprep.subr.bf16.mxu1 %v6261_v14  ;;  %v6316_v14 = vcombine.low %v521_v63, %v525_v1  ;;  %v6889_v1 = vld [vmem:[#allocation7 + $0xcc] ss:$16 sps:$4 sm:$0xff]  }
 0x200   :  { %2972 = vmatpush1.bf16.msra.mxu0 %v6306_v17 }
 0x201   :  { %4777 = vmatprep.subr.bf16.mxu0 %v6826_v18  ;;  %v6850_v18 = vld [vmem:[#allocation7 + $0x104] ss:$16 sps:$4 sm:$0xff]  }
 0x202   :  { %3124 = vmatpush1.bf16.msra.mxu1 %v6260_v24  ;;  %v6845_v24 = vld [vmem:[#allocation7 + $0xe0] ss:$16 sps:$4 sm:$0xff]  }
 0x203   :  { %3125 = vmatprep.subr.bf16.mxu1 %v6269_v21  ;;  %2974 = vmatmul.mubr.bf16.vlgmr.msra.gmra.mrb[4].mxu0 %v7693_v53 }
 0x204   :  { %4778 = vmatpush1.bf16.msra.mxu0 %v6824_v25  ;;  %v6851_v25 = vld [vmem:[#allocation7 + $0x8] ss:$16 sps:$4 sm:$0xff]  }
 0x205   :  { %4779 = vmatprep.subr.bf16.mxu0 %v6829_v26 }
 0x206   :  { %3126 = vmatpush1.bf16.msra.mxu1 %v6268_v36  ;;  %v6862_v36 = vld [vmem:[#allocation7 + $0x144] ss:$16 sps:$4 sm:$0xff]  }
 0x207   :  { %3127 = vmatprep.subr.bf16.mxu1 %v6277_v27 }
 0x208   :  { %4780 = vmatpush1.bf16.msra.mxu0 %v6827_v30  ;;  %v6868_v30 = vld [vmem:[#allocation7 + $0x164] ss:$16 sps:$4 sm:$0xff]  }
 0x209   :  { %4781 = vmatprep.subr.bf16.mxu0 %v6832_v32  ;;  %v6865_v32 = vld [vmem:[#allocation7 + $0x4c] ss:$16 sps:$4 sm:$0xff]  }
 0x20a   :  { %3128 = vmatpush1.bf16.msra.mxu1 %v6276_v31 }
 0x20b   :  { %3129 = vmatprep.subr.bf16.mxu1 %v6285_v38  ;;  %v6866_v38 = vld [vmem:[#allocation7 + $0x160] ss:$16 sps:$4 sm:$0xff]  }
 0x20c   :  { %4782 = vmatpush1.bf16.msra.mxu0 %v6830_v37 }
 0x20d   :  { %4783 = vmatprep.subr.bf16.mxu0 %v6835_v40 }
 0x20e   :  { %3130 = vmatpush1.bf16.msra.mxu1 %v6284_v39  ;;  %v6872_v39 = vld [vmem:[#allocation7 + $0x180] ss:$16 sps:$4 sm:$0xff]  }
 0x20f   :  { %3131 = vmatprep.subr.bf16.mxu1 %v6293_v42  ;;  %v6869_v42 = vld [vmem:[#allocation7 + $0x68] ss:$16 sps:$4 sm:$0xff]  }
 0x210   :  { %4784 = vmatpush1.bf16.msra.mxu0 %v6833_v47  ;;  %v6877_v47 = vld [vmem:[#allocation7 + $0x8c] ss:$16 sps:$4 sm:$0xff]  }
 0x211   :  { %4785 = vmatprep.subr.bf16.mxu0 %v6838_v49  ;;  %v542_v49 = vrot.slane %v7723_v56, %v541_v35 }
 0x212   :  { %3132 = vmatpush1.bf16.msra.mxu1 %v6292_v48 }
 0x213   :  { %3133 = vmatprep.subr.bf16.mxu1 %v6301_v50  ;;  %v6878_v50 = vld [vmem:[#allocation7 + $0x1a0] ss:$16 sps:$4 sm:$0xff]  }
 0x214   :  { %4786 = vmatpush1.bf16.msra.mxu0 %v6836_v55  ;;  %v6883_v55 = vld [vmem:[#allocation7 + $0xac] ss:$16 sps:$4 sm:$0xff]  }
 0x215   :  { %4787 = vmatprep.subr.bf16.mxu0 %v6841_v59  ;;  %v6884_v59 = vld [vmem:[#allocation7 + $0x1c0] ss:$16 sps:$4 sm:$0xff]  }
 0x216   :  { %3134 = vmatpush1.bf16.msra.mxu1 %v6300_v58  ;;  %v2647_v5 = vpop.f32.mrb[0].mxu0 }
 0x217   :  { %3135 = vmatprep.subr.bf16.mxu1 %v6309_v61  ;;  %v6719_v7 = vadd.f32 %v2647_v5, %v530_v62  ;;  %v2649_v8 = vpop.f32.mrb[1].mxu0  ;;  %v6881_v61 = vld [vmem:[#allocation7 + $0xa8] ss:$16 sps:$4 sm:$0xff]   ;;  %v6892_v62 = vld [vmem:[#allocation7 + $0x1e4] ss:$16 sps:$4 sm:$0xff]  }
 0x218   :  { %v6721_v9 = vadd.f32 %v2649_v8, %v534_v2  ;;  %v2651_v10 = vpop.f32.mrb[2].mxu0  ;;  %4788 = vmatpush1.bf16.msra.mxu0 %v6839_v3  ;;  %v6890_v3 = vld [vmem:[#allocation7 + $0x1e0] ss:$16 sps:$4 sm:$0xff]  }
 0x219   :  { %v7733_v11 = vadd.f32 %v6719_v7, %v7702_v41  ;;  %v2652_v12 = vpop.f32.mrb[3].mxu0  ;;  %4789 = vmatprep.subr.bf16.mxu0 %v6844_v4  ;;  %v6898_v4 = vld [vmem:[#allocation7 + $0x204] ss:$16 sps:$4 sm:$0xff]   ;;  %v6896_v8 = vld [vmem:[#allocation7 + $0x200] ss:$16 sps:$4 sm:$0xff]  }
 0x21a   :  { %3136 = vmatpush1.bf16.msra.mxu1 %v6308_v60  ;;  %v6722_v15 = vadd.f32 %v6721_v9, %v7706_v43  ;;  %v6856_v43 = vld [vmem:[#allocation7 + $0x124] ss:$16 sps:$4 sm:$0xff]   ;;  %v6887_v60 = vld [vmem:[#allocation7 + $0xc8] ss:$16 sps:$4 sm:$0xff]  }
 0x21b   :  { %3146 = vmatprep.subr.bf16.mxu1 %v6317_v6  ;;  %v3195_v63 = vmul.f32 0.01, %v7733_v11  ;;  %vm3187_vm2 = vcmp.ge.f32.partialorder %v7733_v11, 0.0  ;;  %v6895_v6 = vld [vmem:[#allocation7 + $0xec] ss:$16 sps:$4 sm:$0xff]  }
 0x21c   :  { %v3196_v17 = vmul.f32 0.01, %v6722_v15  ;;  %4790 = vmatpush1.bf16.msra.mxu0 %v6842_v19  ;;  %vm3188_vm1 = vcmp.ge.f32.partialorder %v6722_v15, 0.0  ;;  %v6893_v10 = vld [vmem:[#allocation7 + $0xe8] ss:$16 sps:$4 sm:$0xff]  }
 0x21d   :  { %3138 = vmatmul.mubr.bf16.vlgmr.msra.gmra.mrb[12].mxu1 %v7693_v53  ;;  %4791 = vmatprep.subr.bf16.mxu0 %v6847_v13  ;;  %v6859_v53 = vld [vmem:[#allocation7 + $0x2c] ss:$16 sps:$4 sm:$0xff]   ;;  %v3203_v5 = vsel %vm3187_vm2, %v7733_v11, %v3195_v63  ;;  %v6904_v19 = vld [vmem:[#allocation7 + $0x224] ss:$16 sps:$4 sm:$0xff]   ;;  %v6902_v11 = vld [vmem:[#allocation7 + $0x220] ss:$16 sps:$4 sm:$0xff]  }
 0x21e   :  { %3147 = vmatpush1.bf16.msra.mxu1 %v6316_v14  ;;  %v3204_v41 = vsel %vm3188_vm1, %v6722_v15, %v3196_v17  ;;  %3178 = vmatprep.mubr.bf16.mxu1 %v7534_v0  ;;  %v6860_v0 = vld [vmem:[#allocation7 + $0x140] ss:$16 sps:$4 sm:$0xff]   ;;  %v7753_v9 = vpack.c.bf16 %v3203_v5, %v3203_v5  ;;  %v6901_v13 = vld [vmem:[#allocation7 + $0x10c] ss:$16 sps:$4 sm:$0xff]   ;;  %v6899_v14 = vld [vmem:[#allocation7 + $0x108] ss:$16 sps:$4 sm:$0xff]  }
 0x21f   :  { %4941 = vmatprep.subr.bf16.mxu1 %v6853_v16  ;;  %v3212_v21 = vpack.c.bf16 %v3204_v41, %v3204_v41  ;;  %v6910_v15 = vld [vmem:[#allocation7 + $0x244] ss:$16 sps:$4 sm:$0xff]   ;;  %v6907_v16 = vld [vmem:[#allocation7 + $0x12c] ss:$16 sps:$4 sm:$0xff]   ;;  %v6908_v17 = vld [vmem:[#allocation7 + $0x240] ss:$16 sps:$4 sm:$0xff]  }
 0x220   :  { %4792 = vmatpush1.bf16.msra.mxu0 %v6845_v24  ;;  %v6905_v24 = vld [vmem:[#allocation7 + $0x128] ss:$16 sps:$4 sm:$0xff]   ;;  %v6913_v41 = vld [vmem:[#allocation7 + $0x14c] ss:$16 sps:$4 sm:$0xff]   ;;  %v6976_v5 = vld [vmem:[#allocation7 + $0x3a4] ss:$16 sps:$4 sm:$0xff]  }
 0x221   :  { %4809 = vmatprep.mubr.bf16.mxu0 %v3212_v21  ;;  %4793 = vmatprep.subr.bf16.mxu0 %v6850_v18  ;;  %v6916_v18 = vld [vmem:[#allocation7 + $0x264] ss:$16 sps:$4 sm:$0xff]   ;;  %v6959_v63 = vld [vmem:[#allocation7 + $0x248] ss:$16 sps:$4 sm:$0xff]  }
 0x224   :  { %4794 = vmatpush1.bf16.msra.mxu0 %v6848_v22  ;;  %v6911_v22 = vld [vmem:[#allocation7 + $0x148] ss:$16 sps:$4 sm:$0xff]  }
 0x225   :  { %4795 = vmatprep.subr.bf16.mxu0 %v6856_v43  ;;  %v6922_v43 = vld [vmem:[#allocation7 + $0x284] ss:$16 sps:$4 sm:$0xff]  }
 0x228   :  { %v7738_v26 = vpop.f32.mrb[4].mxu1  ;;  %4796 = vmatpush1.bf16.msra.mxu0 %v6854_v23  ;;  %v6919_v23 = vld [vmem:[#allocation7 + $0x16c] ss:$16 sps:$4 sm:$0xff]  }
 0x229   :  { %6321 = vmatmul.mubr.msk.bf16.vlgmr.msra.gmra.mrb[12].mxu1 %vm2527_vm0, %v7669_v20  ;;  %v2854_v27 = vpop.f32.mrb[5].mxu1  ;;  %4797 = vmatprep.subr.bf16.mxu0 %v6862_v36  ;;  %v6871_v20 = vld [vmem:[#allocation7 + $0x6c] ss:$16 sps:$4 sm:$0xff]   ;;  %v6928_v36 = vld [vmem:[#allocation7 + $0x2a4] ss:$16 sps:$4 sm:$0xff]  }
 0x22a   :  { %4942 = vmatpush1.bf16.msra.mxu1 %v6851_v25  ;;  %4973 = vmatprep.mubr.bf16.mxu1 %v3212_v21  ;;  %v2856_v28 = vpop.f32.mrb[6].mxu1  ;;  %v6724_v58 = vadd.f32 %v2854_v27, %v542_v49  ;;  %v6914_v21 = vld [vmem:[#allocation7 + $0x260] ss:$16 sps:$4 sm:$0xff]   ;;  %v6925_v27 = vld [vmem:[#allocation7 + $0x18c] ss:$16 sps:$4 sm:$0xff]  }
 0x22b   :  { %v2857_v31 = vpop.f32.mrb[7].mxu1  ;;  %4943 = vmatprep.subr.bf16.mxu1 %v6859_v53  ;;  %v6920_v25 = vld [vmem:[#allocation7 + $0x280] ss:$16 sps:$4 sm:$0xff]   ;;  %v6917_v53 = vld [vmem:[#allocation7 + $0x168] ss:$16 sps:$4 sm:$0xff]  }
 0x22c   :  { %4798 = vmatpush1.bf16.msra.mxu0 %v6860_v0  ;;  %v3198_v2 = vmul.f32 0.01, %v6724_v58  ;;  %vm3190_vm3 = vcmp.ge.f32.partialorder %v6724_v58, 0.0  ;;  %v6926_v0 = vld [vmem:[#allocation7 + $0x2a0] ss:$16 sps:$4 sm:$0xff]  }
 0x22d   :  { %4799 = vmatprep.subr.bf16.mxu0 %v6868_v30  ;;  %v6923_v28 = vld [vmem:[#allocation7 + $0x188] ss:$16 sps:$4 sm:$0xff]   ;;  %v6931_v30 = vld [vmem:[#allocation7 + $0x1ac] ss:$16 sps:$4 sm:$0xff]   ;;  %v6932_v31 = vld [vmem:[#allocation7 + $0x2c0] ss:$16 sps:$4 sm:$0xff]  }
 0x22e   :  { %4944 = vmatpush1.bf16.msra.mxu1 %v6857_v29  ;;  %v3206_v7 = vsel %vm3190_vm3, %v6724_v58, %v3198_v2  ;;  %v6934_v29 = vld [vmem:[#allocation7 + $0x2c4] ss:$16 sps:$4 sm:$0xff]   ;;  %v6950_v49 = vld [vmem:[#allocation7 + $0x320] ss:$16 sps:$4 sm:$0xff]   ;;  %v6953_v58 = vld [vmem:[#allocation7 + $0x228] ss:$16 sps:$4 sm:$0xff]  }
 0x22f   :  { %4945 = vmatprep.subr.bf16.mxu1 %v6865_v32  ;;  %v7755_v12 = vpack.c.bf16 %v3206_v7, %v3206_v7  ;;  %v6929_v32 = vld [vmem:[#allocation7 + $0x1a8] ss:$16 sps:$4 sm:$0xff]   ;;  %v537_v2 = vsub.s32 2, %v7718_v46  ;;  %v6973_v7 = vld [vmem:[#allocation7 + $0x28c] ss:$16 sps:$4 sm:$0xff]  }
 0x230   :  { %v7743_v37 = vpop.f32.mrb[8].mxu1  ;;  %4800 = vmatpush1.bf16.msra.mxu0 %v6866_v38  ;;  %v6940_v38 = vld [vmem:[#allocation7 + $0x2e4] ss:$16 sps:$4 sm:$0xff]  }
 0x231   :  { %v7745_v40 = vpop.f32.mrb[9].mxu1  ;;  %4801 = vmatprep.subr.bf16.mxu0 %v6874_v34  ;;  %v6938_v34 = vld [vmem:[#allocation7 + $0x2e0] ss:$16 sps:$4 sm:$0xff]  }
 0x232   :  { %4946 = vmatpush1.bf16.msra.mxu1 %v6863_v33  ;;  %v3020_v45 = vpop.f32.mrb[10].mxu1  ;;  %v6937_v33 = vld [vmem:[#allocation7 + $0x1cc] ss:$16 sps:$4 sm:$0xff]  }
 0x233   :  { %4947 = vmatprep.subr.bf16.mxu1 %v6871_v20  ;;  %v3021_v48 = vpop.f32.mrb[11].mxu1  ;;  %v6935_v20 = vld [vmem:[#allocation7 + $0x1c8] ss:$16 sps:$4 sm:$0xff]  }
 0x234   :  { %4802 = vmatpush1.bf16.msra.mxu0 %v6872_v39  ;;  %v6946_v39 = vld [vmem:[#allocation7 + $0x304] ss:$16 sps:$4 sm:$0xff]   ;;  %v6941_v45 = vld [vmem:[#allocation7 + $0x1e8] ss:$16 sps:$4 sm:$0xff]   ;;  %v6949_v48 = vld [vmem:[#allocation7 + $0x20c] ss:$16 sps:$4 sm:$0xff]  }
 0x235   :  { %4803 = vmatprep.subr.bf16.mxu0 %v6880_v44  ;;  %v6944_v44 = vld [vmem:[#allocation7 + $0x300] ss:$16 sps:$4 sm:$0xff]  }
 0x236   :  { %4948 = vmatpush1.bf16.msra.mxu1 %v6869_v42  ;;  %v6943_v42 = vld [vmem:[#allocation7 + $0x1ec] ss:$16 sps:$4 sm:$0xff]  }
 0x237   :  { %4949 = vmatprep.subr.bf16.mxu1 %v6877_v47  ;;  %v6952_v47 = vld [vmem:[#allocation7 + $0x324] ss:$16 sps:$4 sm:$0xff]  }
 0x238   :  { %4804 = vmatpush1.bf16.msra.mxu0 %v6878_v50  ;;  %v6947_v50 = vld [vmem:[#allocation7 + $0x208] ss:$16 sps:$4 sm:$0xff]  }
 0x239   :  { %4805 = vmatprep.subr.bf16.mxu0 %v6886_v54  ;;  %v6958_v54 = vld [vmem:[#allocation7 + $0x344] ss:$16 sps:$4 sm:$0xff]  }
 0x23a   :  { %4950 = vmatpush1.bf16.msra.mxu1 %v6875_v52  ;;  %v6955_v52 = vld [vmem:[#allocation7 + $0x22c] ss:$16 sps:$4 sm:$0xff]  }
 0x23b   :  { %4951 = vmatprep.subr.bf16.mxu1 %v6883_v55  ;;  %v6956_v55 = vld [vmem:[#allocation7 + $0x340] ss:$16 sps:$4 sm:$0xff]  }
 0x23c   :  { %4806 = vmatpush1.bf16.msra.mxu0 %v6884_v59  ;;  %v6964_v59 = vld [vmem:[#allocation7 + $0x364] ss:$16 sps:$4 sm:$0xff]  }
 0x23d   :  { %4807 = vmatprep.subr.bf16.mxu0 %v6892_v62  ;;  %v6962_v62 = vld [vmem:[#allocation7 + $0x360] ss:$16 sps:$4 sm:$0xff]  }
 0x23e   :  { %4952 = vmatpush1.bf16.msra.mxu1 %v6881_v61  ;;  %v6961_v61 = vld [vmem:[#allocation7 + $0x24c] ss:$16 sps:$4 sm:$0xff]  }
 0x23f   :  { %4953 = vmatprep.subr.bf16.mxu1 %v6889_v1  ;;  %v6970_v1 = vld [vmem:[#allocation7 + $0x384] ss:$16 sps:$4 sm:$0xff]  }
 0x240   :  { %4808 = vmatpush1.bf16.msra.mxu0 %v6890_v3  ;;  %v6967_v3 = vld [vmem:[#allocation7 + $0x26c] ss:$16 sps:$4 sm:$0xff]  }
 0x241   :  { %4818 = vmatprep.subr.bf16.mxu0 %v6898_v4  ;;  %v6965_v4 = vld [vmem:[#allocation7 + $0x268] ss:$16 sps:$4 sm:$0xff]  }
 0x242   :  { %4954 = vmatpush1.bf16.msra.mxu1 %v6887_v60  ;;  %v6968_v60 = vld [vmem:[#allocation7 + $0x380] ss:$16 sps:$4 sm:$0xff]  }
 0x243   :  { %4955 = vmatprep.subr.bf16.mxu1 %v6895_v6  ;;  %4810 = vmatmul.mubr.bf16.vlgmr.msra.gmra.mrb[8].mxu0 %v7753_v9  ;;  %v538_v6 = vrot.slane %v7723_v56, %v537_v2 }
 0x244   :  { %4819 = vmatpush1.bf16.msra.mxu0 %v6896_v8  ;;  %4850 = vmatprep.mubr.bf16.mxu0 %v7755_v12  ;;  %v6974_v8 = vld [vmem:[#allocation7 + $0x3a0] ss:$16 sps:$4 sm:$0xff]  }
 0x245   :  { %4820 = vmatprep.subr.bf16.mxu0 %v6904_v19  ;;  %v6723_v19 = vadd.f32 %v7738_v26, %v538_v6  ;;  %v6991_v26 = vld [vmem:[#allocation7 + $0x2ec] ss:$16 sps:$4 sm:$0xff]   ;;  %v7075_v6 = vld [vmem:[#allocation7 + $0x544] ss:$16 sps:$4 sm:$0xff]  }
 0x246   :  { %4956 = vmatpush1.bf16.msra.mxu1 %v6893_v10  ;;  %v6982_v10 = vld [vmem:[#allocation7 + $0x3c4] ss:$16 sps:$4 sm:$0xff]  }
 0x247   :  { %4957 = vmatprep.subr.bf16.mxu1 %v6901_v13  ;;  %v6980_v13 = vld [vmem:[#allocation7 + $0x3c0] ss:$16 sps:$4 sm:$0xff]   ;;  %vm3189_vm4 = vcmp.ge.f32.partialorder %v6723_v19, 0.0 }
 0x248   :  { %4821 = vmatpush1.bf16.msra.mxu0 %v6902_v11  ;;  %v6977_v11 = vld [vmem:[#allocation7 + $0x2a8] ss:$16 sps:$4 sm:$0xff]  }
 0x249   :  { %4822 = vmatprep.subr.bf16.mxu0 %v6910_v15  ;;  %v3197_v15 = vmul.f32 0.01, %v6723_v19 }
 0x24a   :  { %4958 = vmatpush1.bf16.msra.mxu1 %v6899_v14  ;;  %v6988_v14 = vld [vmem:[#allocation7 + $0x3e4] ss:$16 sps:$4 sm:$0xff]  }
 0x24b   :  { %4959 = vmatprep.subr.bf16.mxu1 %v6907_v16  ;;  %v6985_v16 = vld [vmem:[#allocation7 + $0x2cc] ss:$16 sps:$4 sm:$0xff]  }
 0x24c   :  { %4823 = vmatpush1.bf16.msra.mxu0 %v6908_v17  ;;  %v6986_v17 = vld [vmem:[#allocation7 + $0x3e0] ss:$16 sps:$4 sm:$0xff]  }
 0x24d   :  { %4824 = vmatprep.subr.bf16.mxu0 %v6916_v18  ;;  %v7015_v18 = vld [vmem:[#allocation7 + $0x404] ss:$16 sps:$4 sm:$0xff]  }
 0x24e   :  { %4960 = vmatpush1.bf16.msra.mxu1 %v6905_v24  ;;  %v6983_v24 = vld [vmem:[#allocation7 + $0x2c8] ss:$16 sps:$4 sm:$0xff]  }
 0x24f   :  { %4961 = vmatprep.subr.bf16.mxu1 %v6913_v41  ;;  %v3205_v41 = vsel %vm3189_vm4, %v6723_v19, %v3197_v15  ;;  %v7036_v19 = vld [vmem:[#allocation7 + $0x44c] ss:$16 sps:$4 sm:$0xff]   ;;  %v7085_v15 = vld [vmem:[#allocation7 + $0x580] ss:$16 sps:$4 sm:$0xff]  }
 0x250   :  { %4825 = vmatpush1.bf16.msra.mxu0 %v6914_v21  ;;  %v7013_v21 = vld [vmem:[#allocation7 + $0x400] ss:$16 sps:$4 sm:$0xff]  }
 0x251   :  { %4826 = vmatprep.subr.bf16.mxu0 %v6922_v43  ;;  %v6989_v43 = vld [vmem:[#allocation7 + $0x2e8] ss:$16 sps:$4 sm:$0xff]  }
 0x252   :  { %4962 = vmatpush1.bf16.msra.mxu1 %v6911_v22  ;;  %v7766_v22 = vpack.c.bf16 %v3205_v41, %v3205_v41  ;;  %v7046_v41 = vld [vmem:[#allocation7 + $0x488] ss:$16 sps:$4 sm:$0xff]  }
 0x253   :  { %4963 = vmatprep.subr.bf16.mxu1 %v6919_v23  ;;  %v7021_v23 = vld [vmem:[#allocation7 + $0x424] ss:$16 sps:$4 sm:$0xff]  }
 0x254   :  { %4827 = vmatpush1.bf16.msra.mxu0 %v6920_v25  ;;  %v6994_v25 = vld [vmem:[#allocation7 + $0x30c] ss:$16 sps:$4 sm:$0xff]  }
 0x255   :  { %4828 = vmatprep.subr.bf16.mxu0 %v6928_v36  ;;  %v6992_v36 = vld [vmem:[#allocation7 + $0x308] ss:$16 sps:$4 sm:$0xff]  }
 0x256   :  { %4964 = vmatpush1.bf16.msra.mxu1 %v6917_v53  ;;  %v7019_v53 = vld [vmem:[#allocation7 + $0x420] ss:$16 sps:$4 sm:$0xff]  }
 0x257   :  { %4965 = vmatprep.subr.bf16.mxu1 %v6925_v27  ;;  %v7027_v27 = vld [vmem:[#allocation7 + $0x444] ss:$16 sps:$4 sm:$0xff]  }
 0x258   :  { %4829 = vmatpush1.bf16.msra.mxu0 %v6926_v0  ;;  %v6997_v0 = vld [vmem:[#allocation7 + $0x32c] ss:$16 sps:$4 sm:$0xff]  }
 0x259   :  { %4830 = vmatprep.subr.bf16.mxu0 %v6934_v29  ;;  %v6995_v29 = vld [vmem:[#allocation7 + $0x328] ss:$16 sps:$4 sm:$0xff]  }
 0x25a   :  { %4966 = vmatpush1.bf16.msra.mxu1 %v6923_v28  ;;  %v7025_v28 = vld [vmem:[#allocation7 + $0x440] ss:$16 sps:$4 sm:$0xff]  }
 0x25b   :  { %4967 = vmatprep.subr.bf16.mxu1 %v6931_v30  ;;  %v7033_v30 = vld [vmem:[#allocation7 + $0x464] ss:$16 sps:$4 sm:$0xff]  }
 0x25c   :  { %4831 = vmatpush1.bf16.msra.mxu0 %v6932_v31  ;;  %v7000_v31 = vld [vmem:[#allocation7 + $0x34c] ss:$16 sps:$4 sm:$0xff]  }
 0x25d   :  { %4832 = vmatprep.subr.bf16.mxu0 %v6940_v38  ;;  %v6998_v38 = vld [vmem:[#allocation7 + $0x348] ss:$16 sps:$4 sm:$0xff]  }
 0x25e   :  { %4968 = vmatpush1.bf16.msra.mxu1 %v6929_v32  ;;  %v7031_v32 = vld [vmem:[#allocation7 + $0x460] ss:$16 sps:$4 sm:$0xff]  }
 0x25f   :  { %4969 = vmatprep.subr.bf16.mxu1 %v6937_v33  ;;  %v7039_v33 = vld [vmem:[#allocation7 + $0x484] ss:$16 sps:$4 sm:$0xff]  }
 0x260   :  { %4833 = vmatpush1.bf16.msra.mxu0 %v6938_v34  ;;  %v7003_v34 = vld [vmem:[#allocation7 + $0x36c] ss:$16 sps:$4 sm:$0xff]  }
 0x261   :  { %4834 = vmatprep.subr.bf16.mxu0 %v6946_v39  ;;  %v7001_v39 = vld [vmem:[#allocation7 + $0x368] ss:$16 sps:$4 sm:$0xff]  }
 0x262   :  { %4970 = vmatpush1.bf16.msra.mxu1 %v6935_v20  ;;  %v7037_v20 = vld [vmem:[#allocation7 + $0x480] ss:$16 sps:$4 sm:$0xff]  }
 0x263   :  { %4971 = vmatprep.subr.bf16.mxu1 %v6943_v42  ;;  %v7045_v42 = vld [vmem:[#allocation7 + $0x4a4] ss:$16 sps:$4 sm:$0xff]  }
 0x264   :  { %4835 = vmatpush1.bf16.msra.mxu0 %v6944_v44  ;;  %v7006_v44 = vld [vmem:[#allocation7 + $0x38c] ss:$16 sps:$4 sm:$0xff]  }
 0x265   :  { %4836 = vmatprep.subr.bf16.mxu0 %v6952_v47  ;;  %v7004_v47 = vld [vmem:[#allocation7 + $0x388] ss:$16 sps:$4 sm:$0xff]  }
 0x266   :  { %4972 = vmatpush1.bf16.msra.mxu1 %v6941_v45  ;;  %v7043_v45 = vld [vmem:[#allocation7 + $0x4a0] ss:$16 sps:$4 sm:$0xff]  }
 0x267   :  { %4982 = vmatprep.subr.bf16.mxu1 %v6949_v48  ;;  %v7051_v48 = vld [vmem:[#allocation7 + $0x4c4] ss:$16 sps:$4 sm:$0xff]  }
 0x268   :  { %4837 = vmatpush1.bf16.msra.mxu0 %v6950_v49  ;;  %v7009_v49 = vld [vmem:[#allocation7 + $0x3ac] ss:$16 sps:$4 sm:$0xff]  }
 0x269   :  { %4974 = vmatmul.mubr.bf16.vlgmr.msra.gmra.mrb[16].mxu1 %v7753_v9  ;;  %4838 = vmatprep.subr.bf16.mxu0 %v6958_v54  ;;  %v6971_v9 = vld [vmem:[#allocation7 + $0x288] ss:$16 sps:$4 sm:$0xff]   ;;  %v7057_v54 = vld [vmem:[#allocation7 + $0x4e4] ss:$16 sps:$4 sm:$0xff]  }
 0x26a   :  { %4983 = vmatpush1.bf16.msra.mxu1 %v6947_v50  ;;  %5014 = vmatprep.mubr.bf16.mxu1 %v7755_v12  ;;  %v6979_v12 = vld [vmem:[#allocation7 + $0x2ac] ss:$16 sps:$4 sm:$0xff]   ;;  %v7049_v50 = vld [vmem:[#allocation7 + $0x4c0] ss:$16 sps:$4 sm:$0xff]  }
 0x26b   :  { %4984 = vmatprep.subr.bf16.mxu1 %v6955_v52  ;;  %v7007_v52 = vld [vmem:[#allocation7 + $0x3a8] ss:$16 sps:$4 sm:$0xff]  }
 0x26c   :  { %4839 = vmatpush1.bf16.msra.mxu0 %v6956_v55  ;;  %v7012_v55 = vld [vmem:[#allocation7 + $0x3cc] ss:$16 sps:$4 sm:$0xff]  }
 0x26d   :  { %4840 = vmatprep.subr.bf16.mxu0 %v6964_v59  ;;  %v7010_v59 = vld [vmem:[#allocation7 + $0x3c8] ss:$16 sps:$4 sm:$0xff]  }
 0x26e   :  { %4985 = vmatpush1.bf16.msra.mxu1 %v6953_v58  ;;  %v7055_v58 = vld [vmem:[#allocation7 + $0x4e0] ss:$16 sps:$4 sm:$0xff]  }
 0x26f   :  { %4986 = vmatprep.subr.bf16.mxu1 %v6961_v61  ;;  %v7063_v61 = vld [vmem:[#allocation7 + $0x504] ss:$16 sps:$4 sm:$0xff]  }
 0x270   :  { %4841 = vmatpush1.bf16.msra.mxu0 %v6962_v62  ;;  %v7018_v62 = vld [vmem:[#allocation7 + $0x3ec] ss:$16 sps:$4 sm:$0xff]  }
 0x271   :  { %4842 = vmatprep.subr.bf16.mxu0 %v6970_v1  ;;  %v7016_v1 = vld [vmem:[#allocation7 + $0x3e8] ss:$16 sps:$4 sm:$0xff]  }
 0x272   :  { %4987 = vmatpush1.bf16.msra.mxu1 %v6959_v63  ;;  %v7061_v63 = vld [vmem:[#allocation7 + $0x500] ss:$16 sps:$4 sm:$0xff]  }
 0x273   :  { %4988 = vmatprep.subr.bf16.mxu1 %v6967_v3  ;;  %v7069_v3 = vld [vmem:[#allocation7 + $0x524] ss:$16 sps:$4 sm:$0xff]  }
 0x274   :  { %4843 = vmatpush1.bf16.msra.mxu0 %v6968_v60  ;;  %v7024_v60 = vld [vmem:[#allocation7 + $0x40c] ss:$16 sps:$4 sm:$0xff]  }
 0x275   :  { %4844 = vmatprep.subr.bf16.mxu0 %v6976_v5  ;;  %v7022_v5 = vld [vmem:[#allocation7 + $0x408] ss:$16 sps:$4 sm:$0xff]  }
 0x276   :  { %4989 = vmatpush1.bf16.msra.mxu1 %v6965_v4  ;;  %v7067_v4 = vld [vmem:[#allocation7 + $0x520] ss:$16 sps:$4 sm:$0xff]  }
 0x277   :  { %4990 = vmatprep.subr.bf16.mxu1 %v6973_v7  ;;  %v7030_v7 = vld [vmem:[#allocation7 + $0x42c] ss:$16 sps:$4 sm:$0xff]  }
 0x278   :  { %4845 = vmatpush1.bf16.msra.mxu0 %v6974_v8  ;;  %v7073_v8 = vld [vmem:[#allocation7 + $0x540] ss:$16 sps:$4 sm:$0xff]  }
 0x279   :  { %4846 = vmatprep.subr.bf16.mxu0 %v6982_v10  ;;  %v7081_v10 = vld [vmem:[#allocation7 + $0x564] ss:$16 sps:$4 sm:$0xff]  }
 0x27a   :  { %4991 = vmatpush1.bf16.msra.mxu1 %v6971_v9  ;;  %v7028_v9 = vld [vmem:[#allocation7 + $0x428] ss:$16 sps:$4 sm:$0xff]  }
 0x27b   :  { %4992 = vmatprep.subr.bf16.mxu1 %v6979_v12  ;;  %v7079_v12 = vld [vmem:[#allocation7 + $0x560] ss:$16 sps:$4 sm:$0xff]  }
 0x27c   :  { %4847 = vmatpush1.bf16.msra.mxu0 %v6980_v13  ;;  %v7034_v13 = vld [vmem:[#allocation7 + $0x448] ss:$16 sps:$4 sm:$0xff]  }
 0x27d   :  { %4848 = vmatprep.subr.bf16.mxu0 %v6988_v14  ;;  %v7042_v14 = vld [vmem:[#allocation7 + $0x46c] ss:$16 sps:$4 sm:$0xff]  }
 0x27e   :  { %4993 = vmatpush1.bf16.msra.mxu1 %v6977_v11  ;;  %v7087_v11 = vld [vmem:[#allocation7 + $0x584] ss:$16 sps:$4 sm:$0xff]  }
 0x27f   :  { %4994 = vmatprep.subr.bf16.mxu1 %v6985_v16  ;;  %v7040_v16 = vld [vmem:[#allocation7 + $0x468] ss:$16 sps:$4 sm:$0xff]  }
 0x280   :  { %4849 = vmatpush1.bf16.msra.mxu0 %v6986_v17  ;;  %v7093_v17 = vld [vmem:[#allocation7 + $0x5a4] ss:$16 sps:$4 sm:$0xff]  }
 0x281   :  { %4859 = vmatprep.subr.bf16.mxu0 %v7015_v18  ;;  %v7091_v18 = vld [vmem:[#allocation7 + $0x5a0] ss:$16 sps:$4 sm:$0xff]  }
 0x282   :  { %4995 = vmatpush1.bf16.msra.mxu1 %v6983_v24  ;;  %v7048_v24 = vld [vmem:[#allocation7 + $0x48c] ss:$16 sps:$4 sm:$0xff]  }
 0x283   :  { %4996 = vmatprep.subr.bf16.mxu1 %v6991_v26  ;;  %4851 = vmatmul.mubr.bf16.vlgmr.msra.gmra.mrb[8].mxu0 %v7766_v22  ;;  %v7099_v26 = vld [vmem:[#allocation7 + $0x5c4] ss:$16 sps:$4 sm:$0xff]  }
 0x284   :  { %4860 = vmatpush1.bf16.msra.mxu0 %v7013_v21  ;;  %v7054_v21 = vld [vmem:[#allocation7 + $0x4ac] ss:$16 sps:$4 sm:$0xff]  }
 0x285   :  { %4861 = vmatprep.subr.bf16.mxu0 %v7021_v23  ;;  %v7105_v23 = vld [vmem:[#allocation7 + $0x5e4] ss:$16 sps:$4 sm:$0xff]  }
 0x286   :  { %4997 = vmatpush1.bf16.msra.mxu1 %v6989_v43  ;;  %v7052_v43 = vld [vmem:[#allocation7 + $0x4a8] ss:$16 sps:$4 sm:$0xff]  }
 0x287   :  { %4998 = vmatprep.subr.bf16.mxu1 %v6994_v25  ;;  %v7060_v25 = vld [vmem:[#allocation7 + $0x4cc] ss:$16 sps:$4 sm:$0xff]  }
 0x288   :  { %4862 = vmatpush1.bf16.msra.mxu0 %v7019_v53  ;;  %v7103_v53 = vld [vmem:[#allocation7 + $0x5e0] ss:$16 sps:$4 sm:$0xff]  }
 0x289   :  { %4863 = vmatprep.subr.bf16.mxu0 %v7027_v27  ;;  %v7111_v27 = vld [vmem:[#allocation7 + $0x604] ss:$16 sps:$4 sm:$0xff]  }
 0x28a   :  { %4999 = vmatpush1.bf16.msra.mxu1 %v6992_v36  ;;  %v7058_v36 = vld [vmem:[#allocation7 + $0x4c8] ss:$16 sps:$4 sm:$0xff]  }
 0x28b   :  { %5000 = vmatprep.subr.bf16.mxu1 %v6997_v0  ;;  %v7066_v0 = vld [vmem:[#allocation7 + $0x4ec] ss:$16 sps:$4 sm:$0xff]  }
 0x28c   :  { %4864 = vmatpush1.bf16.msra.mxu0 %v7025_v28  ;;  %v7064_v28 = vld [vmem:[#allocation7 + $0x4e8] ss:$16 sps:$4 sm:$0xff]  }
 0x28d   :  { %4865 = vmatprep.subr.bf16.mxu0 %v7033_v30  ;;  %v7070_v30 = vld [vmem:[#allocation7 + $0x508] ss:$16 sps:$4 sm:$0xff]  }
 0x28e   :  { %5001 = vmatpush1.bf16.msra.mxu1 %v6995_v29  ;;  %v7072_v29 = vld [vmem:[#allocation7 + $0x50c] ss:$16 sps:$4 sm:$0xff]  }
 0x28f   :  { %5002 = vmatprep.subr.bf16.mxu1 %v7000_v31  ;;  %v7078_v31 = vld [vmem:[#allocation7 + $0x52c] ss:$16 sps:$4 sm:$0xff]  }
 0x290   :  { %4866 = vmatpush1.bf16.msra.mxu0 %v7031_v32  ;;  %v7076_v32 = vld [vmem:[#allocation7 + $0x528] ss:$16 sps:$4 sm:$0xff]  }
 0x291   :  { %4867 = vmatprep.subr.bf16.mxu0 %v7039_v33  ;;  %v7082_v33 = vld [vmem:[#allocation7 + $0x548] ss:$16 sps:$4 sm:$0xff]  }
 0x292   :  { %5003 = vmatpush1.bf16.msra.mxu1 %v6998_v38  ;;  %v7084_v38 = vld [vmem:[#allocation7 + $0x54c] ss:$16 sps:$4 sm:$0xff]  }
 0x293   :  { %5004 = vmatprep.subr.bf16.mxu1 %v7003_v34  ;;  %v7090_v34 = vld [vmem:[#allocation7 + $0x56c] ss:$16 sps:$4 sm:$0xff]  }
 0x294   :  { %4868 = vmatpush1.bf16.msra.mxu0 %v7037_v20  ;;  %v545_v20 = vsub.s32 4, %v7718_v46 }
 0x295   :  { %4869 = vmatprep.subr.bf16.mxu0 %v7045_v42  ;;  %v7088_v42 = vld [vmem:[#allocation7 + $0x568] ss:$16 sps:$4 sm:$0xff]  }
 0x296   :  { %5005 = vmatpush1.bf16.msra.mxu1 %v7001_v39  ;;  %v549_v39 = vsub.s32 5, %v7718_v46 }
 0x297   :  { %5006 = vmatprep.subr.bf16.mxu1 %v7006_v44  ;;  %v7096_v44 = vld [vmem:[#allocation7 + $0x58c] ss:$16 sps:$4 sm:$0xff]  }
 0x298   :  { %4870 = vmatpush1.bf16.msra.mxu0 %v7043_v45  ;;  %v546_v45 = vrot.slane %v7723_v56, %v545_v20  ;;  %v7151_v20 = vld [vmem:[#allocation7 + $0x6e0] ss:$16 sps:$4 sm:$0xff]  }
 0x299   :  { %4871 = vmatprep.subr.bf16.mxu0 %v7051_v48  ;;  %v7094_v48 = vld [vmem:[#allocation7 + $0x588] ss:$16 sps:$4 sm:$0xff]  }
 0x29a   :  { %5007 = vmatpush1.bf16.msra.mxu1 %v7004_v47  ;;  %v550_v47 = vrot.slane %v7723_v56, %v549_v39 }
 0x29b   :  { %5008 = vmatprep.subr.bf16.mxu1 %v7009_v49 }
 0x29c   :  { %4872 = vmatpush1.bf16.msra.mxu0 %v7049_v50  ;;  %v7102_v50 = vld [vmem:[#allocation7 + $0x5ac] ss:$16 sps:$4 sm:$0xff]  }
 0x29d   :  { %4873 = vmatprep.subr.bf16.mxu0 %v7057_v54 }
 0x29e   :  { %5009 = vmatpush1.bf16.msra.mxu1 %v7007_v52 }
 0x29f   :  { %5010 = vmatprep.subr.bf16.mxu1 %v7012_v55 }
 0x2a0   :  { %4874 = vmatpush1.bf16.msra.mxu0 %v7055_v58 }
 0x2a1   :  { %4875 = vmatprep.subr.bf16.mxu0 %v7063_v61 }
 0x2a2   :  { %5011 = vmatpush1.bf16.msra.mxu1 %v7010_v59 }
 0x2a3   :  { %5012 = vmatprep.subr.bf16.mxu1 %v7018_v62  ;;  %v7100_v62 = vld [vmem:[#allocation7 + $0x5a8] ss:$16 sps:$4 sm:$0xff]  }
 0x2a4   :  { %4876 = vmatpush1.bf16.msra.mxu0 %v7061_v63 }
 0x2a5   :  { %4877 = vmatprep.subr.bf16.mxu0 %v7069_v3 }
 0x2a6   :  { %5013 = vmatpush1.bf16.msra.mxu1 %v7016_v1  ;;  %v7108_v1 = vld [vmem:[#allocation7 + $0x5cc] ss:$16 sps:$4 sm:$0xff]  }
 0x2a7   :  { %5023 = vmatprep.subr.bf16.mxu1 %v7024_v60 }
 0x2a8   :  { %4878 = vmatpush1.bf16.msra.mxu0 %v7067_v4  ;;  %v7106_v4 = vld [vmem:[#allocation7 + $0x5c8] ss:$16 sps:$4 sm:$0xff]  }
 0x2a9   :  { %5015 = vmatmul.mubr.bf16.vlgmr.msra.gmra.mrb[16].mxu1 %v7766_v22  ;;  %4879 = vmatprep.subr.bf16.mxu0 %v7075_v6  ;;  %v7097_v22 = vld [vmem:[#allocation7 + $0x5c0] ss:$16 sps:$4 sm:$0xff]  }
 0x2aa   :  { %5024 = vmatpush1.bf16.msra.mxu1 %v7022_v5 }
 0x2ab   :  { %5025 = vmatprep.subr.bf16.mxu1 %v7030_v7  ;;  %v7114_v7 = vld [vmem:[#allocation7 + $0x5ec] ss:$16 sps:$4 sm:$0xff]  }
 0x2ac   :  { %4880 = vmatpush1.bf16.msra.mxu0 %v7073_v8 }
 0x2ad   :  { %4881 = vmatprep.subr.bf16.mxu0 %v7081_v10  ;;  %v7112_v10 = vld [vmem:[#allocation7 + $0x5e8] ss:$16 sps:$4 sm:$0xff]  }
 0x2ae   :  { %5026 = vmatpush1.bf16.msra.mxu1 %v7028_v9  ;;  %v7109_v9 = vld [vmem:[#allocation7 + $0x600] ss:$16 sps:$4 sm:$0xff]  }
 0x2af   :  { %5027 = vmatprep.subr.bf16.mxu1 %v7036_v19  ;;  %v7117_v19 = vld [vmem:[#allocation7 + $0x624] ss:$16 sps:$4 sm:$0xff]  }
 0x2b0   :  { %4882 = vmatpush1.bf16.msra.mxu0 %v7079_v12  ;;  %v7115_v12 = vld [vmem:[#allocation7 + $0x620] ss:$16 sps:$4 sm:$0xff]  }
 0x2b1   :  { %4883 = vmatprep.subr.bf16.mxu0 %v7087_v11  ;;  %v7123_v11 = vld [vmem:[#allocation7 + $0x644] ss:$16 sps:$4 sm:$0xff]  }
 0x2b2   :  { %5028 = vmatpush1.bf16.msra.mxu1 %v7034_v13  ;;  %v7118_v13 = vld [vmem:[#allocation7 + $0x608] ss:$16 sps:$4 sm:$0xff]  }
 0x2b3   :  { %5029 = vmatprep.subr.bf16.mxu1 %v7042_v14  ;;  %v7126_v14 = vld [vmem:[#allocation7 + $0x62c] ss:$16 sps:$4 sm:$0xff]  }
 0x2b4   :  { %4884 = vmatpush1.bf16.msra.mxu0 %v7085_v15  ;;  %v7121_v15 = vld [vmem:[#allocation7 + $0x640] ss:$16 sps:$4 sm:$0xff]  }
 0x2b5   :  { %4885 = vmatprep.subr.bf16.mxu0 %v7093_v17  ;;  %v7129_v17 = vld [vmem:[#allocation7 + $0x664] ss:$16 sps:$4 sm:$0xff]  }
 0x2b6   :  { %5030 = vmatpush1.bf16.msra.mxu1 %v7040_v16  ;;  %v7124_v16 = vld [vmem:[#allocation7 + $0x628] ss:$16 sps:$4 sm:$0xff]  }
 0x2b7   :  { %5031 = vmatprep.subr.bf16.mxu1 %v7048_v24  ;;  %v7132_v24 = vld [vmem:[#allocation7 + $0x64c] ss:$16 sps:$4 sm:$0xff]  }
 0x2b8   :  { %4886 = vmatpush1.bf16.msra.mxu0 %v7091_v18  ;;  %v7127_v18 = vld [vmem:[#allocation7 + $0x660] ss:$16 sps:$4 sm:$0xff]  }
 0x2b9   :  { %4887 = vmatprep.subr.bf16.mxu0 %v7099_v26  ;;  %v7135_v26 = vld [vmem:[#allocation7 + $0x684] ss:$16 sps:$4 sm:$0xff]  }
 0x2ba   :  { %5032 = vmatpush1.bf16.msra.mxu1 %v7046_v41  ;;  %v7130_v41 = vld [vmem:[#allocation7 + $0x648] ss:$16 sps:$4 sm:$0xff]  }
 0x2bb   :  { %5033 = vmatprep.subr.bf16.mxu1 %v7054_v21  ;;  %v7138_v21 = vld [vmem:[#allocation7 + $0x66c] ss:$16 sps:$4 sm:$0xff]  }
 0x2bc   :  { %4888 = vmatpush1.bf16.msra.mxu0 %v7097_v22  ;;  %v7133_v22 = vld [vmem:[#allocation7 + $0x680] ss:$16 sps:$4 sm:$0xff]  }
 0x2bd   :  { %4889 = vmatprep.subr.bf16.mxu0 %v7105_v23  ;;  %v7141_v23 = vld [vmem:[#allocation7 + $0x6a4] ss:$16 sps:$4 sm:$0xff]  }
 0x2be   :  { %5034 = vmatpush1.bf16.msra.mxu1 %v7052_v43  ;;  %v7136_v43 = vld [vmem:[#allocation7 + $0x668] ss:$16 sps:$4 sm:$0xff]  }
 0x2bf   :  { %5035 = vmatprep.subr.bf16.mxu1 %v7060_v25  ;;  %v7144_v25 = vld [vmem:[#allocation7 + $0x68c] ss:$16 sps:$4 sm:$0xff]  }
 0x2c0   :  { %4890 = vmatpush1.bf16.msra.mxu0 %v7103_v53  ;;  %v7139_v53 = vld [vmem:[#allocation7 + $0x6a0] ss:$16 sps:$4 sm:$0xff]  }
 0x2c1   :  { %4900 = vmatprep.subr.bf16.mxu0 %v7111_v27  ;;  %v7147_v27 = vld [vmem:[#allocation7 + $0x6c4] ss:$16 sps:$4 sm:$0xff]  }
 0x2c2   :  { %5036 = vmatpush1.bf16.msra.mxu1 %v7058_v36  ;;  %v7142_v36 = vld [vmem:[#allocation7 + $0x688] ss:$16 sps:$4 sm:$0xff]  }
 0x2c3   :  { %5037 = vmatprep.subr.bf16.mxu1 %v7066_v0  ;;  %v557_v0 = vsub.s32 7, %v7718_v46 }
 0x2c6   :  { %5038 = vmatpush1.bf16.msra.mxu1 %v7064_v28  ;;  %v7150_v28 = vld [vmem:[#allocation7 + $0x6ac] ss:$16 sps:$4 sm:$0xff]  }
 0x2c7   :  { %5039 = vmatprep.subr.bf16.mxu1 %v7072_v29  ;;  %v7145_v29 = vld [vmem:[#allocation7 + $0x6c0] ss:$16 sps:$4 sm:$0xff]  }
 0x2ca   :  { %5040 = vmatpush1.bf16.msra.mxu1 %v7070_v30  ;;  %v7148_v30 = vld [vmem:[#allocation7 + $0x6a8] ss:$16 sps:$4 sm:$0xff]  }
 0x2cb   :  { %5041 = vmatprep.subr.bf16.mxu1 %v7078_v31  ;;  %v558_v31 = vrot.slane %v7723_v56, %v557_v0  ;;  %v7157_v56 = vld [vmem:[#allocation7 + $0x700] ss:$16 sps:$4 sm:$0xff]   ;;  %v7205_v0 = vld [vmem:[#allocation7 + $0x7e8] ss:$16 sps:$4 sm:$0xff]  }
 0x2ce   :  { %5042 = vmatpush1.bf16.msra.mxu1 %v7076_v32  ;;  %v7153_v32 = vld [vmem:[#allocation7 + $0x6e4] ss:$16 sps:$4 sm:$0xff]  }
 0x2cf   :  { %5043 = vmatprep.subr.bf16.mxu1 %v7084_v38  ;;  %v7156_v38 = vld [vmem:[#allocation7 + $0x6cc] ss:$16 sps:$4 sm:$0xff]  }
 0x2d2   :  { %5044 = vmatpush1.bf16.msra.mxu1 %v7082_v33 }
 0x2d3   :  { %5045 = vmatprep.subr.bf16.mxu1 %v7090_v34 }
 0x2d6   :  { %5046 = vmatpush1.bf16.msra.mxu1 %v7088_v42  ;;  %v2975_v49 = vpop.f32.mrb[4].mxu0 }
 0x2d7   :  { %5047 = vmatprep.subr.bf16.mxu1 %v7096_v44  ;;  %v6725_v52 = vadd.f32 %v2975_v49, %v546_v45  ;;  %v2977_v54 = vpop.f32.mrb[5].mxu0  ;;  %v7154_v44 = vld [vmem:[#allocation7 + $0x6c8] ss:$16 sps:$4 sm:$0xff]   ;;  %v7159_v45 = vld [vmem:[#allocation7 + $0x704] ss:$16 sps:$4 sm:$0xff]  }
 0x2d8   :  { %v6727_v55 = vadd.f32 %v2977_v54, %v550_v47  ;;  %v2979_v58 = vpop.f32.mrb[6].mxu0 }
 0x2d9   :  { %v6726_v59 = vadd.f32 %v6725_v52, %v7743_v37  ;;  %v2980_v61 = vpop.f32.mrb[7].mxu0  ;;  %v7168_v58 = vld [vmem:[#allocation7 + $0x70c] ss:$16 sps:$4 sm:$0xff]  }
 0x2da   :  { %5048 = vmatpush1.bf16.msra.mxu1 %v7094_v48  ;;  %v6728_v63 = vadd.f32 %v6727_v55, %v7745_v40  ;;  %v7120_v40 = vld [vmem:[#allocation7 + $0x60c] ss:$16 sps:$4 sm:$0xff]   ;;  %v7165_v55 = vld [vmem:[#allocation7 + $0x724] ss:$16 sps:$4 sm:$0xff]   ;;  %v7166_v61 = vld [vmem:[#allocation7 + $0x708] ss:$16 sps:$4 sm:$0xff]  }
 0x2db   :  { %5049 = vmatprep.subr.bf16.mxu1 %v7102_v50  ;;  %vm3191_vm5 = vcmp.ge.f32.partialorder %v6726_v59, 0.0  ;;  %v3199_v3 = vmul.f32 0.01, %v6726_v59  ;;  %v7162_v48 = vld [vmem:[#allocation7 + $0x6ec] ss:$16 sps:$4 sm:$0xff]  }
 0x2dc   :  { %v3200_v60 = vmul.f32 0.01, %v6728_v63  ;;  %vm3192_vm6 = vcmp.ge.f32.partialorder %v6728_v63, 0.0  ;;  %v7160_v50 = vld [vmem:[#allocation7 + $0x6e8] ss:$16 sps:$4 sm:$0xff]  }
 0x2dd   :  { %v3207_v5 = vsel %vm3191_vm5, %v6726_v59, %v3199_v3  ;;  %v7163_v59 = vld [vmem:[#allocation7 + $0x720] ss:$16 sps:$4 sm:$0xff]   ;;  %v7172_v3 = vld [vmem:[#allocation7 + $0x728] ss:$16 sps:$4 sm:$0xff]  }
 0x2de   :  { %5050 = vmatpush1.bf16.msra.mxu1 %v7100_v62  ;;  %v3208_v6 = vsel %vm3192_vm6, %v6728_v63, %v3200_v60  ;;  %v3215_v37 = vpack.c.bf16 %v3207_v5, %v3207_v5  ;;  %v7171_v62 = vld [vmem:[#allocation7 + $0x744] ss:$16 sps:$4 sm:$0xff]   ;;  %v7174_v63 = vld [vmem:[#allocation7 + $0x72c] ss:$16 sps:$4 sm:$0xff]   ;;  %v7175_v5 = vld [vmem:[#allocation7 + $0x760] ss:$16 sps:$4 sm:$0xff]  }
 0x2df   :  { %5051 = vmatprep.subr.bf16.mxu1 %v7108_v1  ;;  %v3216_v8 = vpack.c.bf16 %v3208_v6, %v3208_v6  ;;  %v7169_v1 = vld [vmem:[#allocation7 + $0x740] ss:$16 sps:$4 sm:$0xff]   ;;  %v7177_v60 = vld [vmem:[#allocation7 + $0x764] ss:$16 sps:$4 sm:$0xff]   ;;  %v7178_v6 = vld [vmem:[#allocation7 + $0x748] ss:$16 sps:$4 sm:$0xff]  }
 0x2e1   :  { %4891 = vmatprep.mubr.bf16.mxu0 %v3216_v8  ;;  %5055 = vmatprep.mubr.bf16.mxu1 %v3216_v8  ;;  %v553_v8 = vsub.s32 6, %v7718_v46 }
 0x2e2   :  { %5052 = vmatpush1.bf16.msra.mxu1 %v7106_v4  ;;  %4892 = vmatmul.mubr.bf16.vlgmr.msra.gmra.mrb[8].mxu0 %v3215_v37  ;;  %v7180_v4 = vld [vmem:[#allocation7 + $0x74c] ss:$16 sps:$4 sm:$0xff]  }
 0x2e3   :  { %5053 = vmatprep.subr.bf16.mxu1 %v7114_v7  ;;  %4901 = vmatpush1.bf16.msra.mxu0 %v7109_v9  ;;  %v7183_v7 = vld [vmem:[#allocation7 + $0x784] ss:$16 sps:$4 sm:$0xff]   ;;  %v7186_v9 = vld [vmem:[#allocation7 + $0x76c] ss:$16 sps:$4 sm:$0xff]  }
 0x2e4   :  { %4902 = vmatprep.subr.bf16.mxu0 %v7117_v19  ;;  %v7189_v19 = vld [vmem:[#allocation7 + $0x7a4] ss:$16 sps:$4 sm:$0xff]  }
 0x2e6   :  { %5054 = vmatpush1.bf16.msra.mxu1 %v7112_v10  ;;  %v7184_v10 = vld [vmem:[#allocation7 + $0x768] ss:$16 sps:$4 sm:$0xff]  }
 0x2e7   :  { %5064 = vmatprep.subr.bf16.mxu1 %v7120_v40  ;;  %4903 = vmatpush1.bf16.msra.mxu0 %v7115_v12  ;;  %v7332_v40 = vld [vmem:[#allocation13] sm:$0xff] }
 0x2e8   :  { %4904 = vmatprep.subr.bf16.mxu0 %v7123_v11  ;;  %v554_v12 = vrot.slane %v7332_v40, %v553_v8  ;;  %v7187_v11 = vld [vmem:[#allocation7 + $0x7a0] ss:$16 sps:$4 sm:$0xff]   ;;  %v7306_v8 = vld [vmem:[#allocation10 + $0x48] sm:$0xff]   ;;  %v7311_v40 = vld [vmem:[#allocation10 + $0x18] sm:$0xff]  }
 0x2e9   :  { %5056 = vmatmul.mubr.bf16.vlgmr.msra.gmra.mrb[16].mxu1 %v3215_v37  ;;  %v7181_v37 = vld [vmem:[#allocation7 + $0x780] ss:$16 sps:$4 sm:$0xff]  }
 0x2ea   :  { %5065 = vmatpush1.bf16.msra.mxu1 %v7118_v13  ;;  %v7192_v13 = vld [vmem:[#allocation7 + $0x78c] ss:$16 sps:$4 sm:$0xff]  }
 0x2eb   :  { %5066 = vmatprep.subr.bf16.mxu1 %v7126_v14  ;;  %4905 = vmatpush1.bf16.msra.mxu0 %v7121_v15  ;;  %v7190_v14 = vld [vmem:[#allocation7 + $0x788] ss:$16 sps:$4 sm:$0xff]   ;;  %v7195_v15 = vld [vmem:[#allocation7 + $0x7c4] ss:$16 sps:$4 sm:$0xff]  }
 0x2ec   :  { %4906 = vmatprep.subr.bf16.mxu0 %v7129_v17  ;;  %v7198_v17 = vld [vmem:[#allocation7 + $0x7ac] ss:$16 sps:$4 sm:$0xff]  }
 0x2ee   :  { %5067 = vmatpush1.bf16.msra.mxu1 %v7124_v16 }
 0x2ef   :  { %5068 = vmatprep.subr.bf16.mxu1 %v7132_v24  ;;  %4907 = vmatpush1.bf16.msra.mxu0 %v7127_v18  ;;  %v7193_v24 = vld [vmem:[#allocation7 + $0x7c0] ss:$16 sps:$4 sm:$0xff]   ;;  %v7196_v18 = vld [vmem:[#allocation7 + $0x7a8] ss:$16 sps:$4 sm:$0xff]  }
 0x2f0   :  { %4908 = vmatprep.subr.bf16.mxu0 %v7135_v26 }
 0x2f2   :  { %5069 = vmatpush1.bf16.msra.mxu1 %v7130_v41  ;;  %v7201_v41 = vld [vmem:[#allocation7 + $0x7e4] ss:$16 sps:$4 sm:$0xff]  }
 0x2f3   :  { %5070 = vmatprep.subr.bf16.mxu1 %v7138_v21  ;;  %4909 = vmatpush1.bf16.msra.mxu0 %v7133_v22  ;;  %v7204_v21 = vld [vmem:[#allocation7 + $0x7cc] ss:$16 sps:$4 sm:$0xff]   ;;  %v7199_v22 = vld [vmem:[#allocation7 + $0x7e0] ss:$16 sps:$4 sm:$0xff]  }
 0x2f4   :  { %4910 = vmatprep.subr.bf16.mxu0 %v7141_v23  ;;  %v7210_v23 = vld [vmem:[#allocation8 + $0x4] ss:$8 sps:$4 sm:$0xff]  }
 0x2f6   :  { %5071 = vmatpush1.bf16.msra.mxu1 %v7136_v43  ;;  %v7202_v43 = vld [vmem:[#allocation7 + $0x7c8] ss:$16 sps:$4 sm:$0xff]  }
 0x2f7   :  { %5072 = vmatprep.subr.bf16.mxu1 %v7144_v25  ;;  %4911 = vmatpush1.bf16.msra.mxu0 %v7139_v53  ;;  %v7207_v53 = vld [vmem:[#allocation7 + $0x7ec] ss:$16 sps:$4 sm:$0xff]  }
 0x2f8   :  { %4912 = vmatprep.subr.bf16.mxu0 %v7147_v27 }
 0x2fa   :  { %5073 = vmatpush1.bf16.msra.mxu1 %v7142_v36  ;;  %v7208_v36 = vld [vmem:[#allocation8] ss:$8 sps:$4 sm:$0xff]  }
 0x2fb   :  { %5074 = vmatprep.subr.bf16.mxu1 %v7150_v28  ;;  %4913 = vmatpush1.bf16.msra.mxu0 %v7145_v29  ;;  %v7213_v28 = vld [vmem:[#allocation8 + $0x14] ss:$8 sps:$4 sm:$0xff]   ;;  %v7211_v29 = vld [vmem:[#allocation8 + $0x10] ss:$8 sps:$4 sm:$0xff]  }
 0x2fc   :  { %v7778_v33 = vpop.f32.mrb[12].mxu1  ;;  %4914 = vmatprep.subr.bf16.mxu0 %v7153_v32  ;;  %v7219_v32 = vld [vmem:[#allocation8 + $0x34] ss:$8 sps:$4 sm:$0xff]  }
 0x2fd   :  { %v3182_v34 = vpop.f32.mrb[13].mxu1  ;;  %v6729_v16 = vadd.f32 %v7778_v33, %v554_v12  ;;  %v7222_v33 = vld [vmem:[#allocation8 + $0x44] ss:$8 sps:$4 sm:$0xff]  }
 0x2fe   :  { %v6730_v39 = vadd.f32 %v3182_v34, %v558_v31  ;;  %5075 = vmatpush1.bf16.msra.mxu1 %v7148_v30  ;;  %v3184_v42 = vpop.f32.mrb[14].mxu1  ;;  %v7216_v30 = vld [vmem:[#allocation8 + $0x24] ss:$8 sps:$4 sm:$0xff]   ;;  %v7214_v31 = vld [vmem:[#allocation8 + $0x20] ss:$8 sps:$4 sm:$0xff]  }
 0x2ff   :  { %v3185_v47 = vpop.f32.mrb[15].mxu1  ;;  %5076 = vmatprep.subr.bf16.mxu1 %v7156_v38  ;;  %4915 = vmatpush1.bf16.msra.mxu0 %v7151_v20  ;;  %v3201_v26 = vmul.f32 0.01, %v6729_v16  ;;  %vm3193_vm8 = vcmp.ge.f32.partialorder %v6729_v16, 0.0  ;;  %v7217_v38 = vld [vmem:[#allocation8 + $0x30] ss:$8 sps:$4 sm:$0xff]  }
 0x300   :  { %vm3194_vm7 = vcmp.ge.f32.partialorder %v6730_v39, 0.0  ;;  %v3202_v49 = vmul.f32 0.01, %v6730_v39  ;;  %4916 = vmatprep.subr.bf16.mxu0 %v7159_v45  ;;  %v7220_v34 = vld [vmem:[#allocation8 + $0x40] ss:$8 sps:$4 sm:$0xff]  }
 0x301   :  { %v3209_v25 = vsel %vm3193_vm8, %v6729_v16, %v3201_v26  ;;  %v7225_v20 = vld [vmem:[#allocation8 + $0x54] ss:$8 sps:$4 sm:$0xff]   ;;  %v7228_v42 = vld [vmem:[#allocation8 + $0x64] ss:$8 sps:$4 sm:$0xff]   ;;  %v7229_v47 = vld [vmem:[#allocation8 + $0x70] ss:$8 sps:$4 sm:$0xff]  }
 0x302   :  { %5077 = vmatpush1.bf16.msra.mxu1 %v7154_v44  ;;  %v3210_v52 = vsel %vm3194_vm7, %v6730_v39, %v3202_v49  ;;  %v3217_v27 = vpack.c.bf16 %v3209_v25, %v3209_v25  ;;  %v7223_v39 = vld [vmem:[#allocation8 + $0x50] ss:$8 sps:$4 sm:$0xff]   ;;  %v7226_v44 = vld [vmem:[#allocation8 + $0x60] ss:$8 sps:$4 sm:$0xff]   ;;  %v7231_v45 = vld [vmem:[#allocation8 + $0x74] ss:$8 sps:$4 sm:$0xff]  }
 0x303   :  { %5078 = vmatprep.subr.bf16.mxu1 %v7162_v48  ;;  %v3218_v54 = vpack.c.bf16 %v3210_v52, %v3210_v52  ;;  %4917 = vmatpush1.bf16.msra.mxu0 %v7157_v56  ;;  %v7234_v48 = vld [vmem:[#allocation8 + $0x84] ss:$8 sps:$4 sm:$0xff]   ;;  %v7232_v49 = vld [vmem:[#allocation8 + $0x80] ss:$8 sps:$4 sm:$0xff]   ;;  %v7237_v56 = vld [vmem:[#allocation8 + $0x94] ss:$8 sps:$4 sm:$0xff]  }
 0x304   :  { %4918 = vmatprep.subr.bf16.mxu0 %v7165_v55  ;;  %v7240_v52 = vld [vmem:[#allocation8 + $0xa4] ss:$8 sps:$4 sm:$0xff]   ;;  %v7243_v55 = vld [vmem:[#allocation8 + $0xb4] ss:$8 sps:$4 sm:$0xff]  }
 0x305   :  { %4932 = vmatprep.mubr.bf16.mxu0 %v3218_v54  ;;  %5096 = vmatprep.mubr.bf16.mxu1 %v3218_v54  ;;  %v7238_v54 = vld [vmem:[#allocation8 + $0xa0] ss:$8 sps:$4 sm:$0xff]  }
 0x306   :  { %5079 = vmatpush1.bf16.msra.mxu1 %v7160_v50  ;;  %v7235_v50 = vld [vmem:[#allocation8 + $0x90] ss:$8 sps:$4 sm:$0xff]   ;;  %v7312_v12 = vld [vmem:[#allocation10 + $0x60] sm:$0xff]  }
 0x307   :  { %5080 = vmatprep.subr.bf16.mxu1 %v7168_v58  ;;  %4919 = vmatpush1.bf16.msra.mxu0 %v7163_v59  ;;  %v7241_v58 = vld [vmem:[#allocation8 + $0xb0] ss:$8 sps:$4 sm:$0xff]   ;;  %v7246_v59 = vld [vmem:[#allocation8 + $0xc4] ss:$8 sps:$4 sm:$0xff]  }
 0x308   :  { %4920 = vmatprep.subr.bf16.mxu0 %v7171_v62  ;;  %v7249_v62 = vld [vmem:[#allocation8 + $0xd4] ss:$8 sps:$4 sm:$0xff]  }
 0x30a   :  { %5081 = vmatpush1.bf16.msra.mxu1 %v7166_v61  ;;  %v7244_v61 = vld [vmem:[#allocation8 + $0xc0] ss:$8 sps:$4 sm:$0xff]  }
 0x30b   :  { %5082 = vmatprep.subr.bf16.mxu1 %v7174_v63  ;;  %4921 = vmatpush1.bf16.msra.mxu0 %v7169_v1  ;;  %v7247_v63 = vld [vmem:[#allocation8 + $0xd0] ss:$8 sps:$4 sm:$0xff]   ;;  %v7252_v1 = vld [vmem:[#allocation8 + $0xe4] ss:$8 sps:$4 sm:$0xff]  }
 0x30c   :  { %4922 = vmatprep.subr.bf16.mxu0 %v7177_v60  ;;  %v7255_v60 = vld [vmem:[#allocation8 + $0xf4] ss:$8 sps:$4 sm:$0xff]  }
 0x30e   :  { %5083 = vmatpush1.bf16.msra.mxu1 %v7172_v3  ;;  %v7250_v3 = vld [vmem:[#allocation8 + $0xe0] ss:$8 sps:$4 sm:$0xff]  }
 0x30f   :  { %5084 = vmatprep.subr.bf16.mxu1 %v7180_v4  ;;  %4923 = vmatpush1.bf16.msra.mxu0 %v7175_v5  ;;  %v7253_v4 = vld [vmem:[#allocation8 + $0xf0] ss:$8 sps:$4 sm:$0xff]   ;;  %v7258_v5 = vld [vmem:[#allocation8 + $0x104] ss:$8 sps:$4 sm:$0xff]  }
 0x310   :  { %4924 = vmatprep.subr.bf16.mxu0 %v7183_v7  ;;  %v7305_v7 = vld [vmem:[#allocation10] sm:$0xff]  }
 0x312   :  { %5085 = vmatpush1.bf16.msra.mxu1 %v7178_v6  ;;  %v7304_v6 = vld [vmem:[#allocation10 + $0x40] sm:$0xff]  }
 0x313   :  { %5086 = vmatprep.subr.bf16.mxu1 %v7186_v9  ;;  %4925 = vmatpush1.bf16.msra.mxu0 %v7181_v37  ;;  %v7307_v9 = vld [vmem:[#allocation10 + $0x8] sm:$0xff]   ;;  %v7308_v37 = vld [vmem:[#allocation10 + $0x50] sm:$0xff]  }
 0x314   :  { %4926 = vmatprep.subr.bf16.mxu0 %v7189_v19  ;;  %v7310_v19 = vld [vmem:[#allocation10 + $0x58] sm:$0xff]  }
 0x316   :  { %5087 = vmatpush1.bf16.msra.mxu1 %v7184_v10  ;;  %v7309_v10 = vld [vmem:[#allocation10 + $0x10] sm:$0xff]  }
 0x317   :  { %5088 = vmatprep.subr.bf16.mxu1 %v7192_v13  ;;  %4927 = vmatpush1.bf16.msra.mxu0 %v7187_v11  ;;  %v7313_v13 = vld [vmem:[#allocation10 + $0x20] sm:$0xff]   ;;  %v7314_v11 = vld [vmem:[#allocation10 + $0x68] sm:$0xff]  }
 0x318   :  { %4928 = vmatprep.subr.bf16.mxu0 %v7195_v15  ;;  %v7782_v15 = vld [vmem:[#allocation13 + $0x8] sm:$0xf] }
 0x319   :  { %v3480_v16 = vrot.slane %v7782_v15, %v7721_v51 }
 0x31a   :  { %5089 = vmatpush1.bf16.msra.mxu1 %v7190_v14  ;;  %v7315_v14 = vld [vmem:[#allocation10 + $0x28] sm:$0xff]  }
 0x31b   :  { %5090 = vmatprep.subr.bf16.mxu1 %v7198_v17  ;;  %4929 = vmatpush1.bf16.msra.mxu0 %v7193_v24  ;;  %v3484_v17 = vrot.slane %v7782_v15, %v7726_v57 }
 0x31c   :  { %4930 = vmatprep.subr.bf16.mxu0 %v7201_v41 }
 0x31e   :  { %5091 = vmatpush1.bf16.msra.mxu1 %v7196_v18 }
 0x31f   :  { %5092 = vmatprep.subr.bf16.mxu1 %v7204_v21  ;;  %4931 = vmatpush1.bf16.msra.mxu0 %v7199_v22 }
 0x320   :  { %5517 = vmatprep.subr.bf16.mxu0 %v7210_v23  ;;  %v3492_v23 = vrot.slane %v7782_v15, %v541_v35  ;;  %v7259_v35 = vld [vmem:[#allocation8 + $0x110] ss:$8 sps:$4 sm:$0xff]  }
 0x322   :  { %5093 = vmatpush1.bf16.msra.mxu1 %v7202_v43  ;;  %4933 = vmatmul.mubr.bf16.vlgmr.msra.gmra.mrb[8].mxu0 %v3217_v27 }
 0x323   :  { %5094 = vmatprep.subr.bf16.mxu1 %v7207_v53  ;;  %5518 = vmatpush1.bf16.msra.mxu0 %v7208_v36 }
 0x324   :  { %5519 = vmatprep.subr.bf16.mxu0 %v7213_v28 }
 0x326   :  { %5095 = vmatpush1.bf16.msra.mxu1 %v7205_v0 }
 0x327   :  { %5520 = vmatpush1.bf16.msra.mxu0 %v7211_v29  ;;  %6668 = vmatprep.subr.bf16.mxu1 %v7304_v6  ;;  %v7292_v6 = vld [vmem:[#allocation8 + $0x1c0] ss:$8 sps:$4 sm:$0xff]  }
 0x328   :  { %5521 = vmatprep.subr.bf16.mxu0 %v7216_v30 }
 0x329   :  { %5097 = vmatmul.mubr.bf16.vlgmr.msra.gmra.mrb[16].mxu1 %v3217_v27 }
 0x32a   :  { %6669 = vmatpush3.bf16.msra.mxu1 %v7305_v7  ;;  %v7297_v7 = vld [vmem:[#allocation8 + $0x1d4] ss:$8 sps:$4 sm:$0xff]  }
 0x32b   :  { %5522 = vmatpush1.bf16.msra.mxu0 %v7214_v31  ;;  %6670 = vmatprep.subr.bf16.mxu1 %v7306_v8  ;;  %v7256_v31 = vld [vmem:[#allocation8 + $0x100] ss:$8 sps:$4 sm:$0xff]   ;;  %v3488_v8 = vrot.slane %v7782_v15, %v537_v2  ;;  %v7316_v2 = vld [vmem:[#allocation10 + $0x70] sm:$0xff]   ;;  %v7318_v15 = vld [vmem:[#allocation10 + $0x78] sm:$0xff]  }
 0x32c   :  { %5523 = vmatprep.subr.bf16.mxu0 %v7219_v32 }
 0x32e   :  { %6671 = vmatpush3.bf16.msra.mxu1 %v7307_v9  ;;  %v7295_v9 = vld [vmem:[#allocation8 + $0x1d0] ss:$8 sps:$4 sm:$0xff]  }
 0x32f   :  { %5524 = vmatpush1.bf16.msra.mxu0 %v7217_v38  ;;  %6672 = vmatprep.subr.bf16.mxu1 %v7308_v37  ;;  %v7300_v37 = vld [vmem:[#allocation8 + $0x1e4] ss:$8 sps:$4 sm:$0xff]  }
 0x330   :  { %5525 = vmatprep.subr.bf16.mxu0 %v7222_v33  ;;  %v7261_v33 = vld [vmem:[#allocation8 + $0x114] ss:$8 sps:$4 sm:$0xff]  }
 0x332   :  { %6673 = vmatpush3.bf16.msra.mxu1 %v7309_v10 }
 0x333   :  { %5526 = vmatpush1.bf16.msra.mxu0 %v7220_v34  ;;  %6674 = vmatprep.subr.bf16.mxu1 %v7310_v19  ;;  %v7298_v19 = vld [vmem:[#allocation8 + $0x1e0] ss:$8 sps:$4 sm:$0xff]  }
 0x334   :  { %5527 = vmatprep.subr.bf16.mxu0 %v7225_v20 }
 0x336   :  { %6675 = vmatpush3.bf16.msra.mxu1 %v7311_v40  ;;  %v7303_v40 = vld [vmem:[#allocation8 + $0x1f4] ss:$8 sps:$4 sm:$0xff]  }
 0x337   :  { %5528 = vmatpush1.bf16.msra.mxu0 %v7223_v39  ;;  %6676 = vmatprep.subr.bf16.mxu1 %v7312_v12 }
 0x338   :  { %5529 = vmatprep.subr.bf16.mxu0 %v7228_v42  ;;  %v7264_v42 = vld [vmem:[#allocation8 + $0x124] ss:$8 sps:$4 sm:$0xff]  }
 0x33a   :  { %6677 = vmatpush3.bf16.msra.mxu1 %v7313_v13  ;;  %v7301_v13 = vld [vmem:[#allocation8 + $0x1f0] ss:$8 sps:$4 sm:$0xff]  }
 0x33b   :  { %5530 = vmatpush1.bf16.msra.mxu0 %v7226_v44  ;;  %6678 = vmatprep.subr.bf16.mxu1 %v7314_v11  ;;  %v7262_v44 = vld [vmem:[#allocation8 + $0x120] ss:$8 sps:$4 sm:$0xff]  }
 0x33c   :  { %5531 = vmatprep.subr.bf16.mxu0 %v7231_v45  ;;  %v7267_v45 = vld [vmem:[#allocation8 + $0x134] ss:$8 sps:$4 sm:$0xff]  }
 0x33e   :  { %6679 = vmatpush3.bf16.msra.mxu1 %v7315_v14  ;;  %v7317_v14 = vld [vmem:[#allocation10 + $0x30] sm:$0xff]  }
 0x33f   :  { %5532 = vmatpush1.bf16.msra.mxu0 %v7229_v47  ;;  %v7265_v47 = vld [vmem:[#allocation8 + $0x130] ss:$8 sps:$4 sm:$0xff]   ;;  %6680 = vmatprep.subr.bf16.mxu1 %v7316_v2 }
 0x340   :  { %5533 = vmatprep.subr.bf16.mxu0 %v7234_v48  ;;  %v7270_v48 = vld [vmem:[#allocation8 + $0x144] ss:$8 sps:$4 sm:$0xff]  }
 0x342   :  { %6681 = vmatpush3.bf16.msra.mxu1 %v7317_v14 }
 0x343   :  { %5534 = vmatpush1.bf16.msra.mxu0 %v7232_v49  ;;  %v7268_v49 = vld [vmem:[#allocation8 + $0x140] ss:$8 sps:$4 sm:$0xff]   ;;  %6682 = vmatprep.subr.bf16.mxu1 %v7318_v15 }
 0x344   :  { %5535 = vmatprep.subr.bf16.mxu0 %v7237_v56  ;;  %v7273_v56 = vld [vmem:[#allocation8 + $0x154] ss:$8 sps:$4 sm:$0xff]  }
 0x347   :  { %5536 = vmatpush1.bf16.msra.mxu0 %v7235_v50  ;;  %v7271_v50 = vld [vmem:[#allocation8 + $0x150] ss:$8 sps:$4 sm:$0xff]  }
 0x348   :  { %5537 = vmatprep.subr.bf16.mxu0 %v7240_v52  ;;  %v7276_v52 = vld [vmem:[#allocation8 + $0x164] ss:$8 sps:$4 sm:$0xff]  }
 0x34b   :  { %5538 = vmatpush1.bf16.msra.mxu0 %v7238_v54  ;;  %v7274_v54 = vld [vmem:[#allocation8 + $0x160] ss:$8 sps:$4 sm:$0xff]  }
 0x34c   :  { %5539 = vmatprep.subr.bf16.mxu0 %v7243_v55  ;;  %v7279_v55 = vld [vmem:[#allocation8 + $0x174] ss:$8 sps:$4 sm:$0xff]  }
 0x34f   :  { %5540 = vmatpush1.bf16.msra.mxu0 %v7241_v58  ;;  %v7277_v58 = vld [vmem:[#allocation8 + $0x170] ss:$8 sps:$4 sm:$0xff]  }
 0x350   :  { %5541 = vmatprep.subr.bf16.mxu0 %v7246_v59  ;;  %v7282_v59 = vld [vmem:[#allocation8 + $0x184] ss:$8 sps:$4 sm:$0xff]  }
 0x353   :  { %5542 = vmatpush1.bf16.msra.mxu0 %v7244_v61  ;;  %v7280_v61 = vld [vmem:[#allocation8 + $0x180] ss:$8 sps:$4 sm:$0xff]  }
 0x354   :  { %5543 = vmatprep.subr.bf16.mxu0 %v7249_v62  ;;  %v7285_v62 = vld [vmem:[#allocation8 + $0x194] ss:$8 sps:$4 sm:$0xff]  }
 0x357   :  { %5544 = vmatpush1.bf16.msra.mxu0 %v7247_v63  ;;  %v7283_v63 = vld [vmem:[#allocation8 + $0x190] ss:$8 sps:$4 sm:$0xff]  }
 0x358   :  { %5545 = vmatprep.subr.bf16.mxu0 %v7252_v1  ;;  %v7288_v1 = vld [vmem:[#allocation8 + $0x1a4] ss:$8 sps:$4 sm:$0xff]  }
 0x35b   :  { %5546 = vmatpush1.bf16.msra.mxu0 %v7250_v3  ;;  %v7286_v3 = vld [vmem:[#allocation8 + $0x1a0] ss:$8 sps:$4 sm:$0xff]  }
 0x35c   :  { %5547 = vmatprep.subr.bf16.mxu0 %v7255_v60  ;;  %v7291_v60 = vld [vmem:[#allocation8 + $0x1b4] ss:$8 sps:$4 sm:$0xff]  }
 0x35f   :  { %5548 = vmatpush1.bf16.msra.mxu0 %v7253_v4  ;;  %v7289_v4 = vld [vmem:[#allocation8 + $0x1b0] ss:$8 sps:$4 sm:$0xff]  }
 0x360   :  { %5558 = vmatprep.subr.bf16.mxu0 %v7258_v5  ;;  %v7294_v5 = vld [vmem:[#allocation8 + $0x1c4] ss:$8 sps:$4 sm:$0xff]  }
 0x3f5   :  { %v4934_v24 = vpop.f32.mrb[8].mxu0 }
 0x3f6   :  { %v6731_v18 = vadd.f32 %v4934_v24, %v3480_v16  ;;  %v4936_v41 = vpop.f32.mrb[9].mxu0  ;;  %v7319_v16 = vld [vmem:[#allocation10 + $0x38] sm:$0xff]   ;;  %v5121_v24 = vld [vmem:[#allocation13 + $0xc] sm:$0x3] }
 0x3f7   :  { %v6732_v26 = vadd.f32 %v4936_v41, %v3484_v17  ;;  %v4938_v21 = vpop.f32.mrb[10].mxu0  ;;  %6683 = vmatpush3.bf16.msra.mxu1 %v7319_v16  ;;  %v7535_v17 = vmov 0.0   ;;  %v5194_v41 = vrot.slane %v5121_v24, %v7726_v57  ;;  %v7322_v57 = vld [vmem:[#allocation11 + $0x10] sm:$0xff]  }
 0x3f8   :  { %vm5105_vm9 = vcmp.ge.f32.partialorder %v6731_v18, 0.0  ;;  %v5109_v22 = vmul.f32 0.01, %v6731_v18  ;;  %v4939_v43 = vpop.f32.mrb[11].mxu0  ;;  %6699 = vmatprep.subr.bf16.mxu1 %v7535_v17 }
 0x3f9   :  { %vm5106_vm10 = vcmp.ge.f32.partialorder %v6732_v26, 0.0  ;;  %v5110_v25 = vmul.f32 0.01, %v6732_v26 }
 0x3fa   :  { %v5113_v53 = vsel %vm5105_vm9, %v6731_v18, %v5109_v22  ;;  %v5190_v18 = vrot.slane %v5121_v24, %v7721_v51  ;;  %v7321_v51 = vld [vmem:[#allocation11 + $0x8] sm:$0xff]  }
 0x3fb   :  { %v5114_v0 = vsel %vm5106_vm10, %v6732_v26, %v5110_v25  ;;  %v5117_v32 = vpack.c.bf16 %v5113_v53, %v5113_v53 }
 0x3fc   :  { %v7791_v36 = vpop.f32.mrb[16].mxu1  ;;  %v5118_v30 = vpack.c.bf16 %v5114_v0, %v5114_v0 }
 0x3fd   :  { %v5100_v27 = vpop.f32.mrb[17].mxu1  ;;  %v6733_v10 = vadd.f32 %v7791_v36, %v3488_v8 }
 0x3fe   :  { %v6734_v28 = vadd.f32 %v5100_v27, %v3492_v23  ;;  %v5102_v29 = vpop.f32.mrb[18].mxu1  ;;  %5549 = vmatprep.mubr.bf16.mxu0 %v5118_v30 }
 0x3ff   :  { %v5103_v38 = vpop.f32.mrb[19].mxu1  ;;  %5550 = vmatmul.mubr.bf16.vlgmr.msra.gmra.mrb[12].mxu0 %v5117_v32  ;;  %v5111_v12 = vmul.f32 0.01, %v6733_v10  ;;  %vm5107_vm12 = vcmp.ge.f32.partialorder %v6733_v10, 0.0  ;;  %v7320_v29 = vld [vmem:[#allocation11] sm:$0xff]  }
 0x400   :  { %vm5108_vm11 = vcmp.ge.f32.partialorder %v6734_v28, 0.0  ;;  %v5112_v34 = vmul.f32 0.01, %v6734_v28  ;;  %5559 = vmatpush1.bf16.msra.mxu0 %v7256_v31  ;;  %v7323_v31 = vld [vmem:[#allocation11 + $0x18] sm:$0xff]   ;;  %v7324_v32 = vld [vmem:[#allocation11 + $0x20] sm:$0xff]   ;;  %v7325_v38 = vld [vmem:[#allocation11 + $0x28] sm:$0xff]  }
 0x401   :  { %5560 = vmatprep.subr.bf16.mxu0 %v7261_v33  ;;  %v5115_v11 = vsel %vm5107_vm12, %v6733_v10, %v5111_v12  ;;  %v7326_v33 = vld [vmem:[#allocation11 + $0x30] sm:$0xff]  }
 0x402   :  { %v5116_v20 = vsel %vm5108_vm11, %v6734_v28, %v5112_v34  ;;  %v5119_v46 = vpack.c.bf16 %v5115_v11, %v5115_v11  ;;  %v7327_v34 = vld [vmem:[#allocation11 + $0x38] sm:$0xff]  }
 0x403   :  { %v5120_v39 = vpack.c.bf16 %v5116_v20, %v5116_v20  ;;  %v6642_v20 = vld [vmem:[#allocation13 + $0xe] ss:$0 sm:$0xff] }
 0x404   :  { %5561 = vmatpush1.bf16.msra.mxu0 %v7259_v35 }
 0x405   :  { %5590 = vmatprep.mubr.bf16.mxu0 %v5120_v39  ;;  %5562 = vmatprep.subr.bf16.mxu0 %v7264_v42 }
 0x408   :  { %5563 = vmatpush1.bf16.msra.mxu0 %v7262_v44 }
 0x409   :  { %5564 = vmatprep.subr.bf16.mxu0 %v7267_v45 }
 0x40c   :  { %5565 = vmatpush1.bf16.msra.mxu0 %v7265_v47 }
 0x40d   :  { %5566 = vmatprep.subr.bf16.mxu0 %v7270_v48 }
 0x410   :  { %5567 = vmatpush1.bf16.msra.mxu0 %v7268_v49 }
 0x411   :  { %5568 = vmatprep.subr.bf16.mxu0 %v7273_v56 }
 0x414   :  { %5569 = vmatpush1.bf16.msra.mxu0 %v7271_v50  ;;  %v6659_v50 = vld [vmem:[#allocation13 + $0xf] ss:$0 sm:$0xff] }
 0x415   :  { %5570 = vmatprep.subr.bf16.mxu0 %v7276_v52 }
 0x418   :  { %5571 = vmatpush1.bf16.msra.mxu0 %v7274_v54 }
 0x419   :  { %5572 = vmatprep.subr.bf16.mxu0 %v7279_v55 }
 0x41c   :  { %5573 = vmatpush1.bf16.msra.mxu0 %v7277_v58 }
 0x41d   :  { %5574 = vmatprep.subr.bf16.mxu0 %v7282_v59 }
 0x420   :  { %5575 = vmatpush1.bf16.msra.mxu0 %v7280_v61 }
 0x421   :  { %5576 = vmatprep.subr.bf16.mxu0 %v7285_v62 }
 0x424   :  { %5577 = vmatpush1.bf16.msra.mxu0 %v7283_v63 }
 0x425   :  { %5578 = vmatprep.subr.bf16.mxu0 %v7288_v1 }
 0x428   :  { %5579 = vmatpush1.bf16.msra.mxu0 %v7286_v3 }
 0x429   :  { %5580 = vmatprep.subr.bf16.mxu0 %v7291_v60 }
 0x42c   :  { %5581 = vmatpush1.bf16.msra.mxu0 %v7289_v4 }
 0x42d   :  { %5582 = vmatprep.subr.bf16.mxu0 %v7294_v5 }
 0x430   :  { %5583 = vmatpush1.bf16.msra.mxu0 %v7292_v6 }
 0x431   :  { %5584 = vmatprep.subr.bf16.mxu0 %v7297_v7 }
 0x434   :  { %5585 = vmatpush1.bf16.msra.mxu0 %v7295_v9 }
 0x435   :  { %5586 = vmatprep.subr.bf16.mxu0 %v7300_v37 }
 0x438   :  { %5587 = vmatpush1.bf16.msra.mxu0 %v7298_v19 }
 0x439   :  { %5588 = vmatprep.subr.bf16.mxu0 %v7303_v40 }
 0x43c   :  { %5589 = vmatpush1.bf16.msra.mxu0 %v7301_v13 }
 0x43f   :  { %5591 = vmatmul.mubr.bf16.vlgmr.msra.gmra.mrb[12].mxu0 %v5119_v46 }
 0x512   :  { %v5592_v26 = vpop.f32.mrb[12].mxu0 }
 0x513   :  { %v6735_v21 = vadd.f32 %v5592_v26, %v5190_v18  ;;  %v5594_v22 = vpop.f32.mrb[13].mxu0 }
 0x514   :  { %v6736_v43 = vadd.f32 %v5594_v22, %v5194_v41  ;;  %v5596_v23 = vpop.f32.mrb[14].mxu0 }
 0x515   :  { %vm5599_vm13 = vcmp.ge.f32.partialorder %v6735_v21, 0.0  ;;  %v5601_v25 = vmul.f32 0.01, %v6735_v21  ;;  %v5597_v53 = vpop.f32.mrb[15].mxu0 }
 0x516   :  { %vm5600_vm14 = vcmp.ge.f32.partialorder %v6736_v43, 0.0  ;;  %v5602_v36 = vmul.f32 0.01, %v6736_v43 }
 0x517   :  { %v5603_v27 = vsel %vm5599_vm13, %v6735_v21, %v5601_v25 }
 0x518   :  { %v5604_v0 = vsel %vm5600_vm14, %v6736_v43, %v5602_v36  ;;  %v5605_v30 = vpack.c.bf16 %v5603_v27, %v5603_v27 }
 0x519   :  { %v5606_v28 = vpack.c.bf16 %v5604_v0, %v5604_v0 }
 0x51b   :  { %5774 = vmatprep.mubr.bf16.mxu1 %v5606_v28 }
 0x51c   :  { %5775 = vmatmul.mubr.bf16.vlgmr.msra.gmra.mrb[20].mxu1 %v5605_v30 }
 0x51d   :  { %6700 = vmatpush3.bf16.msra.mxu1 %v7320_v29  ;;  %6715 = vmatprep.mubr.msk.bf16.mxu1 %vm7536_vm15, %v7535_v17 }
 0x51e   :  { %6701 = vmatprep.subr.bf16.mxu1 %v7535_v17 }
 0x521   :  { %6702 = vmatpush3.bf16.msra.mxu1 %v7321_v51 }
 0x522   :  { %6703 = vmatprep.subr.bf16.mxu1 %v7535_v17 }
 0x525   :  { %6704 = vmatpush3.bf16.msra.mxu1 %v7322_v57 }
 0x526   :  { %6705 = vmatprep.subr.bf16.mxu1 %v7535_v17 }
 0x529   :  { %6706 = vmatpush3.bf16.msra.mxu1 %v7323_v31 }
 0x52a   :  { %6707 = vmatprep.subr.bf16.mxu1 %v7535_v17 }
 0x52d   :  { %6708 = vmatpush3.bf16.msra.mxu1 %v7324_v32 }
 0x52e   :  { %6709 = vmatprep.subr.bf16.mxu1 %v7535_v17 }
 0x531   :  { %6710 = vmatpush3.bf16.msra.mxu1 %v7325_v38 }
 0x532   :  { %6711 = vmatprep.subr.bf16.mxu1 %v7535_v17 }
 0x535   :  { %6712 = vmatpush3.bf16.msra.mxu1 %v7326_v33 }
 0x536   :  { %6713 = vmatprep.subr.bf16.mxu1 %v7535_v17 }
 0x539   :  { %6714 = vmatpush3.bf16.msra.mxu1 %v7327_v34 }
 0x5ef   :  { %v6684_v35 = vpop.f32.mrb[20].mxu1 }
 0x5f0   :  { %v6685_v39 = vpop.f32.mrb[21].mxu1 }
 0x5f1   :  { %v6686_v42 = vadd.f32 %v6685_v39, %v6684_v35  ;;  %v6687_v44 = vpop.f32.mrb[22].mxu1 }
 0x5f2   :  { %v6688_v45 = vpop.f32.mrb[23].mxu1 }
 0x5f3   :  { %v5777_v47 = vadd.f32 %v6686_v42, %v6642_v20 }
 0x5f5   :  { %vm5782_vm0 = vcmp.ge.f32.partialorder %v5777_v47, 0.0  ;;  %v5783_v48 = vmul.f32 0.01, %v5777_v47 }
 0x5f7   :  { %v5784_v49 = vsel %vm5782_vm0, %v5777_v47, %v5783_v48 }
 0x5f8   :  { %v5785_v56 = vpack.c.bf16 %v5784_v49, %v5784_v49 }
 0x5fa   :  { %6716 = vmatmul.mubr.bf16.vlgmr.msra.gmra.mrb[24].mxu1 %v5785_v56 }
 0x6cd   :  { %v5891_v52 = vpop.f32.mrb[24].mxu1 }
 0x6ce   :  { %v5892_v54 = vadd.f32 %v6659_v50, %v5891_v52  ;;  %v6717_v55 = vpop.f32.mrb[25].mxu1 }
 0x6cf   :  { %v5894_v58 = vpop.f32.mrb[26].mxu1 }
 0x6d0   :  { %5897 = vmax.xlane.f32.xlu0 %v5892_v54  ;;  %v6718_v59 = vpop.f32.mrb[27].mxu1 }
 0x75d   :  { %v5898_v61 = vpop.xlane.xlu0 %5897 }
 0x75e   :  { %v5899_v62 = vsub.f32 %v5892_v54, %v5898_v61 }
 0x760   :  { %v5900_v63 = vmul.f32 1.442695, %v5899_v62 }
 0x762   :  { %7328 = vpow2.f32 %v5900_v63 }
 0x76c   :  { %v7329_v1 = vpop.eup %7328 }
 0x76d   :  { %5902 = vadd.xlane.f32.xlu0 %v7329_v1 }
 0x7fa   :  { %v5903_v3 = vpop.xlane.xlu0 %5902 }
 0x7fb   :  { %7330 = vlog2.f32 %v5903_v3 }
 0x805   :  { %v7331_v60 = vpop.eup %7330 }
 0x806   :  { %v5905_v4 = vmul.f32 0.6931472, %v7331_v60 }
 0x808   :  { %v5906_v5 = vsub.f32 %v5899_v62, %v5905_v4 }
 0x80a   :  { %5907 = vst [vmem:[#allocation14] sm:$0xff] %v5906_v5 }
 0x80b   :  { %7498 = shalt.err (!%p7495_p4)
}
 0x80c   :  { %s7499_s18 = scalar_lea.hbm %s7818_s7, 128 }
 0x80d   :  { %p7500_p5 = scmp.ne.s32.totalorder %s7818_s7, %s7499_s18  ;;  %p7503_p6 = scmp.lt.u32.totalorder %s7499_s18, %s7818_s7 }
 0x80f   :  { %p7505_p7 = pnand %p7503_p6, %p7500_p5 }
 0x811   :  { %7508 = shalt.err (!%p7505_p7)
}
 0x812   :  { %5917 = dma.vmem_to_hbm [thread:$0]  %s5915_s17, 128, %s7818_s7, [#allocation4]  }
 0x813   :  { %7517 = dma.done.wait [#allocation4], 128  }
 0x814   :  { %7518 = vsyncadd [#allocation4], 4294967168 }
 0x815   :  { %5921 = vsyncpa [#allocation3], 1 }
 0x816   :  { %5922 = vsyncpa [#allocation6], 1 }
 0x817   :  { %5923 = vsyncpa [#allocation9], 1 }
 0x818   :  { %5924 = vsyncpa [#allocation12], 1 }
 0x819   :  { %5925 = vsyncpa [#allocation4], 1 }

</bundles_post_ra>
